<compile_context>
chip_gen: v7x
topology: tpu7x:2x2x1
jax: 0.10.0
libtpu: 0.0.40
codegen_flags: <defaults>
</compile_context>

<pallas_src>
import math

import jax
import jax.numpy as jnp
from jax.experimental import pallas as pl
from jax.experimental.pallas import tpu as pltpu

HIDDEN = 512          # hidden width of the MLP (fixed by the PyTorch module)
OUT_PAD = 128         # lane-padded output width (>= n_event_latent)


# ----------------------------- Pallas kernel --------------------------------
def eventfn_kernel(z_ref, w1_ref, w2_ref, w3_ref, w4_ref, b_ref, out_ref):
    # z_ref:  (TB, d_in)      f32   -- batch tile of inputs
    # w1_ref: (d_in, 512)     bf16
    # w2/3:   (512, 512)      bf16  (f32 accumulate on MXU)
    # w4_ref: (512, OUT_PAD)  bf16  (zero-padded beyond n_event_latent)
    # b_ref:  (8, 512)        f32   rows 0..3 = b1,b2,b3,b4(padded)
    # out_ref:(TB, OUT_PAD)   bf16  lane-dense output tile
    x = z_ref[...].astype(jnp.bfloat16)
    h = jnp.maximum(
        jnp.dot(x, w1_ref[...], preferred_element_type=jnp.float32)
        + b_ref[0:1, :], 0.0)
    h = jnp.maximum(
        jnp.dot(h.astype(jnp.bfloat16), w2_ref[...],
                preferred_element_type=jnp.float32) + b_ref[1:2, :], 0.0)
    h = jnp.maximum(
        jnp.dot(h.astype(jnp.bfloat16), w3_ref[...],
                preferred_element_type=jnp.float32) + b_ref[2:3, :], 0.0)
    o = jnp.tanh(
        jnp.dot(h.astype(jnp.bfloat16), w4_ref[...],
                preferred_element_type=jnp.float32) + b_ref[3:4, 0:OUT_PAD])
    out_ref[...] = o.astype(out_ref.dtype)               # lane-dense, unmasked vst


# ----------------------------- parameters ------------------------------------
def make_eventfn_params(key, n_objects, n_event_latent, init_factor):
    """Deterministic init mirroring EventFn.__init__ (uniform(-f*std, f*std), bias=0).
    Weights are stored (in_dim, out_dim) = transpose of PyTorch's (out, in)."""
    input_dim = 2 * n_objects + 2
    dims = [(input_dim, HIDDEN), (HIDDEN, HIDDEN),
            (HIDDEN, HIDDEN), (HIDDEN, n_event_latent)]
    params = []
    for i, (fan_in, fan_out) in enumerate(dims):
        k = jax.random.fold_in(key, i)
        std = 1.0 / math.sqrt(fan_in)
        w = jax.random.uniform(k, (fan_in, fan_out), jnp.float32,
                               minval=-init_factor * std, maxval=init_factor * std)
        b = jnp.zeros((fan_out,), jnp.float32)
        params.append((w, b))
    return params


def pack_params(params, n_event_latent):
    """Pack to kernel layout: bf16 weights (single-pass MXU), lane-padded W4,
    one (8,512) f32 bias slab."""
    assert n_event_latent <= OUT_PAD, (
        f"n_event_latent={n_event_latent} must be <= OUT_PAD={OUT_PAD}")
    assert OUT_PAD <= HIDDEN, f"OUT_PAD={OUT_PAD} must be <= HIDDEN={HIDDEN}"
    (w1, b1), (w2, b2), (w3, b3), (w4, b4) = params
    w4p = jnp.zeros((HIDDEN, OUT_PAD), jnp.float32).at[:, :n_event_latent].set(w4)
    bslab = jnp.zeros((8, HIDDEN), jnp.float32)
    bslab = bslab.at[0].set(b1).at[1].set(b2).at[2].set(b3)
    bslab = bslab.at[3, :n_event_latent].set(b4)
    return (w1.astype(jnp.bfloat16), w2.astype(jnp.bfloat16),
            w3.astype(jnp.bfloat16), w4p.astype(jnp.bfloat16), bslab)


# ----------------------------- wrappers ---------------------------------------
def _batch_tile(batch):
    # 256-row tiles fill the 256-wide MXU (v6e/v7x) and amortize the ~0.35us
    # per-grid-step overhead, but only when the grid still has >= 2 steps so
    # both v7x TensorCores get work.  Otherwise stick with 128 (fills v5e MXU).
    return 256 if batch >= 512 else 128


def eventfn_rows_batch(pos_b, dia_b, packed, n_event_latent):
    """Pallas path: tanh(MLP(z_b)) rows, shape (B, n_event_latent), f32."""
    B = pos_b.shape[0]
    z = jnp.concatenate([pos_b.reshape(B, -1), dia_b.reshape(B, -1)],
                        axis=-1).astype(jnp.float32)          # (B, d_in)
    d_in = z.shape[1]
    tb = _batch_tile(B)
    b_pad = ((B + tb - 1) // tb) * tb
    if b_pad != B:
        z = jnp.pad(z, ((0, b_pad - B), (0, 0)))

    w1, w2, w3, w4, bslab = packed

    def run(buffered_consts):
        def const_spec(shape):
            # Grid-constant blocks: single-buffer them (no overlap benefit,
            # saves VMEM and per-step buffer rotation).
            if buffered_consts:
                return pl.BlockSpec(shape, lambda i: (0, 0),
                                    pipeline_mode=pl.Buffered(1))
            return pl.BlockSpec(shape, lambda i: (0, 0))

        return pl.pallas_call(
            eventfn_kernel,
            out_shape=jax.ShapeDtypeStruct((b_pad, OUT_PAD), jnp.bfloat16),
            grid=(b_pad // tb,),
            in_specs=[
                pl.BlockSpec((tb, d_in), lambda i: (i, 0)),       # batch tile of z
                const_spec((d_in, HIDDEN)),                        # w1 bf16 (resident)
                const_spec((HIDDEN, HIDDEN)),                      # w2 bf16 (resident)
                const_spec((HIDDEN, HIDDEN)),                      # w3 bf16 (resident)
                const_spec((HIDDEN, OUT_PAD)),                     # w4 bf16 padded (resident)
                const_spec((8, HIDDEN)),                           # bias slab (resident)
            ],
            out_specs=pl.BlockSpec((tb, OUT_PAD), lambda i: (i, 0)),
            compiler_params=pltpu.CompilerParams(
                dimension_semantics=("parallel",)),                # v7x: shard over 2 TCs
        )(z, w1, w2, w3, w4, bslab)

    try:
        rows = run(True)
    except Exception:
        # pipeline_mode=pl.Buffered(1) not supported on this jax/libtpu build;
        # fall back to default double-buffering (correctness identical).
        rows = run(False)

    # Padded batch rows are garbage and padded lanes are tanh(0)=0: slice both
    # off HERE so no downstream consumer ever reduces over the padding.
    return rows[:B, :n_event_latent].astype(jnp.float32)


def eventfn_forward_batch(pos_b, dia_b, packed, n_event_latent):
    """Batched event function: (B,) array of prod(tanh(MLP(z_b)))."""
    rows = eventfn_rows_batch(pos_b, dia_b, packed, n_event_latent)
    return jnp.prod(rows, axis=-1)                        # torch.prod in f32


# ----------------------------- pure-JAX references ----------------------------
def eventfn_reference_f32(pos_b, dia_b, params, n_event_latent):
    """True f32 reference mirroring the PyTorch EventFn (no bf16 quantization)."""
    B = pos_b.shape[0]
    z = jnp.concatenate([pos_b.reshape(B, -1), dia_b.reshape(B, -1)],
                        axis=-1).astype(jnp.float32)
    (w1, b1), (w2, b2), (w3, b3), (w4, b4) = params
    hi = jax.lax.Precision.HIGHEST
    h = jnp.maximum(jnp.dot(z, w1, precision=hi) + b1, 0.0)
    h = jnp.maximum(jnp.dot(h, w2, precision=hi) + b2, 0.0)
    h = jnp.maximum(jnp.dot(h, w3, precision=hi) + b3, 0.0)
    rows = jnp.tanh(jnp.dot(h, w4, precision=hi) + b4)
    return rows, jnp.prod(rows, axis=-1)


def eventfn_reference_packed(pos_b, dia_b, packed, n_event_latent):
    """Reference matching the kernel's own numerics (bf16 weights/activations,
    f32 accumulate, bf16 output cast)."""
    B = pos_b.shape[0]
    z = jnp.concatenate([pos_b.reshape(B, -1), dia_b.reshape(B, -1)],
                        axis=-1).astype(jnp.float32)
    w1, w2, w3, w4, bslab = packed
    b1, b2, b3 = bslab[0], bslab[1], bslab[2]
    b4 = bslab[3, :OUT_PAD]
    h = jnp.maximum(jnp.dot(z.astype(jnp.bfloat16), w1,
                            preferred_element_type=jnp.float32) + b1, 0.0)
    h = jnp.maximum(jnp.dot(h.astype(jnp.bfloat16), w2,
                            preferred_element_type=jnp.float32) + b2, 0.0)
    h = jnp.maximum(jnp.dot(h.astype(jnp.bfloat16), w3,
                            preferred_element_type=jnp.float32) + b3, 0.0)
    o = jnp.tanh(jnp.dot(h.astype(jnp.bfloat16), w4,
                         preferred_element_type=jnp.float32) + b4)
    rows = o.astype(jnp.bfloat16).astype(jnp.float32)[:, :n_event_latent]
    return rows, jnp.prod(rows, axis=-1)


def eventfn_forward(t, state, params, n_event_latent):
    """Mirrors EventFn.forward(t, state); t is unused, state = (pos, vel, _, diameters).

    Per the perf review, the B=1 ODE-solver path is launch/weight-DMA bound,
    so it does NOT route through the 128-row-padded Pallas call; it uses the
    pure f32 JAX path directly.  For throughput, batch event evaluations
    across solver steps and call eventfn_forward_batch instead."""
    pos, _vel, _unused, diameters = state
    _, prods = eventfn_reference_f32(pos.reshape(1, -1), diameters.reshape(1, -1),
                                     params, n_event_latent)
    return prods[0]


# ----------------------------- main -------------------------------------------
if __name__ == "__main__":
    n_objects = 4
    n_event_latent = 8
    init_factor = 1.0
    B = 256                                   # batch of event evaluations

    key = jax.random.PRNGKey(0)
    k_pos, k_dia, k_par = jax.random.split(key, 3)

    # pos (B, n_objects, 2) flattened -> 2*n_objects; diameters (B, 2); d_in = 10
    pos_b = jax.random.normal(k_pos, (B, n_objects, 2), jnp.float32)
    dia_b = jax.random.uniform(k_dia, (B, 2), jnp.float32, minval=0.5, maxval=1.5)

    params = make_eventfn_params(k_par, n_objects, n_event_latent, init_factor)
    packed = pack_params(params, n_event_latent)

    # Batched evaluation (amortizes weight DMA across all B states).
    rows = eventfn_rows_batch(pos_b, dia_b, packed, n_event_latent)
    vals = jnp.prod(rows, axis=-1)
    jax.block_until_ready(vals)

    # 1) Kernel vs. a reference that models its own numerics -> tight check.
    ref_rows_pk, ref_vals_pk = eventfn_reference_packed(pos_b, dia_b, packed,
                                                        n_event_latent)
    assert jnp.allclose(rows, ref_rows_pk, atol=5e-3, rtol=1e-2), (
        rows[:2], ref_rows_pk[:2])
    assert jnp.allclose(vals, ref_vals_pk, atol=1e-6, rtol=5e-2), (
        vals[:4], ref_vals_pk[:4])

    # 2) Kernel vs. the true f32 PyTorch-parity reference -> looser tolerance,
    #    accounting for bf16 weight quantization through three layers.
    ref_rows_f32, ref_vals_f32 = eventfn_reference_f32(pos_b, dia_b, params,
                                                       n_event_latent)
    assert jnp.allclose(rows, ref_rows_f32, atol=3e-2), (
        rows[:2], ref_rows_f32[:2])
    assert jnp.allclose(vals, ref_vals_f32, atol=1e-5, rtol=0.5), (
        vals[:4], ref_vals_f32[:4])

    # Single-state call mirroring EventFn.forward(t, state) (bypasses Pallas).
    t = jnp.float32(0.0)
    vel = jnp.zeros((n_objects, 2), jnp.float32)      # unused by forward
    state = (pos_b[0], vel, jnp.zeros((1,), jnp.float32), dia_b[0])
    v0 = eventfn_forward(t, state, params, n_event_latent)
    jax.block_until_ready(v0)
    assert jnp.allclose(v0, ref_vals_f32[0], atol=1e-6, rtol=1e-5), (
        v0, ref_vals_f32[0])

    print("KERNEL_OK")
</pallas_src>

<mosaic_0001>
module attributes {stable_mosaic.version = 11 : i64} {
  func.func @eventfn_kernel(%arg0: i32, %arg1: memref<128x10xf32, #tpu.memory_space<vmem>>, %arg2: memref<10x512xbf16, #tpu.memory_space<vmem>>, %arg3: memref<512x512xbf16, #tpu.memory_space<vmem>>, %arg4: memref<512x512xbf16, #tpu.memory_space<vmem>>, %arg5: memref<512x128xbf16, #tpu.memory_space<vmem>>, %arg6: memref<8x512xf32, #tpu.memory_space<vmem>>, %arg7: memref<128x128xbf16, #tpu.memory_space<vmem>>) attributes {dimension_semantics = [#tpu.dimension_semantics<parallel>], iteration_bounds = array<i64: 2>, scalar_prefetch = 0 : i64, scratch_operands = 0 : i64, tpu.core_type = #tpu.core_type<tc>, window_params = [{transform_indices = @transform_0, window_bounds = array<i64: 128, 10>}, {pipeline_mode = #tpu.pipeline_mode<synchronous>, transform_indices = @transform_1, window_bounds = array<i64: 10, 512>}, {pipeline_mode = #tpu.pipeline_mode<synchronous>, transform_indices = @transform_2, window_bounds = array<i64: 512, 512>}, {pipeline_mode = #tpu.pipeline_mode<synchronous>, transform_indices = @transform_3, window_bounds = array<i64: 512, 512>}, {pipeline_mode = #tpu.pipeline_mode<synchronous>, transform_indices = @transform_4, window_bounds = array<i64: 512, 128>}, {pipeline_mode = #tpu.pipeline_mode<synchronous>, transform_indices = @transform_5, window_bounds = array<i64: 8, 512>}, {transform_indices = @transform_6, window_bounds = array<i64: 128, 128>}]} {
    %c0 = arith.constant 0 : index
    %c0_0 = arith.constant 0 : index
    %0 = vector.load %arg1[%c0, %c0_0] : memref<128x10xf32, #tpu.memory_space<vmem>>, vector<128x10xf32>
    %1 = arith.truncf %0 : vector<128x10xf32> to vector<128x10xbf16>
    %c0_1 = arith.constant 0 : index
    %c0_2 = arith.constant 0 : index
    %2 = vector.load %arg2[%c0_1, %c0_2] : memref<10x512xbf16, #tpu.memory_space<vmem>>, vector<10x512xbf16>
    %cst = arith.constant dense<0.000000e+00> : vector<128x512xf32>
    %3 = tpu.matmul %1, %2, %cst {dimension_numbers = #tpu.dot_dimension_numbers<[1], [0], [0], [1], [0, 0, 1, 1], [], []>} : vector<128x10xbf16>, vector<10x512xbf16>, vector<128x512xf32> -> vector<128x512xf32>
    %c0_3 = arith.constant 0 : index
    %c0_4 = arith.constant 0 : index
    %4 = vector.load %arg6[%c0_3, %c0_4] : memref<8x512xf32, #tpu.memory_space<vmem>>, vector<1x512xf32>
    %5 = vector.broadcast %4 : vector<1x512xf32> to vector<128x512xf32>
    %6 = arith.addf %3, %5 : vector<128x512xf32>
    %cst_5 = arith.constant 0.000000e+00 : f32
    %7 = vector.broadcast %cst_5 : f32 to vector<128x512xf32>
    %8 = arith.maximumf %6, %7 : vector<128x512xf32>
    %9 = arith.truncf %8 : vector<128x512xf32> to vector<128x512xbf16>
    %c0_6 = arith.constant 0 : index
    %c0_7 = arith.constant 0 : index
    %10 = vector.load %arg3[%c0_6, %c0_7] : memref<512x512xbf16, #tpu.memory_space<vmem>>, vector<512x512xbf16>
    %cst_8 = arith.constant dense<0.000000e+00> : vector<128x512xf32>
    %11 = tpu.matmul %9, %10, %cst_8 {dimension_numbers = #tpu.dot_dimension_numbers<[1], [0], [0], [1], [0, 0, 1, 1], [], []>} : vector<128x512xbf16>, vector<512x512xbf16>, vector<128x512xf32> -> vector<128x512xf32>
    %c1 = arith.constant 1 : index
    %c0_9 = arith.constant 0 : index
    %12 = vector.load %arg6[%c1, %c0_9] : memref<8x512xf32, #tpu.memory_space<vmem>>, vector<1x512xf32>
    %13 = vector.broadcast %12 : vector<1x512xf32> to vector<128x512xf32>
    %14 = arith.addf %11, %13 : vector<128x512xf32>
    %cst_10 = arith.constant 0.000000e+00 : f32
    %15 = vector.broadcast %cst_10 : f32 to vector<128x512xf32>
    %16 = arith.maximumf %14, %15 : vector<128x512xf32>
    %17 = arith.truncf %16 : vector<128x512xf32> to vector<128x512xbf16>
    %c0_11 = arith.constant 0 : index
    %c0_12 = arith.constant 0 : index
    %18 = vector.load %arg4[%c0_11, %c0_12] : memref<512x512xbf16, #tpu.memory_space<vmem>>, vector<512x512xbf16>
    %cst_13 = arith.constant dense<0.000000e+00> : vector<128x512xf32>
    %19 = tpu.matmul %17, %18, %cst_13 {dimension_numbers = #tpu.dot_dimension_numbers<[1], [0], [0], [1], [0, 0, 1, 1], [], []>} : vector<128x512xbf16>, vector<512x512xbf16>, vector<128x512xf32> -> vector<128x512xf32>
    %c2 = arith.constant 2 : index
    %c0_14 = arith.constant 0 : index
    %20 = vector.load %arg6[%c2, %c0_14] : memref<8x512xf32, #tpu.memory_space<vmem>>, vector<1x512xf32>
    %21 = vector.broadcast %20 : vector<1x512xf32> to vector<128x512xf32>
    %22 = arith.addf %19, %21 : vector<128x512xf32>
    %cst_15 = arith.constant 0.000000e+00 : f32
    %23 = vector.broadcast %cst_15 : f32 to vector<128x512xf32>
    %24 = arith.maximumf %22, %23 : vector<128x512xf32>
    %25 = arith.truncf %24 : vector<128x512xf32> to vector<128x512xbf16>
    %c0_16 = arith.constant 0 : index
    %c0_17 = arith.constant 0 : index
    %26 = vector.load %arg5[%c0_16, %c0_17] : memref<512x128xbf16, #tpu.memory_space<vmem>>, vector<512x128xbf16>
    %cst_18 = arith.constant dense<0.000000e+00> : vector<128x128xf32>
    %27 = tpu.matmul %25, %26, %cst_18 {dimension_numbers = #tpu.dot_dimension_numbers<[1], [0], [0], [1], [0, 0, 1, 1], [], []>} : vector<128x512xbf16>, vector<512x128xbf16>, vector<128x128xf32> -> vector<128x128xf32>
    %c3 = arith.constant 3 : index
    %c0_19 = arith.constant 0 : index
    %28 = vector.load %arg6[%c3, %c0_19] : memref<8x512xf32, #tpu.memory_space<vmem>>, vector<1x128xf32>
    %29 = vector.broadcast %28 : vector<1x128xf32> to vector<128x128xf32>
    %30 = arith.addf %27, %29 : vector<128x128xf32>
    %31 = math.tanh %30 : vector<128x128xf32>
    %32 = arith.truncf %31 : vector<128x128xf32> to vector<128x128xbf16>
    %c0_20 = arith.constant 0 : index
    %c0_21 = arith.constant 0 : index
    %33 = vector.load %arg7[%c0_20, %c0_21] : memref<128x128xbf16, #tpu.memory_space<vmem>>, vector<128x128xbf16>
    tpu.vector_store %arg7[%c0_20, %c0_21], %32 {strides = array<i32>} : memref<128x128xbf16, #tpu.memory_space<vmem>>, vector<128x128xbf16>,
    return
  }
  func.func @transform_0(%arg0: i32) -> (i32, i32) {
    %c0_i32 = arith.constant 0 : i32
    %c0_i32_0 = arith.constant 0 : i32
    return %arg0, %c0_i32 : i32, i32
  }
  func.func @transform_1(%arg0: i32) -> (i32, i32) {
    %c0_i32 = arith.constant 0 : i32
    %c0_i32_0 = arith.constant 0 : i32
    %c0_i32_1 = arith.constant 0 : i32
    return %c0_i32, %c0_i32_0 : i32, i32
  }
  func.func @transform_2(%arg0: i32) -> (i32, i32) {
    %c0_i32 = arith.constant 0 : i32
    %c0_i32_0 = arith.constant 0 : i32
    %c0_i32_1 = arith.constant 0 : i32
    return %c0_i32, %c0_i32_0 : i32, i32
  }
  func.func @transform_3(%arg0: i32) -> (i32, i32) {
    %c0_i32 = arith.constant 0 : i32
    %c0_i32_0 = arith.constant 0 : i32
    %c0_i32_1 = arith.constant 0 : i32
    return %c0_i32, %c0_i32_0 : i32, i32
  }
  func.func @transform_4(%arg0: i32) -> (i32, i32) {
    %c0_i32 = arith.constant 0 : i32
    %c0_i32_0 = arith.constant 0 : i32
    %c0_i32_1 = arith.constant 0 : i32
    return %c0_i32, %c0_i32_0 : i32, i32
  }
  func.func @transform_5(%arg0: i32) -> (i32, i32) {
    %c0_i32 = arith.constant 0 : i32
    %c0_i32_0 = arith.constant 0 : i32
    %c0_i32_1 = arith.constant 0 : i32
    return %c0_i32, %c0_i32_0 : i32, i32
  }
  func.func @transform_6(%arg0: i32) -> (i32, i32) {
    %c0_i32 = arith.constant 0 : i32
    %c0_i32_0 = arith.constant 0 : i32
    return %arg0, %c0_i32 : i32, i32
  }
}

module attributes {stable_mosaic.version = 11 : i64} {
  func.func @eventfn_kernel(%arg0: i32, %arg1: memref<128x10xf32, #tpu.memory_space<vmem>>, %arg2: memref<10x512xbf16, #tpu.memory_space<vmem>>, %arg3: memref<512x512xbf16, #tpu.memory_space<vmem>>, %arg4: memref<512x512xbf16, #tpu.memory_space<vmem>>, %arg5: memref<512x128xbf16, #tpu.memory_space<vmem>>, %arg6: memref<8x512xf32, #tpu.memory_space<vmem>>, %arg7: memref<128x128xbf16, #tpu.memory_space<vmem>>) attributes {dimension_semantics = [#tpu.dimension_semantics<parallel>], iteration_bounds = array<i64: 2>, scalar_prefetch = 0 : i64, scratch_operands = 0 : i64, tpu.core_type = #tpu.core_type<tc>, window_params = [{transform_indices = @transform_0, window_bounds = array<i64: 128, 10>}, {pipeline_mode = #tpu.pipeline_mode<synchronous>, transform_indices = @transform_1, window_bounds = array<i64: 10, 512>}, {pipeline_mode = #tpu.pipeline_mode<synchronous>, transform_indices = @transform_2, window_bounds = array<i64: 512, 512>}, {pipeline_mode = #tpu.pipeline_mode<synchronous>, transform_indices = @transform_3, window_bounds = array<i64: 512, 512>}, {pipeline_mode = #tpu.pipeline_mode<synchronous>, transform_indices = @transform_4, window_bounds = array<i64: 512, 128>}, {pipeline_mode = #tpu.pipeline_mode<synchronous>, transform_indices = @transform_5, window_bounds = array<i64: 8, 512>}, {transform_indices = @transform_6, window_bounds = array<i64: 128, 128>}]} {
    %c0 = arith.constant 0 : index
    %c0_0 = arith.constant 0 : index
    %0 = vector.load %arg1[%c0, %c0_0] : memref<128x10xf32, #tpu.memory_space<vmem>>, vector<128x10xf32>
    %1 = arith.truncf %0 : vector<128x10xf32> to vector<128x10xbf16>
    %c0_1 = arith.constant 0 : index
    %c0_2 = arith.constant 0 : index
    %2 = vector.load %arg2[%c0_1, %c0_2] : memref<10x512xbf16, #tpu.memory_space<vmem>>, vector<10x512xbf16>
    %cst = arith.constant dense<0.000000e+00> : vector<128x512xf32>
    %3 = tpu.matmul %1, %2, %cst {dimension_numbers = #tpu.dot_dimension_numbers<[1], [0], [0], [1], [0, 0, 1, 1], [], []>} : vector<128x10xbf16>, vector<10x512xbf16>, vector<128x512xf32> -> vector<128x512xf32>
    %c0_3 = arith.constant 0 : index
    %c0_4 = arith.constant 0 : index
    %4 = vector.load %arg6[%c0_3, %c0_4] : memref<8x512xf32, #tpu.memory_space<vmem>>, vector<1x512xf32>
    %5 = vector.broadcast %4 : vector<1x512xf32> to vector<128x512xf32>
    %6 = arith.addf %3, %5 : vector<128x512xf32>
    %cst_5 = arith.constant 0.000000e+00 : f32
    %7 = vector.broadcast %cst_5 : f32 to vector<128x512xf32>
    %8 = arith.maximumf %6, %7 : vector<128x512xf32>
    %9 = arith.truncf %8 : vector<128x512xf32> to vector<128x512xbf16>
    %c0_6 = arith.constant 0 : index
    %c0_7 = arith.constant 0 : index
    %10 = vector.load %arg3[%c0_6, %c0_7] : memref<512x512xbf16, #tpu.memory_space<vmem>>, vector<512x512xbf16>
    %cst_8 = arith.constant dense<0.000000e+00> : vector<128x512xf32>
    %11 = tpu.matmul %9, %10, %cst_8 {dimension_numbers = #tpu.dot_dimension_numbers<[1], [0], [0], [1], [0, 0, 1, 1], [], []>} : vector<128x512xbf16>, vector<512x512xbf16>, vector<128x512xf32> -> vector<128x512xf32>
    %c1 = arith.constant 1 : index
    %c0_9 = arith.constant 0 : index
    %12 = vector.load %arg6[%c1, %c0_9] : memref<8x512xf32, #tpu.memory_space<vmem>>, vector<1x512xf32>
    %13 = vector.broadcast %12 : vector<1x512xf32> to vector<128x512xf32>
    %14 = arith.addf %11, %13 : vector<128x512xf32>
    %cst_10 = arith.constant 0.000000e+00 : f32
    %15 = vector.broadcast %cst_10 : f32 to vector<128x512xf32>
    %16 = arith.maximumf %14, %15 : vector<128x512xf32>
    %17 = arith.truncf %16 : vector<128x512xf32> to vector<128x512xbf16>
    %c0_11 = arith.constant 0 : index
    %c0_12 = arith.constant 0 : index
    %18 = vector.load %arg4[%c0_11, %c0_12] : memref<512x512xbf16, #tpu.memory_space<vmem>>, vector<512x512xbf16>
    %cst_13 = arith.constant dense<0.000000e+00> : vector<128x512xf32>
    %19 = tpu.matmul %17, %18, %cst_13 {dimension_numbers = #tpu.dot_dimension_numbers<[1], [0], [0], [1], [0, 0, 1, 1], [], []>} : vector<128x512xbf16>, vector<512x512xbf16>, vector<128x512xf32> -> vector<128x512xf32>
    %c2 = arith.constant 2 : index
    %c0_14 = arith.constant 0 : index
    %20 = vector.load %arg6[%c2, %c0_14] : memref<8x512xf32, #tpu.memory_space<vmem>>, vector<1x512xf32>
    %21 = vector.broadcast %20 : vector<1x512xf32> to vector<128x512xf32>
    %22 = arith.addf %19, %21 : vector<128x512xf32>
    %cst_15 = arith.constant 0.000000e+00 : f32
    %23 = vector.broadcast %cst_15 : f32 to vector<128x512xf32>
    %24 = arith.maximumf %22, %23 : vector<128x512xf32>
    %25 = arith.truncf %24 : vector<128x512xf32> to vector<128x512xbf16>
    %c0_16 = arith.constant 0 : index
    %c0_17 = arith.constant 0 : index
    %26 = vector.load %arg5[%c0_16, %c0_17] : memref<512x128xbf16, #tpu.memory_space<vmem>>, vector<512x128xbf16>
    %cst_18 = arith.constant dense<0.000000e+00> : vector<128x128xf32>
    %27 = tpu.matmul %25, %26, %cst_18 {dimension_numbers = #tpu.dot_dimension_numbers<[1], [0], [0], [1], [0, 0, 1, 1], [], []>} : vector<128x512xbf16>, vector<512x128xbf16>, vector<128x128xf32> -> vector<128x128xf32>
    %c3 = arith.constant 3 : index
    %c0_19 = arith.constant 0 : index
    %28 = vector.load %arg6[%c3, %c0_19] : memref<8x512xf32, #tpu.memory_space<vmem>>, vector<1x128xf32>
    %29 = vector.broadcast %28 : vector<1x128xf32> to vector<128x128xf32>
    %30 = arith.addf %27, %29 : vector<128x128xf32>
    %31 = math.tanh %30 : vector<128x128xf32>
    %32 = arith.truncf %31 : vector<128x128xf32> to vector<128x128xbf16>
    %c0_20 = arith.constant 0 : index
    %c0_21 = arith.constant 0 : index
    %33 = vector.load %arg7[%c0_20, %c0_21] : memref<128x128xbf16, #tpu.memory_space<vmem>>, vector<128x128xbf16>
    tpu.vector_store %arg7[%c0_20, %c0_21], %32 {strides = array<i32>} : memref<128x128xbf16, #tpu.memory_space<vmem>>, vector<128x128xbf16>,
    return
  }
  func.func @transform_0(%arg0: i32) -> (i32, i32) {
    %c0_i32 = arith.constant 0 : i32
    %c0_i32_0 = arith.constant 0 : i32
    return %arg0, %c0_i32 : i32, i32
  }
  func.func @transform_1(%arg0: i32) -> (i32, i32) {
    %c0_i32 = arith.constant 0 : i32
    %c0_i32_0 = arith.constant 0 : i32
    %c0_i32_1 = arith.constant 0 : i32
    return %c0_i32, %c0_i32_0 : i32, i32
  }
  func.func @transform_2(%arg0: i32) -> (i32, i32) {
    %c0_i32 = arith.constant 0 : i32
    %c0_i32_0 = arith.constant 0 : i32
    %c0_i32_1 = arith.constant 0 : i32
    return %c0_i32, %c0_i32_0 : i32, i32
  }
  func.func @transform_3(%arg0: i32) -> (i32, i32) {
    %c0_i32 = arith.constant 0 : i32
    %c0_i32_0 = arith.constant 0 : i32
    %c0_i32_1 = arith.constant 0 : i32
    return %c0_i32, %c0_i32_0 : i32, i32
  }
  func.func @transform_4(%arg0: i32) -> (i32, i32) {
    %c0_i32 = arith.constant 0 : i32
    %c0_i32_0 = arith.constant 0 : i32
    %c0_i32_1 = arith.constant 0 : i32
    return %c0_i32, %c0_i32_0 : i32, i32
  }
  func.func @transform_5(%arg0: i32) -> (i32, i32) {
    %c0_i32 = arith.constant 0 : i32
    %c0_i32_0 = arith.constant 0 : i32
    %c0_i32_1 = arith.constant 0 : i32
    return %c0_i32, %c0_i32_0 : i32, i32
  }
  func.func @transform_6(%arg0: i32) -> (i32, i32) {
    %c0_i32 = arith.constant 0 : i32
    %c0_i32_0 = arith.constant 0 : i32
    return %arg0, %c0_i32 : i32, i32
  }
}

</mosaic_0001>

<bundles_post_ra>
// kernel: tpu_custom_call.1
= control target key start
LH: loop header
LB: loop body
LE: loop exit
PB: predicated region body
PF: predicated region fallthrough
CT: control target
= control target key end

     0   :  { %11 = vsyncpa [#allocation3], 0  ;;  %s6336_s0 = inlined_call_operand.vmem [shape: f32[256,10], index: 0, kind: input, shape index: {}]   ;;  %s6337_s1 = inlined_call_operand.vmem [shape: bf16[10,512], index: 1, kind: input, shape index: {}]   ;;  %s6338_s2 = inlined_call_operand.hbm [shape: bf16[512,512], index: 2, kind: input, shape index: {}]   ;;  %s6339_s3 = inlined_call_operand.hbm [shape: bf16[512,512], index: 3, kind: input, shape index: {}]   ;;  %s6340_s4 = inlined_call_operand.vmem [shape: bf16[512,128], index: 4, kind: input, shape index: {}]   ;;  %s6341_s5 = inlined_call_operand.hbm [shape: f32[8,512], index: 5, kind: input, shape index: {}]   ;;  %s6342_s6 = inlined_call_operand.hbm [shape: bf16[256,128], index: 6, kind: output, shape index: {}]  }
   0x1   :  { %12 = vsyncpa [#allocation6], 0 }
   0x2   :  { %13 = vsyncpa [#allocation4], 0 }
   0x3   :  { %15 = vsyncpa [#allocation4 + $0x1], 0  ;;  %s5575_s21 = smov 0   ;;  %s5577_s22 = smov 0  }
   0x4   :  { %s5579_s23 = smov 0   ;;  %s5581_s24 = smov 0  }
   0x5 LB: > { %6347 = sst [smem:[#allocation12_spill]] %s5525_s23  ;;  %s5596_s25 = sadd.s32 4294967295, %s5529_s24   ;;  %s5529_s24 = sphi %s5581_s24, %s6365_s24   ;;  %s5525_s23 = sphi %s5579_s23, %s6362_s23   ;;  %s5521_s22 = sphi %s5577_s22, %s6364_s22   ;;  %s5517_s21 = sphi %s5575_s21, %s6363_s21  }
   0x6   : > { %s4054_s26 = sadd.s32 4294967294, %s5529_s24   ;;  %s5600_s27 = sadd.s32 1, %s5529_s24  }
   0x7   : > { %s159_s28 = sadd.s32 1, %s5525_s23  ;;  %s156_s29 = ssub.s32 %s5529_s24, %s5600_s27 }
   0x8   : > { %p169_p0 = scmp.ne.s32.totalorder %s5525_s23, %s5521_s22  ;;  %p157_p1 = scmp.eq.s32.totalorder %s156_s29, 0 }
   0x9   : > { %p170_p2 = scmp.eq.s32.totalorder %s5596_s25, 1  ;;  %p175_p3 = scmp.ne.s32.totalorder %s5521_s22, %s5517_s21 }
   0xa   : > { %p176_p4 = scmp.eq.s32.totalorder %s4054_s26, 1  ;;  %p4055_p7 = scmp.ge.s32.totalorder %s5529_s24, 1 }
   0xb   : > { %s5611_s30 = scalar_select %p157_p1, %s5525_s23, %s159_s28  }
   0xc   : > { %p5613_p5 = por %p170_p2, %p169_p0  ;;  %p5617_p6 = por %p176_p4, %p175_p3 }
   0xd   : > { %6348 = sst [smem:[#allocation13_spill]] %s5611_s30  ;;  %p183_p8 = scmp.lt.s32.totalorder %s5529_s24, 3 }
   0xe   : > { %s6349_s7 = scalar_select %p5613_p5, 1, 0 }
   0xf   : > { %s6350_s8 = scalar_select %p5617_p6, 1, 0 }
  0x10   : > { %p6343_p9 = scmp.eq.s32.totalorder %s5596_s25, 0  ;;  %p5624_p10 = pnand %p4055_p7, %p183_p8 }
  0x11   : > { %s5531_s10 = smov [#allocation5]   ;;  %s5532_s13 = smov [#allocation2]  }
  0x12   : > { %s6351_s9 = scalar_select %p5624_p10, 1, 0 }
  0x13   : > { %p4860_p11 = pneg %p5624_p10  ;;  %s211_s11 = sshll.u32 %s5531_s10, 4  ;;  %s5630_s11 = int_to_ptr.vmem [resolvable:$true] %s211_s11 }
  0x14   : > { %s198_s14 = sshll.u32 %s5532_s13, 4  ;;  %s5533_s15 = smov [#allocation7]   ;;  %s5638_s14 = int_to_ptr.vmem [resolvable:$true] %s198_s14 }
  0x15   : > { %p5634_p12 = pnand %p6343_p9, %p4860_p11  ;;  %s5640_s16 = sshll.u32 %s5533_s15, 4  ;;  %s229_s16 = int_to_ptr.vmem [resolvable:$true] %s5640_s16 }
  0x16   : > { %s5375_s19 = scalar_lea.hbm %s6339_s3, 16384 }
  0x17   : > { %p5376_p13 = scmp.ne.s32.totalorder %s6339_s3, %s5375_s19  ;;  %p5650_p0 = pneg %p5634_p12 }
  0x18   : > { %p5382_p3 = scmp.lt.u32.totalorder %s5375_s19, %s6339_s3 }
  0x19   : > { %p5378_p1 = pnand %p5650_p0, %p5376_p13 }
  0x1b   : > { %p5379_p2 = pneg %p5378_p1 }
  0x1d   : > { %p5384_p4 = pnand %p5382_p3, %p5379_p2 }
  0x1f   : > { %5387 = shalt.err (!%p5384_p4)
}
  0x20   : > { %s5388_s13 = scalar_lea.vmem %s5630_s11, 16384  ;;  %p5396_p9 = scmp.lt.s32.totalorder %s5630_s11, %s5630_s11 }
  0x21   : > { %p5389_p7 = scmp.ne.s32.totalorder %s5630_s11, %s5388_s13  ;;  %p5397_p6 = scmp.lt.s32.totalorder %s5388_s13, %s5388_s13 }
  0x23   : > { %p5391_p8 = pnand %p5389_p7, %p5650_p0  ;;  %p5398_p13 = por %p5397_p6, %p5396_p9 }
  0x25   : > { %p5392_p11 = pneg %p5391_p8 }
  0x27   : > { %p5399_p1 = pnand %p5398_p13, %p5392_p11 }
  0x29   : > { %5402 = shalt.err (!%p5399_p1)
}
  0x2a   : > { %s5534_s15 = smov 256   ;;  %s5535_s17 = smov 16  }
  0x2b   : > { %4866 = dma.hbm_to_vmem [thread:$0]  (!%p5634_p12), %s6339_s3, 16384, %s5630_s11, [#allocation6], %s5534_s15, %s5534_s15, %s5535_s17  }
  0x2c   : > { %s5403_s29 = scalar_lea.hbm %s6338_s2, 16384 }
  0x2d   : > { %p5404_p6 = scmp.ne.s32.totalorder %s6338_s2, %s5403_s29  ;;  %p5410_p3 = scmp.lt.u32.totalorder %s5403_s29, %s6338_s2 }
  0x2f   : > { %p5406_p9 = pnand %p5404_p6, %p5650_p0 }
  0x31   : > { %p5407_p2 = pneg %p5406_p9 }
  0x33   : > { %p5412_p4 = pnand %p5410_p3, %p5407_p2 }
  0x35   : > { %5415 = shalt.err (!%p5412_p4)
}
  0x36   : > { %s5416_s11 = scalar_lea.vmem %s5638_s14, 16384  ;;  %p5424_p13 = scmp.lt.s32.totalorder %s5638_s14, %s5638_s14 }
  0x37   : > { %p5417_p7 = scmp.ne.s32.totalorder %s5638_s14, %s5416_s11  ;;  %p5425_p1 = scmp.lt.s32.totalorder %s5416_s11, %s5416_s11 }
  0x39   : > { %p5419_p8 = pnand %p5417_p7, %p5650_p0  ;;  %p5426_p6 = por %p5425_p1, %p5424_p13 }
  0x3b   : > { %p5420_p11 = pneg %p5419_p8 }
  0x3d   : > { %p5427_p9 = pnand %p5426_p6, %p5420_p11 }
  0x3f   : > { %5430 = shalt.err (!%p5427_p9)
}
  0x40   : > { %4863 = dma.hbm_to_vmem [thread:$0]  (!%p5634_p12), %s6338_s2, 16384, %s5638_s14, [#allocation3], %s5534_s15, %s5534_s15, %s5535_s17  }
  0x41   : > { %s5431_s20 = scalar_lea.hbm %s6341_s5, 512 }
  0x42   : > { %p5432_p2 = scmp.ne.s32.totalorder %s6341_s5, %s5431_s20  ;;  %p5438_p7 = scmp.lt.u32.totalorder %s5431_s20, %s6341_s5 }
  0x44   : > { %p5434_p3 = pnand %p5432_p2, %p5650_p0 }
  0x46   : > { %p5435_p4 = pneg %p5434_p3 }
  0x48   : > { %p5440_p8 = pnand %p5438_p7, %p5435_p4 }
  0x4a   : > { %5443 = shalt.err (!%p5440_p8)
}
  0x4b   : > { %s5444_s11 = scalar_lea.vmem %s229_s16, 512  ;;  %p5452_p6 = scmp.lt.s32.totalorder %s229_s16, %s229_s16 }
  0x4c   : > { %p5445_p11 = scmp.ne.s32.totalorder %s229_s16, %s5444_s11  ;;  %p5453_p9 = scmp.lt.s32.totalorder %s5444_s11, %s5444_s11 }
  0x4e   : > { %p5447_p13 = pnand %p5445_p11, %p5650_p0  ;;  %p5454_p5 = por %p5453_p9, %p5452_p6 }
  0x50   : > { %p5448_p1 = pneg %p5447_p13 }
  0x52   : > { %p5455_p10 = pnand %p5454_p5, %p5448_p1 }
  0x54   : > { %5458 = shalt.err (!%p5455_p10)
}
  0x55   : > { %4869 = dma.hbm_to_vmem [thread:$0]  (!%p5634_p12), %s6341_s5, 512, %s229_s16, [#allocation6]  }
  0x56   : > { %p6354_p2 = scmp.ne.s32.totalorder %s6351_s9, 0 }
  0x57   : > { %p6355_p3 = scmp.eq.s32.totalorder (!%p6354_p2), %s5596_s25, 0 }
  0x58   : > { %250 = sbr.rel (%p6354_p2) target bundleno = 1209 (0x4b9), region = 44 }
  0x5f   : > { %5504 = dma.done.wait (%p6355_p3), [#allocation3], 16384   ;;  %p6356_p0 = pmov %p6355_p3 }
  0x61   : > { %5506 = vsyncadd (%p6356_p0), [#allocation3], 4294950912  ;;  %p6357_p4 = pmov %p6356_p0 }
  0x62   : > { %p6358_p5 = pmov %p6356_p0 }
  0x63   : > { %5508 = dma.done.wait (%p6357_p4), [#allocation6], 16896  }
  0x64   : > { %5510 = vsyncadd (%p6358_p5), [#allocation6], 4294950400  ;;  %s4065_s12 = sshll.u32 %s5596_s25, 4  ;;  %v5536_v0 = vmov 0   ;;  %vm387_vm0 = vcmask 1044480   ;;  %vm362_vm1 = vcmask 80896  }
  0x65   : > { %432 = vmatprep.mubr.bf16.mxu0 %v5536_v0  ;;  %p289_p10 = scmp.lt.s32.totalorder %s4065_s12, 31  ;;  %545 = vmatprep.mubr.bf16.mxu1 %v5536_v0  ;;  %v4921_v1 = vld [vmem:[%s6337_s1 + $0x4] ss:$16 sps:$4 sm:$0x1f]   ;;  %v4927_v11 = vld [vmem:[#allocation2] ss:$16 sps:$4 sm:$0xff]  }
  0x66   : > { %v4923_v2 = vld [vmem:[%s6337_s1] ss:$16 sps:$4 sm:$0x1f]   ;;  %4071 = vmatprep.subr.msk.bf16.mxu0 %vm387_vm0, %v4921_v1  ;;  %v4924_v9 = vld [vmem:[%s6337_s1 + $0xc] ss:$16 sps:$4 sm:$0x1f]  }
  0x67   : > { %s6367_s12 = smov (!%p289_p10, %s4065_s12), 31  ;;  %v389_v5 = vsel %vm387_vm0, %v4923_v2, 0  ;;  %v4926_v10 = vld [vmem:[%s6337_s1 + $0x8] ss:$16 sps:$4 sm:$0x1f]   ;;  %4080 = vmatprep.subr.msk.bf16.mxu1 %vm387_vm0, %v4924_v9  ;;  %s285_s20 = sand.u32 1, %s5521_s22  }
  0x68   : > { %s4066_s9 = sshll.u32 %s6367_s12, 3  ;;  %401 = vmatpush1.bf16.msra.mxu0 %v389_v5  ;;  %v4929_v12 = vld [vmem:[#allocation2 + $0x4] ss:$16 sps:$4 sm:$0xff]   ;;  %v395_v13 = vsel %vm387_vm0, %v4926_v10, 0  ;;  %v4932_v14 = vld [vmem:[#allocation2 + $0xc] ss:$16 sps:$4 sm:$0xff]  }
  0x69   : > { %s5729_s17 = scalar_lea.vmem %s6336_s0, %s4066_s9  ;;  %514 = vmatpush1.bf16.msra.mxu1 %v395_v13  ;;  %1513 = vmatprep.subr.bf16.mxu0 %v4929_v12  ;;  %v4930_v16 = vld [vmem:[#allocation2 + $0x8] ss:$16 sps:$4 sm:$0xff]   ;;  %v4935_v17 = vld [vmem:[#allocation2 + $0x24] ss:$16 sps:$4 sm:$0xff]   ;;  %v4933_v18 = vld [vmem:[#allocation2 + $0x20] ss:$16 sps:$4 sm:$0xff]  }
  0x6a   : > { %v296_v3 = vld [vmem:[%s5729_s17] sm:$0xff]  ;;  %v297_v4 = vld [vmem:[%s5729_s17 + $0x8] sm:$0xff]  ;;  %v298_v7 = vld [vmem:[%s5729_s17 + $0x10] sm:$0xff]  ;;  %1739 = vmatprep.subr.bf16.mxu1 %v4932_v14  ;;  %s4064_s26 = sshll.u32 %s285_s20, 6  ;;  %s4414_s10 = sshll.u32 %s5596_s25, 10 }
  0x6b   : > { %v312_v6 = vpack.c.bf16 %v297_v4, %v296_v3  ;;  %v299_v8 = vld [vmem:[%s5729_s17 + $0x18] sm:$0xff]  ;;  %v300_v20 = vld [vmem:[%s5729_s17 + $0x20] sm:$0xff]  ;;  %v301_v22 = vld [vmem:[%s5729_s17 + $0x28] sm:$0xff]  ;;  %s6264_s29 = scalar_lea.vmem [#allocation8], %s4064_s26  ;;  %s6288_s15 = scalar_lea.hbm %s6342_s6, %s4414_s10 }
  0x6c   : > { %v313_v15 = vpack.c.bf16 %v299_v8, %v298_v7  ;;  %v4938_v19 = vld [vmem:[#allocation2 + $0x2c] ss:$16 sps:$4 sm:$0xff]   ;;  %v4941_v21 = vld [vmem:[#allocation2 + $0x44] ss:$16 sps:$4 sm:$0xff]   ;;  %v4936_v23 = vld [vmem:[#allocation2 + $0x28] ss:$16 sps:$4 sm:$0xff]   ;;  %v314_v27 = vpack.c.bf16 %v301_v22, %v300_v20 }
  0x6d   : > { %4072 = vmatmul.mubr.msk.bf16.vlgmr.msra.gmra.mrb[0].mxu0 %vm362_vm1, %v312_v6  ;;  %4081 = vmatmul.mubr.msk.bf16.vlgmr.msra.gmra.mrb[0].mxu1 %vm362_vm1, %v312_v6  ;;  %v4939_v24 = vld [vmem:[#allocation2 + $0x40] ss:$16 sps:$4 sm:$0xff]   ;;  %v4944_v25 = vld [vmem:[#allocation2 + $0x4c] ss:$16 sps:$4 sm:$0xff]   ;;  %v4947_v26 = vld [vmem:[#allocation2 + $0x64] ss:$16 sps:$4 sm:$0xff]  }
  0x6e   : > { %442 = vmatprep.mubr.bf16.mxu0 %v5536_v0  ;;  %1514 = vmatpush1.bf16.msra.mxu0 %v4927_v11  ;;  %v4942_v28 = vld [vmem:[#allocation2 + $0x48] ss:$16 sps:$4 sm:$0xff]   ;;  %v4945_v29 = vld [vmem:[#allocation2 + $0x60] ss:$16 sps:$4 sm:$0xff]   ;;  %v4950_v30 = vld [vmem:[#allocation2 + $0x6c] ss:$16 sps:$4 sm:$0xff]  }
  0x6f   : > { %1515 = vmatprep.subr.bf16.mxu0 %v4935_v17  ;;  %555 = vmatprep.mubr.bf16.mxu1 %v5536_v0  ;;  %v302_v31 = vld [vmem:[%s5729_s17 + $0x30] sm:$0xff]  ;;  %v303_v33 = vld [vmem:[%s5729_s17 + $0x38] sm:$0xff]  ;;  %v304_v42 = vld [vmem:[%s5729_s17 + $0x40] sm:$0xff]  ;;  %s3961_s13 = sshll.u32 %s6264_s29, 4  ;;  %s6295_s12 = scalar_lea.sflag [#allocation4], %s285_s20  ;;  %s6290_s13 = int_to_ptr.vmem [resolvable:$true] %s3961_s13 }
  0x70   : > { %1740 = vmatpush1.bf16.msra.mxu1 %v4930_v16  ;;  %v4953_v32 = vld [vmem:[#allocation2 + $0x84] ss:$16 sps:$4 sm:$0xff]   ;;  %v4948_v34 = vld [vmem:[#allocation2 + $0x68] ss:$16 sps:$4 sm:$0xff]   ;;  %v4951_v35 = vld [vmem:[#allocation2 + $0x80] ss:$16 sps:$4 sm:$0xff]   ;;  %v315_v38 = vpack.c.bf16 %v303_v33, %v302_v31  ;;  %v326_v33 = vlaneseq }
  0x71   : > { %1741 = vmatprep.subr.bf16.mxu1 %v4938_v19  ;;  %v4956_v36 = vld [vmem:[#allocation2 + $0x8c] ss:$16 sps:$4 sm:$0xff]   ;;  %v4959_v37 = vld [vmem:[#allocation2 + $0xa4] ss:$16 sps:$4 sm:$0xff]   ;;  %v4954_v39 = vld [vmem:[#allocation2 + $0x88] ss:$16 sps:$4 sm:$0xff]  }
  0x72   : > { %1516 = vmatpush1.bf16.msra.mxu0 %v4933_v18  ;;  %v4957_v40 = vld [vmem:[#allocation2 + $0xa0] ss:$16 sps:$4 sm:$0xff]   ;;  %v4962_v41 = vld [vmem:[#allocation2 + $0xac] ss:$16 sps:$4 sm:$0xff]   ;;  %v4965_v43 = vld [vmem:[#allocation2 + $0xc4] ss:$16 sps:$4 sm:$0xff]  }
  0x73   : > { %1517 = vmatprep.subr.bf16.mxu0 %v4941_v21  ;;  %v305_v44 = vld [vmem:[%s5729_s17 + $0x48] sm:$0xff]  ;;  %v4963_v46 = vld [vmem:[#allocation2 + $0xc0] ss:$16 sps:$4 sm:$0xff]   ;;  %v4971_v48 = vld [vmem:[#allocation2 + $0xe4] ss:$16 sps:$4 sm:$0xff]   ;;  %s5459_s9 = scalar_lea.vmem %s6290_s13, 1024 }
  0x74   : > { %1742 = vmatpush1.bf16.msra.mxu1 %v4936_v23  ;;  %v4960_v45 = vld [vmem:[#allocation2 + $0xa8] ss:$16 sps:$4 sm:$0xff]   ;;  %v4968_v47 = vld [vmem:[#allocation2 + $0xcc] ss:$16 sps:$4 sm:$0xff]   ;;  %v316_v49 = vpack.c.bf16 %v305_v44, %v304_v42  ;;  %v4969_v51 = vld [vmem:[#allocation2 + $0xe0] ss:$16 sps:$4 sm:$0xff]   ;;  %p5460_p12 = scmp.ne.s32.totalorder %s6290_s13, %s5459_s9 }
  0x75   : > { %4073 = vmatmul.mubr.msk.bf16.gmra.mrb[4].mxu0 %vm362_vm1, %v313_v15  ;;  %1743 = vmatprep.subr.bf16.mxu1 %v4944_v25  ;;  %v4966_v50 = vld [vmem:[#allocation2 + $0xc8] ss:$16 sps:$4 sm:$0xff]   ;;  %v4974_v52 = vld [vmem:[#allocation2 + $0xec] ss:$16 sps:$4 sm:$0xff]   ;;  %v306_v53 = vld [vmem:[%s5729_s17 + $0x50] sm:$0xff]  ;;  %p6359_p7 = scmp.ne.s32.totalorder %s6349_s7, 0 }
  0x76   : > { %452 = vmatprep.mubr.bf16.mxu0 %v5536_v0  ;;  %1518 = vmatpush1.bf16.msra.mxu0 %v4939_v24  ;;  %v4977_v54 = vld [vmem:[#allocation2 + $0x104] ss:$16 sps:$4 sm:$0xff]   ;;  %v307_v55 = vld [vmem:[%s5729_s17 + $0x58] sm:$0xff]  ;;  %v4975_v57 = vld [vmem:[#allocation2 + $0x100] ss:$16 sps:$4 sm:$0xff]   ;;  %s5537_s25 = smov [#allocation8]  }
  0x77   : > { %4082 = vmatmul.mubr.msk.bf16.gmra.mrb[4].mxu1 %vm362_vm1, %v313_v15  ;;  %1519 = vmatprep.subr.bf16.mxu0 %v4947_v26  ;;  %v4972_v56 = vld [vmem:[#allocation2 + $0xe8] ss:$16 sps:$4 sm:$0xff]   ;;  %v4980_v58 = vld [vmem:[#allocation2 + $0x10c] ss:$16 sps:$4 sm:$0xff]   ;;  %v4983_v59 = vld [vmem:[#allocation2 + $0x124] ss:$16 sps:$4 sm:$0xff]   ;;  %v317_v60 = vpack.c.bf16 %v307_v55, %v306_v53  ;;  %p5461_p8 = pnand %p5460_p12, %p6359_p7 }
  0x78   : > { %565 = vmatprep.mubr.bf16.mxu1 %v5536_v0  ;;  %1744 = vmatpush1.bf16.msra.mxu1 %v4942_v28  ;;  %v4978_v61 = vld [vmem:[#allocation2 + $0x108] ss:$16 sps:$4 sm:$0xff]   ;;  %v4981_v62 = vld [vmem:[#allocation2 + $0x120] ss:$16 sps:$4 sm:$0xff]   ;;  %v4986_v63 = vld [vmem:[#allocation2 + $0x12c] ss:$16 sps:$4 sm:$0xff]  }
  0x79   : > { %1745 = vmatprep.subr.bf16.mxu1 %v4950_v30  ;;  %v4989_v1 = vld [vmem:[#allocation2 + $0x144] ss:$16 sps:$4 sm:$0xff]   ;;  %v309_v3 = vld [vmem:[%s5729_s17 + $0x68] sm:$0xff]  ;;  %v4987_v5 = vld [vmem:[#allocation2 + $0x140] ss:$16 sps:$4 sm:$0xff]   ;;  %p5462_p11 = pneg %p5461_p8  ;;  %s5463_s16 = sshll.u32 %s5537_s25, 4  ;;  %s5464_s16 = int_to_ptr.vmem [resolvable:$false] %s5463_s16 }
  0x7a   : > { %1520 = vmatpush1.bf16.msra.mxu0 %v4945_v29  ;;  %v308_v2 = vld [vmem:[%s5729_s17 + $0x60] sm:$0xff]  ;;  %v4984_v4 = vld [vmem:[#allocation2 + $0x128] ss:$16 sps:$4 sm:$0xff]   ;;  %v4992_v6 = vld [vmem:[#allocation2 + $0x14c] ss:$16 sps:$4 sm:$0xff]   ;;  %s5465_s28 = scalar_lea.vmem %s5464_s16, 2048  ;;  %p5466_p13 = scmp.lt.s32.totalorder %s6290_s13, %s5464_s16 }
  0x7b   : > { %1521 = vmatprep.subr.bf16.mxu0 %v4953_v32  ;;  %v4995_v7 = vld [vmem:[#allocation2 + $0x164] ss:$16 sps:$4 sm:$0xff]   ;;  %v4990_v8 = vld [vmem:[#allocation2 + $0x148] ss:$16 sps:$4 sm:$0xff]   ;;  %v318_v9 = vpack.c.bf16 %v309_v3, %v308_v2  ;;  %v4993_v10 = vld [vmem:[#allocation2 + $0x160] ss:$16 sps:$4 sm:$0xff]   ;;  %p5467_p1 = scmp.lt.s32.totalorder %s5465_s28, %s5459_s9 }
  0x7c   : > { %1746 = vmatpush1.bf16.msra.mxu1 %v4948_v34  ;;  %v4998_v11 = vld [vmem:[#allocation2 + $0x16c] ss:$16 sps:$4 sm:$0xff]   ;;  %v5001_v12 = vld [vmem:[#allocation2 + $0x184] ss:$16 sps:$4 sm:$0xff]   ;;  %v4996_v15 = vld [vmem:[#allocation2 + $0x168] ss:$16 sps:$4 sm:$0xff]  }
  0x7d   : > { %4074 = vmatmul.mubr.msk.bf16.gmra.mrb[8].mxu0 %vm362_vm1, %v314_v27  ;;  %1747 = vmatprep.subr.bf16.mxu1 %v4956_v36  ;;  %v310_v13 = vld [vmem:[%s5729_s17 + $0x70] sm:$0xff]  ;;  %v311_v14 = vld [vmem:[%s5729_s17 + $0x78] sm:$0xff]  ;;  %v327_v34 = vshrl.u32 %v326_v33, 7  ;;  %p5468_p6 = por %p5467_p1, %p5466_p13 }
  0x7e   : > { %462 = vmatprep.mubr.bf16.mxu0 %v5536_v0  ;;  %1522 = vmatpush1.bf16.msra.mxu0 %v4951_v35  ;;  %v4999_v16 = vld [vmem:[#allocation2 + $0x180] ss:$16 sps:$4 sm:$0xff]   ;;  %v5004_v17 = vld [vmem:[#allocation2 + $0x18c] ss:$16 sps:$4 sm:$0xff]   ;;  %v5007_v18 = vld [vmem:[#allocation2 + $0x1a4] ss:$16 sps:$4 sm:$0xff]   ;;  %v319_v20 = vpack.c.bf16 %v311_v14, %v310_v13 }
  0x7f   : > { %4083 = vmatmul.mubr.msk.bf16.gmra.mrb[8].mxu1 %vm362_vm1, %v314_v27  ;;  %1523 = vmatprep.subr.bf16.mxu0 %v4959_v37  ;;  %v5002_v19 = vld [vmem:[#allocation2 + $0x188] ss:$16 sps:$4 sm:$0xff]   ;;  %v5005_v21 = vld [vmem:[#allocation2 + $0x1a0] ss:$16 sps:$4 sm:$0xff]   ;;  %v5010_v22 = vld [vmem:[#allocation2 + $0x1ac] ss:$16 sps:$4 sm:$0xff]   ;;  %p5469_p9 = pnand %p5468_p6, %p5462_p11 }
  0x80   : > { %575 = vmatprep.mubr.bf16.mxu1 %v5536_v0  ;;  %1748 = vmatpush1.bf16.msra.mxu1 %v4954_v39  ;;  %v5008_v23 = vld [vmem:[#allocation2 + $0x1a8] ss:$16 sps:$4 sm:$0xff]   ;;  %v5013_v24 = vld [vmem:[#allocation2 + $0x1c4] ss:$16 sps:$4 sm:$0xff]   ;;  %v5016_v25 = vld [vmem:[#allocation2 + $0x1cc] ss:$16 sps:$4 sm:$0xff]  }
  0x81   : > { %1749 = vmatprep.subr.bf16.mxu1 %v4962_v41  ;;  %v5011_v26 = vld [vmem:[#allocation2 + $0x1c0] ss:$16 sps:$4 sm:$0xff]   ;;  %v5014_v27 = vld [vmem:[#allocation2 + $0x1c8] ss:$16 sps:$4 sm:$0xff]   ;;  %v5019_v28 = vld [vmem:[#allocation2 + $0x1e4] ss:$16 sps:$4 sm:$0xff]  }
  0x82   : > { %1524 = vmatpush1.bf16.msra.mxu0 %v4957_v40  ;;  %v5022_v29 = vld [vmem:[#allocation2 + $0x1ec] ss:$16 sps:$4 sm:$0xff]   ;;  %v5017_v30 = vld [vmem:[#allocation2 + $0x1e0] ss:$16 sps:$4 sm:$0xff]   ;;  %v5020_v31 = vld [vmem:[#allocation2 + $0x1e8] ss:$16 sps:$4 sm:$0xff]  }
  0x83   : > { %1525 = vmatprep.subr.bf16.mxu0 %v4965_v43  ;;  %v5028_v32 = vld [vmem:[#allocation2 + $0x20c] ss:$16 sps:$4 sm:$0xff]   ;;  %v5793_v35 = vsub.s32 0, %v327_v34  ;;  %v324_v36 = vld [vmem:[#allocation7] ss:$8 sm:$0xf] }
  0x84   : > { %1750 = vmatpush1.bf16.msra.mxu1 %v4960_v45  ;;  %v5795_v37 = vsub.s32 1, %v327_v34  ;;  %v5803_v41 = vsub.s32 2, %v327_v34  ;;  %v5806_v44 = vsub.s32 3, %v327_v34  ;;  %v5031_v3 = vld [vmem:[#allocation2 + $0x224] ss:$16 sps:$4 sm:$0xff]  }
  0x85   : > { %4075 = vmatmul.mubr.msk.bf16.gmra.mrb[12].mxu0 %vm362_vm1, %v315_v38  ;;  %1751 = vmatprep.subr.bf16.mxu1 %v4968_v47  ;;  %v5029_v14 = vld [vmem:[#allocation2 + $0x220] ss:$16 sps:$4 sm:$0xff]   ;;  %v5038_v33 = vld [vmem:[#allocation2 + $0x248] ss:$16 sps:$4 sm:$0xff]  }
  0x86   : > { %472 = vmatprep.mubr.bf16.mxu0 %v5536_v0  ;;  %1526 = vmatpush1.bf16.msra.mxu0 %v4963_v46  ;;  %v5801_v39 = vrot.slane %v324_v36, %v5795_v37  ;;  %v5815_v53 = vrot.slane %v324_v36, %v5806_v44 }
  0x87   : > { %4084 = vmatmul.mubr.msk.bf16.gmra.mrb[12].mxu1 %vm362_vm1, %v315_v38  ;;  %1527 = vmatprep.subr.bf16.mxu0 %v4971_v48  ;;  %v5798_v38 = vrot.slane %v324_v36, %v5793_v35 }
  0x88   : > { %585 = vmatprep.mubr.bf16.mxu1 %v5536_v0  ;;  %1752 = vmatpush1.bf16.msra.mxu1 %v4966_v50  ;;  %v5812_v50 = vrot.slane %v324_v36, %v5803_v41 }
  0x89   : > { %1753 = vmatprep.subr.bf16.mxu1 %v4974_v52 }
  0x8a   : > { %1528 = vmatpush1.bf16.msra.mxu0 %v4969_v51 }
  0x8b   : > { %1529 = vmatprep.subr.bf16.mxu0 %v4977_v54 }
  0x8c   : > { %1754 = vmatpush1.bf16.msra.mxu1 %v4972_v56 }
  0x8d   : > { %4076 = vmatmul.mubr.msk.bf16.gmra.mrb[16].mxu0 %vm362_vm1, %v316_v49  ;;  %1755 = vmatprep.subr.bf16.mxu1 %v4980_v58 }
  0x8e   : > { %482 = vmatprep.mubr.bf16.mxu0 %v5536_v0  ;;  %1530 = vmatpush1.bf16.msra.mxu0 %v4975_v57 }
  0x8f   : > { %4085 = vmatmul.mubr.msk.bf16.gmra.mrb[16].mxu1 %vm362_vm1, %v316_v49  ;;  %1531 = vmatprep.subr.bf16.mxu0 %v4983_v59 }
  0x90   : > { %595 = vmatprep.mubr.bf16.mxu1 %v5536_v0  ;;  %1756 = vmatpush1.bf16.msra.mxu1 %v4978_v61  ;;  %v5026_v61 = vld [vmem:[#allocation2 + $0x208] ss:$16 sps:$4 sm:$0xff]  }
  0x91   : > { %1757 = vmatprep.subr.bf16.mxu1 %v4986_v63 }
  0x92   : > { %1532 = vmatpush1.bf16.msra.mxu0 %v4981_v62 }
  0x93   : > { %1533 = vmatprep.subr.bf16.mxu0 %v4989_v1 }
  0x94   : > { %1758 = vmatpush1.bf16.msra.mxu1 %v4984_v4  ;;  %v5034_v4 = vld [vmem:[#allocation2 + $0x22c] ss:$16 sps:$4 sm:$0xff]  }
  0x95   : > { %4077 = vmatmul.mubr.msk.bf16.gmra.mrb[20].mxu0 %vm362_vm1, %v317_v60  ;;  %1759 = vmatprep.subr.bf16.mxu1 %v4992_v6 }
  0x96   : > { %492 = vmatprep.mubr.bf16.mxu0 %v5536_v0  ;;  %1534 = vmatpush1.bf16.msra.mxu0 %v4987_v5 }
  0x97   : > { %4086 = vmatmul.mubr.msk.bf16.gmra.mrb[20].mxu1 %vm362_vm1, %v317_v60  ;;  %1535 = vmatprep.subr.bf16.mxu0 %v4995_v7  ;;  %v5023_v60 = vld [vmem:[#allocation2 + $0x200] ss:$16 sps:$4 sm:$0xff]  }
  0x98   : > { %605 = vmatprep.mubr.bf16.mxu1 %v5536_v0  ;;  %1760 = vmatpush1.bf16.msra.mxu1 %v4990_v8 }
  0x99   : > { %1761 = vmatprep.subr.bf16.mxu1 %v4998_v11 }
  0x9a   : > { %1536 = vmatpush1.bf16.msra.mxu0 %v4993_v10 }
  0x9b   : > { %1537 = vmatprep.subr.bf16.mxu0 %v5001_v12 }
  0x9c   : > { %1762 = vmatpush1.bf16.msra.mxu1 %v4996_v15 }
  0x9d   : > { %4078 = vmatmul.mubr.msk.bf16.gmra.mrb[24].mxu0 %vm362_vm1, %v318_v9  ;;  %1763 = vmatprep.subr.bf16.mxu1 %v5004_v17 }
  0x9e   : > { %502 = vmatprep.mubr.bf16.mxu0 %v5536_v0  ;;  %1538 = vmatpush1.bf16.msra.mxu0 %v4999_v16 }
  0x9f   : > { %4087 = vmatmul.mubr.msk.bf16.gmra.mrb[24].mxu1 %vm362_vm1, %v318_v9  ;;  %1539 = vmatprep.subr.bf16.mxu0 %v5007_v18  ;;  %v5032_v18 = vld [vmem:[#allocation2 + $0x228] ss:$16 sps:$4 sm:$0xff]  }
  0xa0   : > { %615 = vmatprep.mubr.bf16.mxu1 %v5536_v0  ;;  %1764 = vmatpush1.bf16.msra.mxu1 %v5002_v19  ;;  %v5025_v0 = vld [vmem:[#allocation2 + $0x204] ss:$16 sps:$4 sm:$0xff]  }
  0xa1   : > { %1765 = vmatprep.subr.bf16.mxu1 %v5010_v22  ;;  %v5037_v19 = vld [vmem:[#allocation2 + $0x244] ss:$16 sps:$4 sm:$0xff]  }
  0xa2   : > { %1540 = vmatpush1.bf16.msra.mxu0 %v5005_v21 }
  0xa3   : > { %1541 = vmatprep.subr.bf16.mxu0 %v5013_v24 }
  0xa4   : > { %1766 = vmatpush1.bf16.msra.mxu1 %v5008_v23  ;;  %v5040_v23 = vld [vmem:[#allocation2 + $0x24c] ss:$16 sps:$4 sm:$0xff]  }
  0xa5   : > { %4079 = vmatmul.mubr.msk.bf16.gmra.mrb[28].mxu0 %vm362_vm1, %v319_v20  ;;  %1767 = vmatprep.subr.bf16.mxu1 %v5016_v25 }
  0xa6   : > { %1542 = vmatpush1.bf16.msra.mxu0 %v5011_v26 }
  0xa7   : > { %4088 = vmatmul.mubr.msk.bf16.gmra.mrb[28].mxu1 %vm362_vm1, %v319_v20  ;;  %1543 = vmatprep.subr.bf16.mxu0 %v5019_v28 }
  0xa8   : > { %1768 = vmatpush1.bf16.msra.mxu1 %v5014_v27 }
  0xa9   : > { %1769 = vmatprep.subr.bf16.mxu1 %v5022_v29 }
  0xaa   : > { %1544 = vmatpush1.bf16.msra.mxu0 %v5017_v30 }
  0xab   : > { %1626 = vmatprep.subr.bf16.mxu0 %v5025_v0 }
  0xac   : > { %1770 = vmatpush1.bf16.msra.mxu1 %v5020_v31 }
  0xad   : > { %1852 = vmatprep.subr.bf16.mxu1 %v5028_v32  ;;  %v5035_v32 = vld [vmem:[#allocation2 + $0x240] ss:$16 sps:$4 sm:$0xff]  }
 0x140   : > { %v434_v40 = vpop.f32.mrb[0].mxu0  ;;  %v547_v57 = vpop.f32.mrb[0].mxu1 }
 0x141   : > { %v435_v42 = vadd.f32 %v434_v40, %v5798_v38  ;;  %v436_v43 = vpop.f32.mrb[1].mxu0  ;;  %v548_v62 = vadd.f32 %v547_v57, %v5812_v50  ;;  %v549_v63 = vpop.f32.mrb[1].mxu1  ;;  %v5041_v57 = vld [vmem:[#allocation2 + $0x260] ss:$16 sps:$4 sm:$0xff]  }
 0x142   : > { %v437_v45 = vadd.f32 %v436_v43, %v5801_v39  ;;  %v438_v46 = vpop.f32.mrb[2].mxu0  ;;  %v550_v5 = vadd.f32 %v549_v63, %v5815_v53  ;;  %v551_v6 = vpop.f32.mrb[2].mxu1  ;;  %v5043_v43 = vld [vmem:[#allocation2 + $0x264] ss:$16 sps:$4 sm:$0xff]  }
 0x143   : > { %v439_v47 = vadd.f32 %v438_v46, %v5798_v38  ;;  %v440_v48 = vpop.f32.mrb[3].mxu0  ;;  %v626_v51 = vmax.f32 %v435_v42, 0.0  ;;  %v628_v9 = vmax.f32 %v548_v62, 0.0  ;;  %v552_v10 = vadd.f32 %v551_v6, %v5812_v50  ;;  %v553_v11 = vpop.f32.mrb[3].mxu1  ;;  %v5049_v62 = vld [vmem:[#allocation2 + $0x284] ss:$16 sps:$4 sm:$0xff]  }
 0x144   : > { %v441_v49 = vadd.f32 %v440_v48, %v5801_v39  ;;  %v627_v54 = vmax.f32 %v437_v45, 0.0  ;;  %v629_v15 = vmax.f32 %v550_v5, 0.0  ;;  %v554_v16 = vadd.f32 %v553_v11, %v5815_v53  ;;  %v5046_v45 = vld [vmem:[#allocation2 + $0x26c] ss:$16 sps:$4 sm:$0xff]  }
 0x145   : > { %v630_v52 = vmax.f32 %v439_v47, 0.0  ;;  %v632_v20 = vmax.f32 %v552_v10, 0.0 }
 0x146   : > { %v631_v55 = vmax.f32 %v441_v49, 0.0  ;;  %v633_v24 = vmax.f32 %v554_v16, 0.0 }
 0x147   : > { %v690_v56 = vpack.c.bf16 %v630_v52, %v626_v51  ;;  %v5825_v27 = vpack.c.bf16 %v632_v20, %v628_v9  ;;  %v5058_v20 = vld [vmem:[#allocation2 + $0x2ac] ss:$16 sps:$4 sm:$0xff]  }
 0x148   : > { %v691_v58 = vpack.c.bf16 %v631_v55, %v627_v54  ;;  %v444_v59 = vpop.f32.mrb[4].mxu0  ;;  %v5827_v29 = vpack.c.bf16 %v633_v24, %v629_v15 }
 0x149   : > { %v445_v1 = vadd.f32 %v444_v59, %v5798_v38  ;;  %v446_v2 = vpop.f32.mrb[5].mxu0 }
 0x14a   : > { %v447_v7 = vadd.f32 %v446_v2, %v5801_v39  ;;  %v448_v8 = vpop.f32.mrb[6].mxu0  ;;  %1545 = vmatprep.mubr.bf16.mxu0 %v691_v58  ;;  %1771 = vmatprep.mubr.bf16.mxu1 %v691_v58  ;;  %v557_v30 = vpop.f32.mrb[4].mxu1 }
 0x14b   : > { %v449_v12 = vadd.f32 %v448_v8, %v5798_v38  ;;  %v450_v13 = vpop.f32.mrb[7].mxu0  ;;  %1546 = vmatmul.mubr.bf16.vlgmr.msra.gmra.mrb[32].mxu0 %v690_v56  ;;  %1772 = vmatmul.mubr.bf16.vlgmr.msra.gmra.mrb[32].mxu1 %v690_v56  ;;  %v634_v21 = vmax.f32 %v445_v1, 0.0  ;;  %v558_v34 = vadd.f32 %v557_v30, %v5812_v50  ;;  %v559_v36 = vpop.f32.mrb[5].mxu1 }
 0x14c   : > { %v451_v17 = vadd.f32 %v450_v13, %v5801_v39  ;;  %1627 = vmatpush1.bf16.msra.mxu0 %v5023_v60  ;;  %1853 = vmatpush1.bf16.msra.mxu1 %v5026_v61  ;;  %v635_v25 = vmax.f32 %v447_v7, 0.0  ;;  %v560_v46 = vadd.f32 %v559_v36, %v5815_v53  ;;  %v561_v47 = vpop.f32.mrb[6].mxu1  ;;  %v5044_v61 = vld [vmem:[#allocation2 + $0x268] ss:$16 sps:$4 sm:$0xff]   ;;  %v5047_v13 = vld [vmem:[#allocation2 + $0x280] ss:$16 sps:$4 sm:$0xff]  }
 0x14d   : > { %v638_v22 = vmax.f32 %v449_v12, 0.0  ;;  %1628 = vmatprep.subr.bf16.mxu0 %v5031_v3  ;;  %1854 = vmatprep.subr.bf16.mxu1 %v5034_v4  ;;  %v636_v51 = vmax.f32 %v558_v34, 0.0  ;;  %v562_v52 = vadd.f32 %v561_v47, %v5812_v50  ;;  %v563_v54 = vpop.f32.mrb[7].mxu1  ;;  %v5052_v3 = vld [vmem:[#allocation2 + $0x28c] ss:$16 sps:$4 sm:$0xff]  }
 0x14e   : > { %v639_v26 = vmax.f32 %v451_v17, 0.0  ;;  %v637_v58 = vmax.f32 %v560_v46, 0.0  ;;  %v564_v59 = vadd.f32 %v563_v54, %v5815_v53  ;;  %v5056_v36 = vld [vmem:[#allocation2 + $0x2a8] ss:$16 sps:$4 sm:$0xff]   ;;  %v5064_v46 = vld [vmem:[#allocation2 + $0x2cc] ss:$16 sps:$4 sm:$0xff]  }
 0x14f   : > { %v694_v28 = vpack.c.bf16 %v638_v22, %v634_v21  ;;  %v640_v63 = vmax.f32 %v562_v52, 0.0 }
 0x150   : > { %v695_v31 = vpack.c.bf16 %v639_v26, %v635_v25  ;;  %1629 = vmatpush1.bf16.msra.mxu0 %v5029_v14  ;;  %v454_v0 = vpop.f32.mrb[8].mxu0  ;;  %1855 = vmatpush1.bf16.msra.mxu1 %v5032_v18  ;;  %v641_v4 = vmax.f32 %v564_v59, 0.0  ;;  %v5050_v14 = vld [vmem:[#allocation2 + $0x288] ss:$16 sps:$4 sm:$0xff]  }
 0x151   : > { %v455_v40 = vadd.f32 %v454_v0, %v5798_v38  ;;  %v456_v42 = vpop.f32.mrb[9].mxu0  ;;  %1630 = vmatprep.subr.bf16.mxu0 %v5037_v19  ;;  %1856 = vmatprep.subr.bf16.mxu1 %v5040_v23  ;;  %v5837_v7 = vpack.c.bf16 %v640_v63, %v636_v51  ;;  %v5055_v19 = vld [vmem:[#allocation2 + $0x2a4] ss:$16 sps:$4 sm:$0xff]   ;;  %v5053_v0 = vld [vmem:[#allocation2 + $0x2a0] ss:$16 sps:$4 sm:$0xff]  }
 0x152   : > { %v457_v48 = vadd.f32 %v456_v42, %v5801_v39  ;;  %v458_v49 = vpop.f32.mrb[10].mxu0  ;;  %1555 = vmatprep.mubr.bf16.mxu0 %v695_v31  ;;  %1781 = vmatprep.mubr.bf16.mxu1 %v695_v31  ;;  %v5839_v9 = vpack.c.bf16 %v641_v4, %v637_v58  ;;  %v567_v10 = vpop.f32.mrb[8].mxu1  ;;  %v5059_v58 = vld [vmem:[#allocation2 + $0x2c0] ss:$16 sps:$4 sm:$0xff]   ;;  %v5062_v59 = vld [vmem:[#allocation2 + $0x2c8] ss:$16 sps:$4 sm:$0xff]  }
 0x153   : > { %v459_v55 = vadd.f32 %v458_v49, %v5798_v38  ;;  %v460_v56 = vpop.f32.mrb[11].mxu0  ;;  %1556 = vmatmul.mubr.bf16.gmra.mrb[36].mxu0 %v694_v28  ;;  %1782 = vmatmul.mubr.bf16.gmra.mrb[36].mxu1 %v694_v28  ;;  %v642_v1 = vmax.f32 %v455_v40, 0.0  ;;  %v568_v15 = vadd.f32 %v567_v10, %v5812_v50  ;;  %v569_v16 = vpop.f32.mrb[9].mxu1  ;;  %v5061_v40 = vld [vmem:[#allocation2 + $0x2c4] ss:$16 sps:$4 sm:$0xff]  }
 0x154   : > { %v461_v60 = vadd.f32 %v460_v56, %v5801_v39  ;;  %1631 = vmatpush1.bf16.msra.mxu0 %v5035_v32  ;;  %1857 = vmatpush1.bf16.msra.mxu1 %v5038_v33  ;;  %v643_v5 = vmax.f32 %v457_v48, 0.0  ;;  %v570_v21 = vadd.f32 %v569_v16, %v5815_v53  ;;  %v571_v22 = vpop.f32.mrb[10].mxu1 }
 0x155   : > { %v646_v2 = vmax.f32 %v459_v55, 0.0  ;;  %1632 = vmatprep.subr.bf16.mxu0 %v5043_v43  ;;  %1858 = vmatprep.subr.bf16.mxu1 %v5046_v45  ;;  %v644_v25 = vmax.f32 %v568_v15, 0.0  ;;  %v572_v26 = vadd.f32 %v571_v22, %v5812_v50  ;;  %v573_v28 = vpop.f32.mrb[11].mxu1 }
 0x156   : > { %v647_v6 = vmax.f32 %v461_v60, 0.0  ;;  %v645_v32 = vmax.f32 %v570_v21, 0.0  ;;  %v574_v33 = vadd.f32 %v573_v28, %v5815_v53 }
 0x157   : > { %v698_v8 = vpack.c.bf16 %v646_v2, %v642_v1  ;;  %v648_v42 = vmax.f32 %v572_v26, 0.0  ;;  %v5067_v1 = vld [vmem:[#allocation2 + $0x2e4] ss:$16 sps:$4 sm:$0xff]   ;;  %v5070_v2 = vld [vmem:[#allocation2 + $0x2ec] ss:$16 sps:$4 sm:$0xff]  }
 0x158   : > { %v699_v11 = vpack.c.bf16 %v647_v6, %v643_v5  ;;  %1633 = vmatpush1.bf16.msra.mxu0 %v5041_v57  ;;  %v464_v12 = vpop.f32.mrb[12].mxu0  ;;  %1859 = vmatpush1.bf16.msra.mxu1 %v5044_v61  ;;  %v649_v47 = vmax.f32 %v574_v33, 0.0 }
 0x159   : > { %v465_v17 = vadd.f32 %v464_v12, %v5798_v38  ;;  %v466_v18 = vpop.f32.mrb[13].mxu0  ;;  %1634 = vmatprep.subr.bf16.mxu0 %v5049_v62  ;;  %1860 = vmatprep.subr.bf16.mxu1 %v5052_v3  ;;  %v5849_v51 = vpack.c.bf16 %v648_v42, %v644_v25 }
 0x15a   : > { %v467_v23 = vadd.f32 %v466_v18, %v5801_v39  ;;  %v468_v24 = vpop.f32.mrb[14].mxu0  ;;  %1565 = vmatprep.mubr.bf16.mxu0 %v699_v11  ;;  %1791 = vmatprep.mubr.bf16.mxu1 %v699_v11  ;;  %v5851_v54 = vpack.c.bf16 %v649_v47, %v645_v32  ;;  %v577_v55 = vpop.f32.mrb[12].mxu1  ;;  %v5068_v18 = vld [vmem:[#allocation2 + $0x2e8] ss:$16 sps:$4 sm:$0xff]   ;;  %v5082_v47 = vld [vmem:[#allocation2 + $0x32c] ss:$16 sps:$4 sm:$0xff]  }
 0x15b   : > { %v469_v30 = vadd.f32 %v468_v24, %v5798_v38  ;;  %v470_v31 = vpop.f32.mrb[15].mxu0  ;;  %1566 = vmatmul.mubr.bf16.gmra.mrb[40].mxu0 %v698_v8  ;;  %1792 = vmatmul.mubr.bf16.gmra.mrb[40].mxu1 %v698_v8  ;;  %v650_v43 = vmax.f32 %v465_v17, 0.0  ;;  %v578_v60 = vadd.f32 %v577_v55, %v5812_v50  ;;  %v579_v61 = vpop.f32.mrb[13].mxu1 }
 0x15c   : > { %v471_v34 = vadd.f32 %v470_v31, %v5801_v39  ;;  %1635 = vmatpush1.bf16.msra.mxu0 %v5047_v13  ;;  %1861 = vmatpush1.bf16.msra.mxu1 %v5050_v14  ;;  %v651_v48 = vmax.f32 %v467_v23, 0.0  ;;  %v580_v3 = vadd.f32 %v579_v61, %v5815_v53  ;;  %v581_v4 = vpop.f32.mrb[14].mxu1  ;;  %v5065_v14 = vld [vmem:[#allocation2 + $0x2e0] ss:$16 sps:$4 sm:$0xff]   ;;  %v5076_v23 = vld [vmem:[#allocation2 + $0x30c] ss:$16 sps:$4 sm:$0xff]  }
 0x15d   : > { %v654_v45 = vmax.f32 %v469_v30, 0.0  ;;  %1636 = vmatprep.subr.bf16.mxu0 %v5055_v19  ;;  %1862 = vmatprep.subr.bf16.mxu1 %v5058_v20  ;;  %v652_v8 = vmax.f32 %v578_v60, 0.0  ;;  %v582_v10 = vadd.f32 %v581_v4, %v5812_v50  ;;  %v583_v11 = vpop.f32.mrb[15].mxu1  ;;  %v5073_v19 = vld [vmem:[#allocation2 + $0x304] ss:$16 sps:$4 sm:$0xff]  }
 0x15e   : > { %v655_v49 = vmax.f32 %v471_v34, 0.0  ;;  %v653_v15 = vmax.f32 %v580_v3, 0.0  ;;  %v584_v16 = vadd.f32 %v583_v11, %v5815_v53  ;;  %v5071_v34 = vld [vmem:[#allocation2 + $0x300] ss:$16 sps:$4 sm:$0xff]   ;;  %v5085_v3 = vld [vmem:[#allocation2 + $0x344] ss:$16 sps:$4 sm:$0xff]  }
 0x15f   : > { %v702_v52 = vpack.c.bf16 %v654_v45, %v650_v43  ;;  %v656_v20 = vmax.f32 %v582_v10, 0.0  ;;  %v5077_v61 = vld [vmem:[#allocation2 + $0x320] ss:$16 sps:$4 sm:$0xff]  }
 0x160   : > { %v703_v56 = vpack.c.bf16 %v655_v49, %v651_v48  ;;  %1637 = vmatpush1.bf16.msra.mxu0 %v5053_v0  ;;  %v474_v57 = vpop.f32.mrb[16].mxu0  ;;  %1863 = vmatpush1.bf16.msra.mxu1 %v5056_v36  ;;  %v657_v24 = vmax.f32 %v584_v16, 0.0  ;;  %v5074_v36 = vld [vmem:[#allocation2 + $0x308] ss:$16 sps:$4 sm:$0xff]  }
 0x161   : > { %v475_v62 = vadd.f32 %v474_v57, %v5798_v38  ;;  %v476_v63 = vpop.f32.mrb[17].mxu0  ;;  %1638 = vmatprep.subr.bf16.mxu0 %v5061_v40  ;;  %1864 = vmatprep.subr.bf16.mxu1 %v5064_v46  ;;  %v5861_v28 = vpack.c.bf16 %v656_v20, %v652_v8  ;;  %v5079_v46 = vld [vmem:[#allocation2 + $0x324] ss:$16 sps:$4 sm:$0xff]   ;;  %v5088_v8 = vld [vmem:[#allocation2 + $0x34c] ss:$16 sps:$4 sm:$0xff]  }
 0x162   : > { %v477_v5 = vadd.f32 %v476_v63, %v5801_v39  ;;  %v478_v6 = vpop.f32.mrb[18].mxu0  ;;  %1575 = vmatprep.mubr.bf16.mxu0 %v703_v56  ;;  %1801 = vmatprep.mubr.bf16.mxu1 %v703_v56  ;;  %v5863_v31 = vpack.c.bf16 %v657_v24, %v653_v15  ;;  %v587_v0 = vpop.f32.mrb[16].mxu1  ;;  %v5086_v20 = vld [vmem:[#allocation2 + $0x348] ss:$16 sps:$4 sm:$0xff]  }
 0x163   : > { %v479_v12 = vadd.f32 %v478_v6, %v5798_v38  ;;  %v480_v13 = vpop.f32.mrb[19].mxu0  ;;  %1576 = vmatmul.mubr.bf16.gmra.mrb[44].mxu0 %v702_v52  ;;  %1802 = vmatmul.mubr.bf16.gmra.mrb[44].mxu1 %v702_v52  ;;  %v658_v21 = vmax.f32 %v475_v62, 0.0  ;;  %v588_v40 = vadd.f32 %v587_v0, %v5812_v50  ;;  %v589_v42 = vpop.f32.mrb[17].mxu1 }
 0x164   : > { %v481_v17 = vadd.f32 %v480_v13, %v5801_v39  ;;  %1639 = vmatpush1.bf16.msra.mxu0 %v5059_v58  ;;  %1865 = vmatpush1.bf16.msra.mxu1 %v5062_v59  ;;  %v659_v25 = vmax.f32 %v477_v5, 0.0  ;;  %v590_v48 = vadd.f32 %v589_v42, %v5815_v53  ;;  %v591_v49 = vpop.f32.mrb[18].mxu1 }
 0x165   : > { %v662_v22 = vmax.f32 %v479_v12, 0.0  ;;  %1640 = vmatprep.subr.bf16.mxu0 %v5067_v1  ;;  %1866 = vmatprep.subr.bf16.mxu1 %v5070_v2  ;;  %v660_v56 = vmax.f32 %v588_v40, 0.0  ;;  %v592_v57 = vadd.f32 %v591_v49, %v5812_v50  ;;  %v593_v58 = vpop.f32.mrb[19].mxu1  ;;  %v5080_v2 = vld [vmem:[#allocation2 + $0x328] ss:$16 sps:$4 sm:$0xff]  }
 0x166   : > { %v663_v26 = vmax.f32 %v481_v17, 0.0  ;;  %v661_v62 = vmax.f32 %v590_v48, 0.0  ;;  %v594_v63 = vadd.f32 %v593_v58, %v5815_v53  ;;  %v5092_v49 = vld [vmem:[#allocation2 + $0x368] ss:$16 sps:$4 sm:$0xff]   ;;  %v5100_v58 = vld [vmem:[#allocation2 + $0x38c] ss:$16 sps:$4 sm:$0xff]  }
 0x167   : > { %v706_v30 = vpack.c.bf16 %v662_v22, %v658_v21  ;;  %v664_v4 = vmax.f32 %v592_v57, 0.0 }
 0x168   : > { %v707_v32 = vpack.c.bf16 %v663_v26, %v659_v25  ;;  %1641 = vmatpush1.bf16.msra.mxu0 %v5065_v14  ;;  %v484_v33 = vpop.f32.mrb[20].mxu0  ;;  %1867 = vmatpush1.bf16.msra.mxu1 %v5068_v18  ;;  %v665_v10 = vmax.f32 %v594_v63, 0.0  ;;  %v5091_v25 = vld [vmem:[#allocation2 + $0x364] ss:$16 sps:$4 sm:$0xff]   ;;  %v5094_v26 = vld [vmem:[#allocation2 + $0x36c] ss:$16 sps:$4 sm:$0xff]  }
 0x169   : > { %v485_v43 = vadd.f32 %v484_v33, %v5798_v38  ;;  %v486_v45 = vpop.f32.mrb[21].mxu0  ;;  %1642 = vmatprep.subr.bf16.mxu0 %v5073_v19  ;;  %1868 = vmatprep.subr.bf16.mxu1 %v5076_v23  ;;  %v5873_v13 = vpack.c.bf16 %v664_v4, %v660_v56  ;;  %v5083_v19 = vld [vmem:[#allocation2 + $0x340] ss:$16 sps:$4 sm:$0xff]  }
 0x16a   : > { %v487_v52 = vadd.f32 %v486_v45, %v5801_v39  ;;  %v488_v55 = vpop.f32.mrb[22].mxu0  ;;  %1585 = vmatprep.mubr.bf16.mxu0 %v707_v32  ;;  %1811 = vmatprep.mubr.bf16.mxu1 %v707_v32  ;;  %v5875_v15 = vpack.c.bf16 %v665_v10, %v661_v62  ;;  %v597_v16 = vpop.f32.mrb[20].mxu1  ;;  %v5089_v45 = vld [vmem:[#allocation2 + $0x360] ss:$16 sps:$4 sm:$0xff]  }
 0x16b   : > { %v489_v59 = vadd.f32 %v488_v55, %v5798_v38  ;;  %v490_v60 = vpop.f32.mrb[23].mxu0  ;;  %1586 = vmatmul.mubr.bf16.gmra.mrb[48].mxu0 %v706_v30  ;;  %1812 = vmatmul.mubr.bf16.gmra.mrb[48].mxu1 %v706_v30  ;;  %v666_v5 = vmax.f32 %v485_v43, 0.0  ;;  %v598_v21 = vadd.f32 %v597_v16, %v5812_v50  ;;  %v599_v22 = vpop.f32.mrb[21].mxu1  ;;  %v5106_v16 = vld [vmem:[#allocation2 + $0x3ac] ss:$16 sps:$4 sm:$0xff]  }
 0x16c   : > { %v491_v1 = vadd.f32 %v490_v60, %v5801_v39  ;;  %1643 = vmatpush1.bf16.msra.mxu0 %v5071_v34  ;;  %1869 = vmatpush1.bf16.msra.mxu1 %v5074_v36  ;;  %v667_v11 = vmax.f32 %v487_v52, 0.0  ;;  %v600_v30 = vadd.f32 %v599_v22, %v5815_v53  ;;  %v601_v0 = vpop.f32.mrb[22].mxu1  ;;  %v5097_v52 = vld [vmem:[#allocation2 + $0x384] ss:$16 sps:$4 sm:$0xff]  }
 0x16d   : > { %v670_v6 = vmax.f32 %v489_v59, 0.0  ;;  %1644 = vmatprep.subr.bf16.mxu0 %v5079_v46  ;;  %1870 = vmatprep.subr.bf16.mxu1 %v5082_v47  ;;  %v668_v34 = vmax.f32 %v598_v21, 0.0  ;;  %v602_v36 = vadd.f32 %v601_v0, %v5812_v50  ;;  %v603_v40 = vpop.f32.mrb[23].mxu1 }
 0x16e   : > { %v671_v12 = vmax.f32 %v491_v1, 0.0  ;;  %v669_v46 = vmax.f32 %v600_v30, 0.0  ;;  %v604_v47 = vadd.f32 %v603_v40, %v5815_v53 }
 0x16f   : > { %v710_v14 = vpack.c.bf16 %v670_v6, %v666_v5  ;;  %v672_v55 = vmax.f32 %v602_v36, 0.0  ;;  %v5095_v5 = vld [vmem:[#allocation2 + $0x380] ss:$16 sps:$4 sm:$0xff]   ;;  %v5098_v6 = vld [vmem:[#allocation2 + $0x388] ss:$16 sps:$4 sm:$0xff]  }
 0x170   : > { %v711_v17 = vpack.c.bf16 %v671_v12, %v667_v11  ;;  %1645 = vmatpush1.bf16.msra.mxu0 %v5077_v61  ;;  %v494_v18 = vpop.f32.mrb[24].mxu0  ;;  %1871 = vmatpush1.bf16.msra.mxu1 %v5080_v2  ;;  %v673_v59 = vmax.f32 %v604_v47, 0.0 }
 0x171   : > { %v495_v23 = vadd.f32 %v494_v18, %v5798_v38  ;;  %v496_v24 = vpop.f32.mrb[25].mxu0  ;;  %1646 = vmatprep.subr.bf16.mxu0 %v5085_v3  ;;  %1872 = vmatprep.subr.bf16.mxu1 %v5088_v8  ;;  %v5885_v62 = vpack.c.bf16 %v672_v55, %v668_v34  ;;  %v5109_v34 = vld [vmem:[#allocation2 + $0x3c4] ss:$16 sps:$4 sm:$0xff]   ;;  %v5107_v55 = vld [vmem:[#allocation2 + $0x3c0] ss:$16 sps:$4 sm:$0xff]  }
 0x172   : > { %v497_v32 = vadd.f32 %v496_v24, %v5801_v39  ;;  %v498_v33 = vpop.f32.mrb[26].mxu0  ;;  %1595 = vmatprep.mubr.bf16.mxu0 %v711_v17  ;;  %1821 = vmatprep.mubr.bf16.mxu1 %v711_v17  ;;  %v5887_v1 = vpack.c.bf16 %v673_v59, %v669_v46  ;;  %v607_v2 = vpop.f32.mrb[24].mxu1  ;;  %v5115_v59 = vld [vmem:[#allocation2 + $0x3e4] ss:$16 sps:$4 sm:$0xff]  }
 0x173   : > { %v499_v42 = vadd.f32 %v498_v33, %v5798_v38  ;;  %v500_v43 = vpop.f32.mrb[27].mxu0  ;;  %1596 = vmatmul.mubr.bf16.gmra.mrb[52].mxu0 %v710_v14  ;;  %1822 = vmatmul.mubr.bf16.gmra.mrb[52].mxu1 %v710_v14  ;;  %v674_v56 = vmax.f32 %v495_v23, 0.0  ;;  %v608_v8 = vadd.f32 %v607_v2, %v5812_v50  ;;  %v609_v10 = vpop.f32.mrb[25].mxu1  ;;  %v5103_v14 = vld [vmem:[#allocation2 + $0x3a4] ss:$16 sps:$4 sm:$0xff]  }
 0x174   : > { %v501_v48 = vadd.f32 %v500_v43, %v5801_v39  ;;  %1647 = vmatpush1.bf16.msra.mxu0 %v5083_v19  ;;  %1873 = vmatpush1.bf16.msra.mxu1 %v5086_v20  ;;  %v675_v60 = vmax.f32 %v497_v32, 0.0  ;;  %v610_v17 = vadd.f32 %v609_v10, %v5815_v53  ;;  %v611_v18 = vpop.f32.mrb[26].mxu1  ;;  %v5104_v33 = vld [vmem:[#allocation2 + $0x3a8] ss:$16 sps:$4 sm:$0xff]   ;;  %v5112_v43 = vld [vmem:[#allocation2 + $0x3cc] ss:$16 sps:$4 sm:$0xff]  }
 0x175   : > { %v678_v57 = vmax.f32 %v499_v42, 0.0  ;;  %1648 = vmatprep.subr.bf16.mxu0 %v5091_v25  ;;  %1874 = vmatprep.subr.bf16.mxu1 %v5094_v26  ;;  %v676_v21 = vmax.f32 %v608_v8, 0.0  ;;  %v612_v22 = vadd.f32 %v611_v18, %v5812_v50  ;;  %v613_v23 = vpop.f32.mrb[27].mxu1  ;;  %v5101_v26 = vld [vmem:[#allocation2 + $0x3a0] ss:$16 sps:$4 sm:$0xff]  }
 0x176   : > { %v679_v61 = vmax.f32 %v501_v48, 0.0  ;;  %v677_v30 = vmax.f32 %v610_v17, 0.0  ;;  %v614_v0 = vadd.f32 %v613_v23, %v5815_v53  ;;  %v5113_v8 = vld [vmem:[#allocation2 + $0x3e0] ss:$16 sps:$4 sm:$0xff]   ;;  %v5116_v10 = vld [vmem:[#allocation2 + $0x3e8] ss:$16 sps:$4 sm:$0xff]  }
 0x177   : > { %v714_v63 = vpack.c.bf16 %v678_v57, %v674_v56  ;;  %v680_v36 = vmax.f32 %v612_v22, 0.0  ;;  %v5110_v56 = vld [vmem:[#allocation2 + $0x3c8] ss:$16 sps:$4 sm:$0xff]   ;;  %v5133_v22 = vld [vmem:[#allocation5 + $0x44] ss:$16 sps:$4 sm:$0xff]  }
 0x178   : > { %v715_v3 = vpack.c.bf16 %v679_v61, %v675_v60  ;;  %1649 = vmatpush1.bf16.msra.mxu0 %v5089_v45  ;;  %v504_v4 = vpop.f32.mrb[28].mxu0  ;;  %1875 = vmatpush1.bf16.msra.mxu1 %v5092_v49  ;;  %v5122_v18 = vld [vmem:[#allocation5 + $0x8] ss:$16 sps:$4 sm:$0xff]   ;;  %v5136_v23 = vld [vmem:[#allocation5 + $0x4c] ss:$16 sps:$4 sm:$0xff]  }
 0x179   : > { %v505_v11 = vadd.f32 %v504_v4, %v5798_v38  ;;  %v506_v12 = vpop.f32.mrb[29].mxu0  ;;  %1650 = vmatprep.subr.bf16.mxu0 %v5097_v52  ;;  %1876 = vmatprep.subr.bf16.mxu1 %v5100_v58  ;;  %v5897_v47 = vpack.c.bf16 %v680_v36, %v676_v21  ;;  %v5128_v21 = vld [vmem:[#allocation5 + $0x28] ss:$16 sps:$4 sm:$0xff]   ;;  %v5151_v36 = vld [vmem:[#allocation5 + $0xa4] ss:$16 sps:$4 sm:$0xff]  }
 0x17a   : > { %v507_v19 = vadd.f32 %v506_v12, %v5801_v39  ;;  %v508_v20 = vpop.f32.mrb[30].mxu0  ;;  %1605 = vmatprep.mubr.bf16.mxu0 %v715_v3  ;;  %1831 = vmatprep.mubr.bf16.mxu1 %v715_v3  ;;  %v617_v52 = vpop.f32.mrb[28].mxu1 }
 0x17b   : > { %v509_v24 = vadd.f32 %v508_v20, %v5798_v38  ;;  %v510_v25 = vpop.f32.mrb[31].mxu0  ;;  %1606 = vmatmul.mubr.bf16.gmra.mrb[56].mxu0 %v714_v63  ;;  %1832 = vmatmul.mubr.bf16.gmra.mrb[56].mxu1 %v714_v63  ;;  %v682_v40 = vmax.f32 %v505_v11, 0.0  ;;  %v681_v38 = vmax.f32 %v614_v0, 0.0  ;;  %v618_v57 = vadd.f32 %v617_v52, %v5812_v50  ;;  %v619_v58 = vpop.f32.mrb[29].mxu1  ;;  %v5118_v63 = vld [vmem:[#allocation2 + $0x3ec] ss:$16 sps:$4 sm:$0xff]  }
 0x17c   : > { %v511_v32 = vadd.f32 %v510_v25, %v5801_v39  ;;  %1651 = vmatpush1.bf16.msra.mxu0 %v5095_v5  ;;  %1877 = vmatpush1.bf16.msra.mxu1 %v5098_v6  ;;  %v683_v45 = vmax.f32 %v507_v19, 0.0  ;;  %v620_v60 = vadd.f32 %v619_v58, %v5815_v53  ;;  %v621_v61 = vpop.f32.mrb[30].mxu1  ;;  %v5127_v19 = vld [vmem:[#allocation5 + $0x24] ss:$16 sps:$4 sm:$0xff]   ;;  %v5130_v20 = vld [vmem:[#allocation5 + $0x2c] ss:$16 sps:$4 sm:$0xff]  }
 0x17d   : > { %v686_v42 = vmax.f32 %v509_v24, 0.0  ;;  %1652 = vmatprep.subr.bf16.mxu0 %v5103_v14  ;;  %1878 = vmatprep.subr.bf16.mxu1 %v5106_v16  ;;  %v5899_v49 = vpack.c.bf16 %v681_v38, %v677_v30  ;;  %v684_v2 = vmax.f32 %v618_v57, 0.0  ;;  %v622_v3 = vadd.f32 %v621_v61, %v5812_v50  ;;  %v623_v4 = vpop.f32.mrb[31].mxu1  ;;  %v5121_v14 = vld [vmem:[#allocation5 + $0x4] ss:$16 sps:$4 sm:$0xff]  }
 0x17e   : > { %v687_v46 = vmax.f32 %v511_v32, 0.0  ;;  %v685_v5 = vmax.f32 %v620_v60, 0.0  ;;  %v624_v6 = vadd.f32 %v623_v4, %v5815_v53  ;;  %v5124_v16 = vld [vmem:[#allocation5 + $0xc] ss:$16 sps:$4 sm:$0xff]   ;;  %v5119_v53 = vld [vmem:[#allocation5] ss:$16 sps:$4 sm:$0xff]  }
 0x17f   : > { %v718_v48 = vpack.c.bf16 %v686_v42, %v682_v40  ;;  %v688_v11 = vmax.f32 %v622_v3, 0.0  ;;  %v5131_v24 = vld [vmem:[#allocation5 + $0x40] ss:$16 sps:$4 sm:$0xff]   ;;  %v5134_v25 = vld [vmem:[#allocation5 + $0x48] ss:$16 sps:$4 sm:$0xff]  }
 0x180   : > { %v719_v39 = vpack.c.bf16 %v687_v46, %v683_v45  ;;  %1653 = vmatpush1.bf16.msra.mxu0 %v5101_v26  ;;  %1879 = vmatpush1.bf16.msra.mxu1 %v5104_v33  ;;  %v689_v12 = vmax.f32 %v624_v6, 0.0  ;;  %v5139_v26 = vld [vmem:[#allocation5 + $0x64] ss:$16 sps:$4 sm:$0xff]   ;;  %v5140_v30 = vld [vmem:[#allocation5 + $0x68] ss:$16 sps:$4 sm:$0xff]  }
 0x181   : > { %1654 = vmatprep.subr.bf16.mxu0 %v5109_v34  ;;  %1880 = vmatprep.subr.bf16.mxu1 %v5112_v43  ;;  %v5907_v50 = vpack.c.bf16 %v688_v11, %v684_v2  ;;  %v5145_v0 = vld [vmem:[#allocation5 + $0x84] ss:$16 sps:$4 sm:$0xff]   ;;  %v5148_v32 = vld [vmem:[#allocation5 + $0x8c] ss:$16 sps:$4 sm:$0xff]   ;;  %v5143_v33 = vld [vmem:[#allocation5 + $0x80] ss:$16 sps:$4 sm:$0xff]  }
 0x182   : > { %1615 = vmatprep.mubr.bf16.mxu0 %v719_v39  ;;  %1841 = vmatprep.mubr.bf16.mxu1 %v719_v39  ;;  %v5909_v17 = vpack.c.bf16 %v689_v12, %v685_v5  ;;  %v5146_v34 = vld [vmem:[#allocation5 + $0x88] ss:$16 sps:$4 sm:$0xff]   ;;  %v5157_v42 = vld [vmem:[#allocation5 + $0xc4] ss:$16 sps:$4 sm:$0xff]   ;;  %v5160_v43 = vld [vmem:[#allocation5 + $0xcc] ss:$16 sps:$4 sm:$0xff]  }
 0x183   : > { %1616 = vmatmul.mubr.bf16.gmra.mrb[60].mxu0 %v718_v48  ;;  %1842 = vmatmul.mubr.bf16.gmra.mrb[60].mxu1 %v718_v48  ;;  %v5152_v40 = vld [vmem:[#allocation5 + $0xa8] ss:$16 sps:$4 sm:$0xff]   ;;  %v5155_v38 = vld [vmem:[#allocation5 + $0xc0] ss:$16 sps:$4 sm:$0xff]   ;;  %v5163_v46 = vld [vmem:[#allocation5 + $0xe4] ss:$16 sps:$4 sm:$0xff]  }
 0x184   : > { %1655 = vmatpush1.bf16.msra.mxu0 %v5107_v55  ;;  %1881 = vmatpush1.bf16.msra.mxu1 %v5110_v56  ;;  %v5158_v45 = vld [vmem:[#allocation5 + $0xc8] ss:$16 sps:$4 sm:$0xff]   ;;  %v5169_v52 = vld [vmem:[#allocation5 + $0x104] ss:$16 sps:$4 sm:$0xff]   ;;  %v5172_v39 = vld [vmem:[#allocation5 + $0x10c] ss:$16 sps:$4 sm:$0xff]  }
 0x185   : > { %1656 = vmatprep.subr.bf16.mxu0 %v5115_v59  ;;  %1658 = vmatprep.mubr.bf16.mxu0 %v5827_v29  ;;  %v5164_v48 = vld [vmem:[#allocation5 + $0xe8] ss:$16 sps:$4 sm:$0xff]   ;;  %v5167_v55 = vld [vmem:[#allocation5 + $0x100] ss:$16 sps:$4 sm:$0xff]   ;;  %v5175_v57 = vld [vmem:[#allocation5 + $0x124] ss:$16 sps:$4 sm:$0xff]  }
 0x186   : > { %1882 = vmatprep.subr.bf16.mxu1 %v5118_v63  ;;  %1884 = vmatprep.mubr.bf16.mxu1 %v5827_v29  ;;  %v5125_v29 = vld [vmem:[#allocation5 + $0x20] ss:$16 sps:$4 sm:$0xff]   ;;  %v5170_v56 = vld [vmem:[#allocation5 + $0x108] ss:$16 sps:$4 sm:$0xff]   ;;  %v5181_v59 = vld [vmem:[#allocation5 + $0x144] ss:$16 sps:$4 sm:$0xff]  }
 0x187   : > { %v5176_v58 = vld [vmem:[#allocation5 + $0x128] ss:$16 sps:$4 sm:$0xff]   ;;  %v5184_v60 = vld [vmem:[#allocation5 + $0x14c] ss:$16 sps:$4 sm:$0xff]   ;;  %v5179_v61 = vld [vmem:[#allocation5 + $0x140] ss:$16 sps:$4 sm:$0xff]  }
 0x188   : > { %1657 = vmatpush1.bf16.msra.mxu0 %v5113_v8  ;;  %1883 = vmatpush1.bf16.msra.mxu1 %v5116_v10  ;;  %v5182_v63 = vld [vmem:[#allocation5 + $0x148] ss:$16 sps:$4 sm:$0xff]   ;;  %v5187_v2 = vld [vmem:[#allocation5 + $0x164] ss:$16 sps:$4 sm:$0xff]   ;;  %v5196_v5 = vld [vmem:[#allocation5 + $0x18c] ss:$16 sps:$4 sm:$0xff]  }
 0x189   : > { %2852 = vmatprep.subr.bf16.mxu0 %v5121_v14  ;;  %3078 = vmatprep.subr.bf16.mxu1 %v5124_v16  ;;  %v5188_v3 = vld [vmem:[#allocation5 + $0x168] ss:$16 sps:$4 sm:$0xff]   ;;  %v5193_v4 = vld [vmem:[#allocation5 + $0x184] ss:$16 sps:$4 sm:$0xff]   ;;  %v5191_v6 = vld [vmem:[#allocation5 + $0x180] ss:$16 sps:$4 sm:$0xff]  }
 0x18a   : > { %v5194_v8 = vld [vmem:[#allocation5 + $0x188] ss:$16 sps:$4 sm:$0xff]   ;;  %v5199_v10 = vld [vmem:[#allocation5 + $0x1a4] ss:$16 sps:$4 sm:$0xff]   ;;  %v5208_v14 = vld [vmem:[#allocation5 + $0x1cc] ss:$16 sps:$4 sm:$0xff]  }
 0x18b   : > { %1659 = vmatmul.mubr.bf16.vlgmr.msra.gmra.mrb[32].mxu0 %v5825_v27  ;;  %1885 = vmatmul.mubr.bf16.vlgmr.msra.gmra.mrb[32].mxu1 %v5825_v27  ;;  %v5142_v27 = vld [vmem:[#allocation5 + $0x6c] ss:$16 sps:$4 sm:$0xff]   ;;  %v5200_v11 = vld [vmem:[#allocation5 + $0x1a8] ss:$16 sps:$4 sm:$0xff]   ;;  %v5205_v12 = vld [vmem:[#allocation5 + $0x1c4] ss:$16 sps:$4 sm:$0xff]  }
 0x18c   : > { %1668 = vmatprep.mubr.bf16.mxu0 %v5839_v9  ;;  %1894 = vmatprep.mubr.bf16.mxu1 %v5839_v9  ;;  %v5137_v9 = vld [vmem:[#allocation5 + $0x60] ss:$16 sps:$4 sm:$0xff]  }
 0x18d   : > { %2853 = vmatpush1.bf16.msra.mxu0 %v5119_v53  ;;  %3079 = vmatpush1.bf16.msra.mxu1 %v5122_v18  ;;  %v5203_v16 = vld [vmem:[#allocation5 + $0x1c0] ss:$16 sps:$4 sm:$0xff]   ;;  %v5214_v53 = vld [vmem:[#allocation5 + $0x1ec] ss:$16 sps:$4 sm:$0xff]  }
 0x18e   : > { %2854 = vmatprep.subr.bf16.mxu0 %v5127_v19  ;;  %3080 = vmatprep.subr.bf16.mxu1 %v5130_v20  ;;  %v5209_v18 = vld [vmem:[#allocation5 + $0x1e0] ss:$16 sps:$4 sm:$0xff]   ;;  %v5212_v19 = vld [vmem:[#allocation5 + $0x1e8] ss:$16 sps:$4 sm:$0xff]   ;;  %v5217_v20 = vld [vmem:[#allocation5 + $0x204] ss:$16 sps:$4 sm:$0xff]  }
 0x191   : > { %2855 = vmatpush1.bf16.msra.mxu0 %v5125_v29  ;;  %3081 = vmatpush1.bf16.msra.mxu1 %v5128_v21  ;;  %v5220_v29 = vld [vmem:[#allocation5 + $0x20c] ss:$16 sps:$4 sm:$0xff]  }
 0x192   : > { %2856 = vmatprep.subr.bf16.mxu0 %v5133_v22  ;;  %3082 = vmatprep.subr.bf16.mxu1 %v5136_v23 }
 0x193   : > { %1669 = vmatmul.mubr.bf16.gmra.mrb[36].mxu0 %v5837_v7  ;;  %1895 = vmatmul.mubr.bf16.gmra.mrb[36].mxu1 %v5837_v7  ;;  %v5154_v7 = vld [vmem:[#allocation5 + $0xac] ss:$16 sps:$4 sm:$0xff]  }
 0x194   : > { %1678 = vmatprep.mubr.bf16.mxu0 %v5851_v54  ;;  %1904 = vmatprep.mubr.bf16.mxu1 %v5851_v54  ;;  %v5149_v54 = vld [vmem:[#allocation5 + $0xa0] ss:$16 sps:$4 sm:$0xff]  }
 0x195   : > { %2857 = vmatpush1.bf16.msra.mxu0 %v5131_v24  ;;  %3083 = vmatpush1.bf16.msra.mxu1 %v5134_v25 }
 0x196   : > { %2858 = vmatprep.subr.bf16.mxu0 %v5139_v26  ;;  %3084 = vmatprep.subr.bf16.mxu1 %v5142_v27 }
 0x199   : > { %2859 = vmatpush1.bf16.msra.mxu0 %v5137_v9  ;;  %3085 = vmatpush1.bf16.msra.mxu1 %v5140_v30 }
 0x19a   : > { %2860 = vmatprep.subr.bf16.mxu0 %v5145_v0  ;;  %3086 = vmatprep.subr.bf16.mxu1 %v5148_v32 }
 0x19b   : > { %1679 = vmatmul.mubr.bf16.gmra.mrb[40].mxu0 %v5849_v51  ;;  %1905 = vmatmul.mubr.bf16.gmra.mrb[40].mxu1 %v5849_v51  ;;  %v5166_v51 = vld [vmem:[#allocation5 + $0xec] ss:$16 sps:$4 sm:$0xff]  }
 0x19c   : > { %1688 = vmatprep.mubr.bf16.mxu0 %v5863_v31  ;;  %1914 = vmatprep.mubr.bf16.mxu1 %v5863_v31  ;;  %v5161_v31 = vld [vmem:[#allocation5 + $0xe0] ss:$16 sps:$4 sm:$0xff]  }
 0x19d   : > { %2861 = vmatpush1.bf16.msra.mxu0 %v5143_v33  ;;  %3087 = vmatpush1.bf16.msra.mxu1 %v5146_v34 }
 0x19e   : > { %2862 = vmatprep.subr.bf16.mxu0 %v5151_v36  ;;  %3088 = vmatprep.subr.bf16.mxu1 %v5154_v7 }
 0x1a1   : > { %2863 = vmatpush1.bf16.msra.mxu0 %v5149_v54  ;;  %3089 = vmatpush1.bf16.msra.mxu1 %v5152_v40 }
 0x1a2   : > { %2864 = vmatprep.subr.bf16.mxu0 %v5157_v42  ;;  %3090 = vmatprep.subr.bf16.mxu1 %v5160_v43 }
 0x1a3   : > { %1689 = vmatmul.mubr.bf16.gmra.mrb[44].mxu0 %v5861_v28  ;;  %1915 = vmatmul.mubr.bf16.gmra.mrb[44].mxu1 %v5861_v28  ;;  %v5178_v28 = vld [vmem:[#allocation5 + $0x12c] ss:$16 sps:$4 sm:$0xff]  }
 0x1a4   : > { %1698 = vmatprep.mubr.bf16.mxu0 %v5875_v15  ;;  %1924 = vmatprep.mubr.bf16.mxu1 %v5875_v15  ;;  %v5173_v15 = vld [vmem:[#allocation5 + $0x120] ss:$16 sps:$4 sm:$0xff]  }
 0x1a5   : > { %2865 = vmatpush1.bf16.msra.mxu0 %v5155_v38  ;;  %3091 = vmatpush1.bf16.msra.mxu1 %v5158_v45 }
 0x1a6   : > { %2866 = vmatprep.subr.bf16.mxu0 %v5163_v46  ;;  %3092 = vmatprep.subr.bf16.mxu1 %v5166_v51 }
 0x1a9   : > { %2867 = vmatpush1.bf16.msra.mxu0 %v5161_v31  ;;  %3093 = vmatpush1.bf16.msra.mxu1 %v5164_v48 }
 0x1aa   : > { %2868 = vmatprep.subr.bf16.mxu0 %v5169_v52  ;;  %3094 = vmatprep.subr.bf16.mxu1 %v5172_v39 }
 0x1ab   : > { %1699 = vmatmul.mubr.bf16.gmra.mrb[48].mxu0 %v5873_v13  ;;  %1925 = vmatmul.mubr.bf16.gmra.mrb[48].mxu1 %v5873_v13  ;;  %v5190_v13 = vld [vmem:[#allocation5 + $0x16c] ss:$16 sps:$4 sm:$0xff]  }
 0x1ac   : > { %1708 = vmatprep.mubr.bf16.mxu0 %v5887_v1  ;;  %1934 = vmatprep.mubr.bf16.mxu1 %v5887_v1  ;;  %v5185_v1 = vld [vmem:[#allocation5 + $0x160] ss:$16 sps:$4 sm:$0xff]  }
 0x1ad   : > { %2869 = vmatpush1.bf16.msra.mxu0 %v5167_v55  ;;  %3095 = vmatpush1.bf16.msra.mxu1 %v5170_v56 }
 0x1ae   : > { %2870 = vmatprep.subr.bf16.mxu0 %v5175_v57  ;;  %3096 = vmatprep.subr.bf16.mxu1 %v5178_v28 }
 0x1b1   : > { %2871 = vmatpush1.bf16.msra.mxu0 %v5173_v15  ;;  %3097 = vmatpush1.bf16.msra.mxu1 %v5176_v58 }
 0x1b2   : > { %2872 = vmatprep.subr.bf16.mxu0 %v5181_v59  ;;  %3098 = vmatprep.subr.bf16.mxu1 %v5184_v60  ;;  %v5215_v60 = vld [vmem:[#allocation5 + $0x200] ss:$16 sps:$4 sm:$0xff]  }
 0x1b3   : > { %1709 = vmatmul.mubr.bf16.gmra.mrb[52].mxu0 %v5885_v62  ;;  %1935 = vmatmul.mubr.bf16.gmra.mrb[52].mxu1 %v5885_v62  ;;  %v5202_v62 = vld [vmem:[#allocation5 + $0x1ac] ss:$16 sps:$4 sm:$0xff]  }
 0x1b4   : > { %1718 = vmatprep.mubr.bf16.mxu0 %v5899_v49  ;;  %1944 = vmatprep.mubr.bf16.mxu1 %v5899_v49  ;;  %v5197_v49 = vld [vmem:[#allocation5 + $0x1a0] ss:$16 sps:$4 sm:$0xff]  }
 0x1b5   : > { %2873 = vmatpush1.bf16.msra.mxu0 %v5179_v61  ;;  %3099 = vmatpush1.bf16.msra.mxu1 %v5182_v63  ;;  %v5218_v61 = vld [vmem:[#allocation5 + $0x208] ss:$16 sps:$4 sm:$0xff]  }
 0x1b6   : > { %2874 = vmatprep.subr.bf16.mxu0 %v5187_v2  ;;  %3100 = vmatprep.subr.bf16.mxu1 %v5190_v13 }
 0x1b9   : > { %2875 = vmatpush1.bf16.msra.mxu0 %v5185_v1  ;;  %3101 = vmatpush1.bf16.msra.mxu1 %v5188_v3  ;;  %v5223_v3 = vld [vmem:[#allocation5 + $0x224] ss:$16 sps:$4 sm:$0xff]  }
 0x1ba   : > { %2876 = vmatprep.subr.bf16.mxu0 %v5193_v4  ;;  %3102 = vmatprep.subr.bf16.mxu1 %v5196_v5  ;;  %v5226_v4 = vld [vmem:[#allocation5 + $0x22c] ss:$16 sps:$4 sm:$0xff]  }
 0x1bb   : > { %1719 = vmatmul.mubr.bf16.gmra.mrb[56].mxu0 %v5897_v47  ;;  %1945 = vmatmul.mubr.bf16.gmra.mrb[56].mxu1 %v5897_v47  ;;  %v5206_v47 = vld [vmem:[#allocation5 + $0x1c8] ss:$16 sps:$4 sm:$0xff]  }
 0x1bc   : > { %1728 = vmatprep.mubr.bf16.mxu0 %v5909_v17  ;;  %1954 = vmatprep.mubr.bf16.mxu1 %v5909_v17  ;;  %v5211_v17 = vld [vmem:[#allocation5 + $0x1e4] ss:$16 sps:$4 sm:$0xff]  }
 0x1bd   : > { %2877 = vmatpush1.bf16.msra.mxu0 %v5191_v6  ;;  %3103 = vmatpush1.bf16.msra.mxu1 %v5194_v8 }
 0x1be   : > { %2878 = vmatprep.subr.bf16.mxu0 %v5199_v10  ;;  %3104 = vmatprep.subr.bf16.mxu1 %v5202_v62 }
 0x1c1   : > { %2879 = vmatpush1.bf16.msra.mxu0 %v5197_v49  ;;  %3105 = vmatpush1.bf16.msra.mxu1 %v5200_v11 }
 0x1c2   : > { %2880 = vmatprep.subr.bf16.mxu0 %v5205_v12  ;;  %3106 = vmatprep.subr.bf16.mxu1 %v5208_v14 }
 0x1c3   : > { %1729 = vmatmul.mubr.bf16.gmra.mrb[60].mxu0 %v5907_v50  ;;  %1955 = vmatmul.mubr.bf16.gmra.mrb[60].mxu1 %v5907_v50  ;;  %v851_v50 = vld [vmem:[#allocation7 + $0x1] ss:$8 sm:$0xf] }
 0x1c4   : > { %v5942_v21 = vrot.slane %v851_v50, %v5793_v35  ;;  %v5945_v22 = vrot.slane %v851_v50, %v5803_v41  ;;  %v5948_v23 = vrot.slane %v851_v50, %v5795_v37  ;;  %v5951_v24 = vrot.slane %v851_v50, %v5806_v44  ;;  %v5232_v50 = vld [vmem:[#allocation5 + $0x24c] ss:$16 sps:$4 sm:$0xff]  }
 0x1c5   : > { %2881 = vmatpush1.bf16.msra.mxu0 %v5203_v16  ;;  %3107 = vmatpush1.bf16.msra.mxu1 %v5206_v47  ;;  %v5221_v47 = vld [vmem:[#allocation5 + $0x220] ss:$16 sps:$4 sm:$0xff]  }
 0x1c6   : > { %2882 = vmatprep.subr.bf16.mxu0 %v5211_v17  ;;  %3108 = vmatprep.subr.bf16.mxu1 %v5214_v53  ;;  %v5224_v17 = vld [vmem:[#allocation5 + $0x228] ss:$16 sps:$4 sm:$0xff]   ;;  %v5229_v53 = vld [vmem:[#allocation5 + $0x244] ss:$16 sps:$4 sm:$0xff]  }
 0x1c9   : > { %2883 = vmatpush1.bf16.msra.mxu0 %v5209_v18  ;;  %3109 = vmatpush1.bf16.msra.mxu1 %v5212_v19 }
 0x1ca   : > { %2965 = vmatprep.subr.bf16.mxu0 %v5217_v20  ;;  %3191 = vmatprep.subr.bf16.mxu1 %v5220_v29 }
 0x25e   : > { %v1660_v25 = vpop.f32.mrb[32].mxu0  ;;  %v1886_v26 = vpop.f32.mrb[32].mxu1 }
 0x25f   : > { %v4590_v27 = vadd.f32 %v1660_v25, %v5942_v21  ;;  %v4622_v9 = vadd.f32 %v1886_v26, %v5945_v22  ;;  %v1662_v30 = vpop.f32.mrb[33].mxu0  ;;  %v1888_v0 = vpop.f32.mrb[33].mxu1 }
 0x260   : > { %v4591_v32 = vadd.f32 %v1662_v30, %v5948_v23  ;;  %v4623_v33 = vadd.f32 %v1888_v0, %v5951_v24  ;;  %v1664_v34 = vpop.f32.mrb[34].mxu0  ;;  %v1890_v36 = vpop.f32.mrb[34].mxu1 }
 0x261   : > { %v4592_v7 = vadd.f32 %v1664_v34, %v5942_v21  ;;  %v4624_v54 = vadd.f32 %v1890_v36, %v5945_v22  ;;  %v1666_v40 = vpop.f32.mrb[35].mxu0  ;;  %v1892_v42 = vpop.f32.mrb[35].mxu1  ;;  %v1965_v45 = vmax.f32 %v4590_v27, 0.0  ;;  %v1967_v46 = vmax.f32 %v4622_v9, 0.0 }
 0x262   : > { %v4593_v43 = vadd.f32 %v1666_v40, %v5948_v23  ;;  %v4625_v38 = vadd.f32 %v1892_v42, %v5951_v24  ;;  %v1966_v48 = vmax.f32 %v4591_v32, 0.0  ;;  %v1968_v52 = vmax.f32 %v4623_v33, 0.0 }
 0x263   : > { %v1969_v51 = vmax.f32 %v4592_v7, 0.0  ;;  %v1971_v31 = vmax.f32 %v4624_v54, 0.0  ;;  %v5227_v7 = vld [vmem:[#allocation5 + $0x240] ss:$16 sps:$4 sm:$0xff]   ;;  %v5230_v54 = vld [vmem:[#allocation5 + $0x248] ss:$16 sps:$4 sm:$0xff]  }
 0x264   : > { %v1970_v39 = vmax.f32 %v4593_v43, 0.0  ;;  %v1972_v55 = vmax.f32 %v4625_v38, 0.0 }
 0x265   : > { %v2029_v56 = vpack.c.bf16 %v1969_v51, %v1965_v45  ;;  %v5961_v57 = vpack.c.bf16 %v1971_v31, %v1967_v46  ;;  %v5235_v45 = vld [vmem:[#allocation5 + $0x264] ss:$16 sps:$4 sm:$0xff]   ;;  %v5238_v46 = vld [vmem:[#allocation5 + $0x26c] ss:$16 sps:$4 sm:$0xff]  }
 0x266   : > { %v2030_v28 = vpack.c.bf16 %v1970_v39, %v1966_v48  ;;  %v5963_v15 = vpack.c.bf16 %v1972_v55, %v1968_v52  ;;  %v1670_v58 = vpop.f32.mrb[36].mxu0  ;;  %v1896_v59 = vpop.f32.mrb[36].mxu1 }
 0x267   : > { %v4594_v63 = vadd.f32 %v1670_v58, %v5942_v21  ;;  %v4626_v2 = vadd.f32 %v1896_v59, %v5945_v22  ;;  %v1672_v13 = vpop.f32.mrb[37].mxu0  ;;  %v1898_v1 = vpop.f32.mrb[37].mxu1 }
 0x268   : > { %v4595_v5 = vadd.f32 %v1672_v13, %v5948_v23  ;;  %v4627_v6 = vadd.f32 %v1898_v1, %v5951_v24  ;;  %v1674_v8 = vpop.f32.mrb[38].mxu0  ;;  %v1900_v10 = vpop.f32.mrb[38].mxu1  ;;  %2884 = vmatprep.mubr.bf16.mxu0 %v2030_v28  ;;  %3110 = vmatprep.mubr.bf16.mxu1 %v2030_v28 }
 0x269   : > { %v4596_v62 = vadd.f32 %v1674_v8, %v5942_v21  ;;  %v4628_v49 = vadd.f32 %v1900_v10, %v5945_v22  ;;  %v1676_v11 = vpop.f32.mrb[39].mxu0  ;;  %v1902_v12 = vpop.f32.mrb[39].mxu1  ;;  %2885 = vmatmul.mubr.bf16.vlgmr.msra.gmra.mrb[64].mxu0 %v2029_v56  ;;  %3111 = vmatmul.mubr.bf16.vlgmr.msra.gmra.mrb[64].mxu1 %v2029_v56  ;;  %v1973_v18 = vmax.f32 %v4594_v63, 0.0  ;;  %v1975_v19 = vmax.f32 %v4626_v2, 0.0  ;;  %v5241_v63 = vld [vmem:[#allocation5 + $0x284] ss:$16 sps:$4 sm:$0xff]  }
 0x26a   : > { %v4597_v14 = vadd.f32 %v1676_v11, %v5948_v23  ;;  %v4629_v16 = vadd.f32 %v1902_v12, %v5951_v24  ;;  %2966 = vmatpush1.bf16.msra.mxu0 %v5215_v60  ;;  %3192 = vmatpush1.bf16.msra.mxu1 %v5218_v61  ;;  %v1974_v25 = vmax.f32 %v4595_v5, 0.0  ;;  %v1976_v26 = vmax.f32 %v4627_v6, 0.0  ;;  %v5233_v60 = vld [vmem:[#allocation5 + $0x260] ss:$16 sps:$4 sm:$0xff]   ;;  %v5236_v61 = vld [vmem:[#allocation5 + $0x268] ss:$16 sps:$4 sm:$0xff]  }
 0x26b   : > { %v1977_v20 = vmax.f32 %v4596_v62, 0.0  ;;  %v1979_v29 = vmax.f32 %v4628_v49, 0.0  ;;  %2967 = vmatprep.subr.bf16.mxu0 %v5223_v3  ;;  %3193 = vmatprep.subr.bf16.mxu1 %v5226_v4  ;;  %v5244_v4 = vld [vmem:[#allocation5 + $0x28c] ss:$16 sps:$4 sm:$0xff]  }
 0x26c   : > { %v1978_v27 = vmax.f32 %v4597_v14, 0.0  ;;  %v1980_v9 = vmax.f32 %v4629_v16, 0.0 }
 0x26d   : > { %v2033_v30 = vpack.c.bf16 %v1977_v20, %v1973_v18  ;;  %v5973_v0 = vpack.c.bf16 %v1979_v29, %v1975_v19  ;;  %v5247_v29 = vld [vmem:[#allocation5 + $0x2a4] ss:$16 sps:$4 sm:$0xff]  }
 0x26e   : > { %v2034_v32 = vpack.c.bf16 %v1978_v27, %v1974_v25  ;;  %v5975_v33 = vpack.c.bf16 %v1980_v9, %v1976_v26  ;;  %2968 = vmatpush1.bf16.msra.mxu0 %v5221_v47  ;;  %v1680_v34 = vpop.f32.mrb[40].mxu0  ;;  %v1906_v36 = vpop.f32.mrb[40].mxu1  ;;  %3194 = vmatpush1.bf16.msra.mxu1 %v5224_v17  ;;  %v5239_v47 = vld [vmem:[#allocation5 + $0x280] ss:$16 sps:$4 sm:$0xff]   ;;  %v5242_v17 = vld [vmem:[#allocation5 + $0x288] ss:$16 sps:$4 sm:$0xff]  }
 0x26f   : > { %v4598_v40 = vadd.f32 %v1680_v34, %v5942_v21  ;;  %v4630_v42 = vadd.f32 %v1906_v36, %v5945_v22  ;;  %v1682_v43 = vpop.f32.mrb[41].mxu0  ;;  %v1908_v38 = vpop.f32.mrb[41].mxu1  ;;  %2969 = vmatprep.subr.bf16.mxu0 %v5229_v53  ;;  %3195 = vmatprep.subr.bf16.mxu1 %v5232_v50  ;;  %v5250_v50 = vld [vmem:[#allocation5 + $0x2ac] ss:$16 sps:$4 sm:$0xff]  }
 0x270   : > { %v4599_v51 = vadd.f32 %v1682_v43, %v5948_v23  ;;  %v4631_v31 = vadd.f32 %v1908_v38, %v5951_v24  ;;  %v1684_v48 = vpop.f32.mrb[42].mxu0  ;;  %v1910_v52 = vpop.f32.mrb[42].mxu1  ;;  %2894 = vmatprep.mubr.bf16.mxu0 %v2034_v32  ;;  %3120 = vmatprep.mubr.bf16.mxu1 %v2034_v32  ;;  %v5253_v43 = vld [vmem:[#allocation5 + $0x2c4] ss:$16 sps:$4 sm:$0xff]  }
 0x271   : > { %v4600_v39 = vadd.f32 %v1684_v48, %v5942_v21  ;;  %v4632_v55 = vadd.f32 %v1910_v52, %v5945_v22  ;;  %v1686_v56 = vpop.f32.mrb[43].mxu0  ;;  %v1912_v28 = vpop.f32.mrb[43].mxu1  ;;  %2895 = vmatmul.mubr.bf16.gmra.mrb[68].mxu0 %v2033_v30  ;;  %3121 = vmatmul.mubr.bf16.gmra.mrb[68].mxu1 %v2033_v30  ;;  %v1981_v2 = vmax.f32 %v4598_v40, 0.0  ;;  %v1983_v13 = vmax.f32 %v4630_v42, 0.0  ;;  %v5245_v40 = vld [vmem:[#allocation5 + $0x2a0] ss:$16 sps:$4 sm:$0xff]  }
 0x272   : > { %v4601_v58 = vadd.f32 %v1686_v56, %v5948_v23  ;;  %v4633_v59 = vadd.f32 %v1912_v28, %v5951_v24  ;;  %2970 = vmatpush1.bf16.msra.mxu0 %v5227_v7  ;;  %3196 = vmatpush1.bf16.msra.mxu1 %v5230_v54  ;;  %v1982_v5 = vmax.f32 %v4599_v51, 0.0  ;;  %v1984_v6 = vmax.f32 %v4631_v31, 0.0  ;;  %v5248_v42 = vld [vmem:[#allocation5 + $0x2a8] ss:$16 sps:$4 sm:$0xff]   ;;  %v5256_v31 = vld [vmem:[#allocation5 + $0x2cc] ss:$16 sps:$4 sm:$0xff]  }
 0x273   : > { %v1985_v1 = vmax.f32 %v4600_v39, 0.0  ;;  %v1987_v3 = vmax.f32 %v4632_v55, 0.0  ;;  %2971 = vmatprep.subr.bf16.mxu0 %v5235_v45  ;;  %3197 = vmatprep.subr.bf16.mxu1 %v5238_v46 }
 0x274   : > { %v1986_v8 = vmax.f32 %v4601_v58, 0.0  ;;  %v1988_v10 = vmax.f32 %v4633_v59, 0.0 }
 0x275   : > { %v2037_v62 = vpack.c.bf16 %v1985_v1, %v1981_v2  ;;  %v5985_v49 = vpack.c.bf16 %v1987_v3, %v1983_v13  ;;  %v5254_v2 = vld [vmem:[#allocation5 + $0x2c8] ss:$16 sps:$4 sm:$0xff]  }
 0x276   : > { %v2038_v11 = vpack.c.bf16 %v1986_v8, %v1982_v5  ;;  %v5987_v12 = vpack.c.bf16 %v1988_v10, %v1984_v6  ;;  %2972 = vmatpush1.bf16.msra.mxu0 %v5233_v60  ;;  %v1690_v14 = vpop.f32.mrb[44].mxu0  ;;  %v1916_v16 = vpop.f32.mrb[44].mxu1  ;;  %3198 = vmatpush1.bf16.msra.mxu1 %v5236_v61  ;;  %v5259_v5 = vld [vmem:[#allocation5 + $0x2e4] ss:$16 sps:$4 sm:$0xff]   ;;  %v5262_v6 = vld [vmem:[#allocation5 + $0x2ec] ss:$16 sps:$4 sm:$0xff]  }
 0x277   : > { %v4602_v53 = vadd.f32 %v1690_v14, %v5942_v21  ;;  %v4634_v18 = vadd.f32 %v1916_v16, %v5945_v22  ;;  %v1692_v19 = vpop.f32.mrb[45].mxu0  ;;  %v1918_v20 = vpop.f32.mrb[45].mxu1  ;;  %2973 = vmatprep.subr.bf16.mxu0 %v5241_v63  ;;  %3199 = vmatprep.subr.bf16.mxu1 %v5244_v4  ;;  %v5251_v63 = vld [vmem:[#allocation5 + $0x2c0] ss:$16 sps:$4 sm:$0xff]  }
 0x278   : > { %v4603_v25 = vadd.f32 %v1692_v19, %v5948_v23  ;;  %v4635_v26 = vadd.f32 %v1918_v20, %v5951_v24  ;;  %v1694_v27 = vpop.f32.mrb[46].mxu0  ;;  %v1920_v9 = vpop.f32.mrb[46].mxu1  ;;  %2904 = vmatprep.mubr.bf16.mxu0 %v2038_v11  ;;  %3130 = vmatprep.mubr.bf16.mxu1 %v2038_v11  ;;  %v5257_v19 = vld [vmem:[#allocation5 + $0x2e0] ss:$16 sps:$4 sm:$0xff]   ;;  %v5260_v20 = vld [vmem:[#allocation5 + $0x2e8] ss:$16 sps:$4 sm:$0xff]  }
 0x279   : > { %v4604_v30 = vadd.f32 %v1694_v27, %v5942_v21  ;;  %v4636_v32 = vadd.f32 %v1920_v9, %v5945_v22  ;;  %v1696_v34 = vpop.f32.mrb[47].mxu0  ;;  %v1922_v36 = vpop.f32.mrb[47].mxu1  ;;  %2905 = vmatmul.mubr.bf16.gmra.mrb[72].mxu0 %v2037_v62  ;;  %3131 = vmatmul.mubr.bf16.gmra.mrb[72].mxu1 %v2037_v62  ;;  %v1989_v38 = vmax.f32 %v4602_v53, 0.0  ;;  %v1991_v45 = vmax.f32 %v4634_v18, 0.0  ;;  %v5268_v9 = vld [vmem:[#allocation5 + $0x30c] ss:$16 sps:$4 sm:$0xff]  }
 0x27a   : > { %v4605_v7 = vadd.f32 %v1696_v34, %v5948_v23  ;;  %v4637_v54 = vadd.f32 %v1922_v36, %v5951_v24  ;;  %2974 = vmatpush1.bf16.msra.mxu0 %v5239_v47  ;;  %3200 = vmatpush1.bf16.msra.mxu1 %v5242_v17  ;;  %v1990_v48 = vmax.f32 %v4603_v25, 0.0  ;;  %v1992_v52 = vmax.f32 %v4635_v26, 0.0 }
 0x27b   : > { %v1993_v46 = vmax.f32 %v4604_v30, 0.0  ;;  %v1995_v51 = vmax.f32 %v4636_v32, 0.0  ;;  %2975 = vmatprep.subr.bf16.mxu0 %v5247_v29  ;;  %3201 = vmatprep.subr.bf16.mxu1 %v5250_v50  ;;  %v5265_v29 = vld [vmem:[#allocation5 + $0x304] ss:$16 sps:$4 sm:$0xff]  }
 0x27c   : > { %v1994_v39 = vmax.f32 %v4605_v7, 0.0  ;;  %v1996_v55 = vmax.f32 %v4637_v54, 0.0 }
 0x27d   : > { %v2041_v56 = vpack.c.bf16 %v1993_v46, %v1989_v38  ;;  %v5997_v28 = vpack.c.bf16 %v1995_v51, %v1991_v45  ;;  %v5263_v45 = vld [vmem:[#allocation5 + $0x300] ss:$16 sps:$4 sm:$0xff]   ;;  %v5266_v46 = vld [vmem:[#allocation5 + $0x308] ss:$16 sps:$4 sm:$0xff]  }
 0x27e   : > { %v2042_v58 = vpack.c.bf16 %v1994_v39, %v1990_v48  ;;  %v5999_v59 = vpack.c.bf16 %v1996_v55, %v1992_v52  ;;  %2976 = vmatpush1.bf16.msra.mxu0 %v5245_v40  ;;  %v1700_v60 = vpop.f32.mrb[48].mxu0  ;;  %v1926_v61 = vpop.f32.mrb[48].mxu1  ;;  %3202 = vmatpush1.bf16.msra.mxu1 %v5248_v42  ;;  %v5271_v39 = vld [vmem:[#allocation5 + $0x324] ss:$16 sps:$4 sm:$0xff]   ;;  %v5274_v55 = vld [vmem:[#allocation5 + $0x32c] ss:$16 sps:$4 sm:$0xff]  }
 0x27f   : > { %v4606_v13 = vadd.f32 %v1700_v60, %v5942_v21  ;;  %v4638_v1 = vadd.f32 %v1926_v61, %v5945_v22  ;;  %v1702_v3 = vpop.f32.mrb[49].mxu0  ;;  %v1928_v4 = vpop.f32.mrb[49].mxu1  ;;  %2977 = vmatprep.subr.bf16.mxu0 %v5253_v43  ;;  %3203 = vmatprep.subr.bf16.mxu1 %v5256_v31 }
 0x280   : > { %v4607_v8 = vadd.f32 %v1702_v3, %v5948_v23  ;;  %v4639_v10 = vadd.f32 %v1928_v4, %v5951_v24  ;;  %v1704_v62 = vpop.f32.mrb[50].mxu0  ;;  %v1930_v11 = vpop.f32.mrb[50].mxu1  ;;  %2914 = vmatprep.mubr.bf16.mxu0 %v2042_v58  ;;  %3140 = vmatprep.mubr.bf16.mxu1 %v2042_v58 }
 0x281   : > { %v4608_v14 = vadd.f32 %v1704_v62, %v5942_v21  ;;  %v4640_v16 = vadd.f32 %v1930_v11, %v5945_v22  ;;  %v1706_v47 = vpop.f32.mrb[51].mxu0  ;;  %v1932_v17 = vpop.f32.mrb[51].mxu1  ;;  %2915 = vmatmul.mubr.bf16.gmra.mrb[76].mxu0 %v2041_v56  ;;  %3141 = vmatmul.mubr.bf16.gmra.mrb[76].mxu1 %v2041_v56  ;;  %v1997_v50 = vmax.f32 %v4606_v13, 0.0  ;;  %v1999_v25 = vmax.f32 %v4638_v1, 0.0 }
 0x282   : > { %v4609_v53 = vadd.f32 %v1706_v47, %v5948_v23  ;;  %v4641_v18 = vadd.f32 %v1932_v17, %v5951_v24  ;;  %2978 = vmatpush1.bf16.msra.mxu0 %v5251_v63  ;;  %3204 = vmatpush1.bf16.msra.mxu1 %v5254_v2  ;;  %v1998_v30 = vmax.f32 %v4607_v8, 0.0  ;;  %v2000_v32 = vmax.f32 %v4639_v10, 0.0  ;;  %v5277_v8 = vld [vmem:[#allocation5 + $0x344] ss:$16 sps:$4 sm:$0xff]  }
 0x283   : > { %v2001_v26 = vmax.f32 %v4608_v14, 0.0  ;;  %v2003_v27 = vmax.f32 %v4640_v16, 0.0  ;;  %2979 = vmatprep.subr.bf16.mxu0 %v5259_v5  ;;  %3205 = vmatprep.subr.bf16.mxu1 %v5262_v6  ;;  %v5269_v5 = vld [vmem:[#allocation5 + $0x320] ss:$16 sps:$4 sm:$0xff]   ;;  %v5272_v6 = vld [vmem:[#allocation5 + $0x328] ss:$16 sps:$4 sm:$0xff]  }
 0x284   : > { %v2002_v34 = vmax.f32 %v4609_v53, 0.0  ;;  %v2004_v36 = vmax.f32 %v4641_v18, 0.0  ;;  %v5280_v16 = vld [vmem:[#allocation5 + $0x34c] ss:$16 sps:$4 sm:$0xff]  }
 0x285   : > { %v2045_v7 = vpack.c.bf16 %v2001_v26, %v1997_v50  ;;  %v6009_v54 = vpack.c.bf16 %v2003_v27, %v1999_v25  ;;  %v5275_v27 = vld [vmem:[#allocation5 + $0x340] ss:$16 sps:$4 sm:$0xff]  }
 0x286   : > { %v2046_v40 = vpack.c.bf16 %v2002_v34, %v1998_v30  ;;  %v6011_v42 = vpack.c.bf16 %v2004_v36, %v2000_v32  ;;  %2980 = vmatpush1.bf16.msra.mxu0 %v5257_v19  ;;  %v1710_v43 = vpop.f32.mrb[52].mxu0  ;;  %v1936_v38 = vpop.f32.mrb[52].mxu1  ;;  %3206 = vmatpush1.bf16.msra.mxu1 %v5260_v20 }
 0x287   : > { %v4610_v51 = vadd.f32 %v1710_v43, %v5942_v21  ;;  %v4642_v31 = vadd.f32 %v1936_v38, %v5945_v22  ;;  %v1712_v48 = vpop.f32.mrb[53].mxu0  ;;  %v1938_v52 = vpop.f32.mrb[53].mxu1  ;;  %2981 = vmatprep.subr.bf16.mxu0 %v5265_v29  ;;  %3207 = vmatprep.subr.bf16.mxu1 %v5268_v9  ;;  %v5278_v9 = vld [vmem:[#allocation5 + $0x348] ss:$16 sps:$4 sm:$0xff]  }
 0x288   : > { %v4611_v56 = vadd.f32 %v1712_v48, %v5948_v23  ;;  %v4643_v58 = vadd.f32 %v1938_v52, %v5951_v24  ;;  %v1714_v60 = vpop.f32.mrb[54].mxu0  ;;  %v1940_v61 = vpop.f32.mrb[54].mxu1  ;;  %2924 = vmatprep.mubr.bf16.mxu0 %v2046_v40  ;;  %3150 = vmatprep.mubr.bf16.mxu1 %v2046_v40  ;;  %v5286_v40 = vld [vmem:[#allocation5 + $0x36c] ss:$16 sps:$4 sm:$0xff]  }
 0x289   : > { %v4612_v63 = vadd.f32 %v1714_v60, %v5942_v21  ;;  %v4644_v2 = vadd.f32 %v1940_v61, %v5945_v22  ;;  %v1716_v13 = vpop.f32.mrb[55].mxu0  ;;  %v1942_v1 = vpop.f32.mrb[55].mxu1  ;;  %2925 = vmatmul.mubr.bf16.gmra.mrb[80].mxu0 %v2045_v7  ;;  %3151 = vmatmul.mubr.bf16.gmra.mrb[80].mxu1 %v2045_v7  ;;  %v2005_v10 = vmax.f32 %v4610_v51, 0.0  ;;  %v2007_v62 = vmax.f32 %v4642_v31, 0.0  ;;  %v5283_v7 = vld [vmem:[#allocation5 + $0x364] ss:$16 sps:$4 sm:$0xff]  }
 0x28a   : > { %v4613_v3 = vadd.f32 %v1716_v13, %v5948_v23  ;;  %v4645_v4 = vadd.f32 %v1942_v1, %v5951_v24  ;;  %2982 = vmatpush1.bf16.msra.mxu0 %v5263_v45  ;;  %3208 = vmatpush1.bf16.msra.mxu1 %v5266_v46  ;;  %v2006_v47 = vmax.f32 %v4611_v56, 0.0  ;;  %v2008_v17 = vmax.f32 %v4643_v58, 0.0  ;;  %v5281_v56 = vld [vmem:[#allocation5 + $0x360] ss:$16 sps:$4 sm:$0xff]   ;;  %v5284_v58 = vld [vmem:[#allocation5 + $0x368] ss:$16 sps:$4 sm:$0xff]  }
 0x28b   : > { %v2009_v11 = vmax.f32 %v4612_v63, 0.0  ;;  %v2011_v14 = vmax.f32 %v4644_v2, 0.0  ;;  %2983 = vmatprep.subr.bf16.mxu0 %v5271_v39  ;;  %3209 = vmatprep.subr.bf16.mxu1 %v5274_v55  ;;  %v5289_v60 = vld [vmem:[#allocation5 + $0x384] ss:$16 sps:$4 sm:$0xff]   ;;  %v5292_v1 = vld [vmem:[#allocation5 + $0x38c] ss:$16 sps:$4 sm:$0xff]  }
 0x28c   : > { %v2010_v53 = vmax.f32 %v4613_v3, 0.0  ;;  %v2012_v18 = vmax.f32 %v4645_v4, 0.0 }
 0x28d   : > { %v2049_v19 = vpack.c.bf16 %v2009_v11, %v2005_v10  ;;  %v6021_v20 = vpack.c.bf16 %v2011_v14, %v2007_v62 }
 0x28e   : > { %v2050_v29 = vpack.c.bf16 %v2010_v53, %v2006_v47  ;;  %v6023_v50 = vpack.c.bf16 %v2012_v18, %v2008_v17  ;;  %2984 = vmatpush1.bf16.msra.mxu0 %v5269_v5  ;;  %v1720_v25 = vpop.f32.mrb[56].mxu0  ;;  %v1946_v26 = vpop.f32.mrb[56].mxu1  ;;  %3210 = vmatpush1.bf16.msra.mxu1 %v5272_v6  ;;  %v5287_v47 = vld [vmem:[#allocation5 + $0x380] ss:$16 sps:$4 sm:$0xff]   ;;  %v5290_v17 = vld [vmem:[#allocation5 + $0x388] ss:$16 sps:$4 sm:$0xff]  }
 0x28f   : > { %v4614_v30 = vadd.f32 %v1720_v25, %v5942_v21  ;;  %v4646_v32 = vadd.f32 %v1946_v26, %v5945_v22  ;;  %v1722_v34 = vpop.f32.mrb[57].mxu0  ;;  %v1948_v36 = vpop.f32.mrb[57].mxu1  ;;  %2985 = vmatprep.subr.bf16.mxu0 %v5277_v8  ;;  %3211 = vmatprep.subr.bf16.mxu1 %v5280_v16  ;;  %v5295_v25 = vld [vmem:[#allocation5 + $0x3a4] ss:$16 sps:$4 sm:$0xff]   ;;  %v5298_v26 = vld [vmem:[#allocation5 + $0x3ac] ss:$16 sps:$4 sm:$0xff]  }
 0x290   : > { %v4615_v43 = vadd.f32 %v1722_v34, %v5948_v23  ;;  %v4647_v38 = vadd.f32 %v1948_v36, %v5951_v24  ;;  %v1724_v45 = vpop.f32.mrb[58].mxu0  ;;  %v1950_v46 = vpop.f32.mrb[58].mxu1  ;;  %2934 = vmatprep.mubr.bf16.mxu0 %v2050_v29  ;;  %3160 = vmatprep.mubr.bf16.mxu1 %v2050_v29 }
 0x291   : > { %v4616_v51 = vadd.f32 %v1724_v45, %v5942_v21  ;;  %v4648_v31 = vadd.f32 %v1950_v46, %v5945_v22  ;;  %v1726_v48 = vpop.f32.mrb[59].mxu0  ;;  %v1952_v52 = vpop.f32.mrb[59].mxu1  ;;  %2935 = vmatmul.mubr.bf16.gmra.mrb[84].mxu0 %v2049_v19  ;;  %3161 = vmatmul.mubr.bf16.gmra.mrb[84].mxu1 %v2049_v19  ;;  %v2013_v61 = vmax.f32 %v4614_v30, 0.0  ;;  %v2015_v63 = vmax.f32 %v4646_v32, 0.0  ;;  %v5293_v45 = vld [vmem:[#allocation5 + $0x3a0] ss:$16 sps:$4 sm:$0xff]  }
 0x292   : > { %v4617_v39 = vadd.f32 %v1726_v48, %v5948_v23  ;;  %v4649_v55 = vadd.f32 %v1952_v52, %v5951_v24  ;;  %2986 = vmatpush1.bf16.msra.mxu0 %v5275_v27  ;;  %3212 = vmatpush1.bf16.msra.mxu1 %v5278_v9  ;;  %v2014_v3 = vmax.f32 %v4615_v43, 0.0  ;;  %v2016_v4 = vmax.f32 %v4647_v38, 0.0  ;;  %v5296_v46 = vld [vmem:[#allocation5 + $0x3a8] ss:$16 sps:$4 sm:$0xff]  }
 0x293   : > { %v2017_v2 = vmax.f32 %v4616_v51, 0.0  ;;  %v2019_v13 = vmax.f32 %v4648_v31, 0.0  ;;  %2987 = vmatprep.subr.bf16.mxu0 %v5283_v7  ;;  %3213 = vmatprep.subr.bf16.mxu1 %v5286_v40  ;;  %v5301_v51 = vld [vmem:[#allocation5 + $0x3c4] ss:$16 sps:$4 sm:$0xff]  }
 0x294   : > { %v2018_v5 = vmax.f32 %v4617_v39, 0.0  ;;  %v2020_v6 = vmax.f32 %v4649_v55, 0.0 }
 0x295   : > { %v2053_v8 = vpack.c.bf16 %v2017_v2, %v2013_v61  ;;  %v6033_v10 = vpack.c.bf16 %v2019_v13, %v2015_v63  ;;  %v5299_v63 = vld [vmem:[#allocation5 + $0x3c0] ss:$16 sps:$4 sm:$0xff]   ;;  %v5302_v2 = vld [vmem:[#allocation5 + $0x3c8] ss:$16 sps:$4 sm:$0xff]   ;;  %v5307_v13 = vld [vmem:[#allocation5 + $0x3e4] ss:$16 sps:$4 sm:$0xff]  }
 0x296   : > { %v2054_v62 = vpack.c.bf16 %v2018_v5, %v2014_v3  ;;  %v6035_v11 = vpack.c.bf16 %v2020_v6, %v2016_v4  ;;  %2988 = vmatpush1.bf16.msra.mxu0 %v5281_v56  ;;  %v1730_v14 = vpop.f32.mrb[60].mxu0  ;;  %v1956_v16 = vpop.f32.mrb[60].mxu1  ;;  %3214 = vmatpush1.bf16.msra.mxu1 %v5284_v58  ;;  %v5305_v3 = vld [vmem:[#allocation5 + $0x3e0] ss:$16 sps:$4 sm:$0xff]   ;;  %v5308_v4 = vld [vmem:[#allocation5 + $0x3e8] ss:$16 sps:$4 sm:$0xff]  }
 0x297   : > { %v4618_v53 = vadd.f32 %v1730_v14, %v5942_v21  ;;  %v4650_v18 = vadd.f32 %v1956_v16, %v5945_v22  ;;  %v1732_v19 = vpop.f32.mrb[61].mxu0  ;;  %v1958_v29 = vpop.f32.mrb[61].mxu1  ;;  %2989 = vmatprep.subr.bf16.mxu0 %v5289_v60  ;;  %3215 = vmatprep.subr.bf16.mxu1 %v5292_v1  ;;  %v5310_v1 = vld [vmem:[#allocation5 + $0x3ec] ss:$16 sps:$4 sm:$0xff]   ;;  %v5311_v5 = vld [vmem:[%s6340_s4 + $0x40] sm:$0xff]  }
 0x298   : > { %v4619_v27 = vadd.f32 %v1732_v19, %v5948_v23  ;;  %v4651_v9 = vadd.f32 %v1958_v29, %v5951_v24  ;;  %v1734_v30 = vpop.f32.mrb[62].mxu0  ;;  %v1960_v32 = vpop.f32.mrb[62].mxu1  ;;  %2944 = vmatprep.mubr.bf16.mxu0 %v2054_v62  ;;  %3170 = vmatprep.mubr.bf16.mxu1 %v2054_v62  ;;  %v5313_v6 = vld [vmem:[%s6340_s4 + $0xc0] sm:$0xff]   ;;  %v5315_v62 = vld [vmem:[%s6340_s4 + $0x48] sm:$0xff]   ;;  %v5325_v19 = vld [vmem:[%s6340_s4 + $0xd8] sm:$0xff]  }
 0x299   : > { %v4620_v34 = vadd.f32 %v1734_v30, %v5942_v21  ;;  %v4652_v36 = vadd.f32 %v1960_v32, %v5945_v22  ;;  %v1736_v7 = vpop.f32.mrb[63].mxu0  ;;  %v1962_v40 = vpop.f32.mrb[63].mxu1  ;;  %2945 = vmatmul.mubr.bf16.gmra.mrb[88].mxu0 %v2053_v8  ;;  %3171 = vmatmul.mubr.bf16.gmra.mrb[88].mxu1 %v2053_v8  ;;  %v2021_v31 = vmax.f32 %v4618_v53, 0.0  ;;  %v2023_v48 = vmax.f32 %v4650_v18, 0.0  ;;  %v5304_v21 = vld [vmem:[#allocation5 + $0x3cc] ss:$16 sps:$4 sm:$0xff]  }
 0x29a   : > { %v4621_v43 = vadd.f32 %v1736_v7, %v5948_v23  ;;  %v4653_v38 = vadd.f32 %v1962_v40, %v5951_v24  ;;  %2990 = vmatpush1.bf16.msra.mxu0 %v5287_v47  ;;  %3216 = vmatpush1.bf16.msra.mxu1 %v5290_v17  ;;  %v2022_v22 = vmax.f32 %v4619_v27, 0.0  ;;  %v2024_v55 = vmax.f32 %v4651_v9, 0.0  ;;  %v5312_v8 = vld [vmem:[%s6340_s4] sm:$0xff]   ;;  %v5317_v14 = vld [vmem:[%s6340_s4 + $0xc8] sm:$0xff]   ;;  %v5319_v17 = vld [vmem:[%s6340_s4 + $0x50] sm:$0xff]  }
 0x29b   : > { %v2025_v52 = vmax.f32 %v4620_v34, 0.0  ;;  %v2027_v39 = vmax.f32 %v4652_v36, 0.0  ;;  %2991 = vmatprep.subr.bf16.mxu0 %v5295_v25  ;;  %3217 = vmatprep.subr.bf16.mxu1 %v5298_v26  ;;  %v5316_v16 = vld [vmem:[%s6340_s4 + $0x8] sm:$0xff]   ;;  %v5322_v53 = vld [vmem:[%s6340_s4 + $0x90] sm:$0xff]   ;;  %v5323_v18 = vld [vmem:[%s6340_s4 + $0x58] sm:$0xff]  }
 0x29c   : > { %v2026_v56 = vmax.f32 %v4621_v43, 0.0  ;;  %v2028_v58 = vmax.f32 %v4653_v38, 0.0  ;;  %v5318_v47 = vld [vmem:[%s6340_s4 + $0x88] sm:$0xff]   ;;  %v5324_v29 = vld [vmem:[%s6340_s4 + $0x18] sm:$0xff]   ;;  %v5327_v26 = vld [vmem:[%s6340_s4 + $0x60] sm:$0xff]  }
 0x29d   : > { %v2057_v60 = vpack.c.bf16 %v2025_v52, %v2021_v31  ;;  %v6045_v23 = vpack.c.bf16 %v2027_v39, %v2023_v48  ;;  %v5326_v25 = vld [vmem:[%s6340_s4 + $0x98] sm:$0xff]   ;;  %v5330_v27 = vld [vmem:[%s6340_s4 + $0xa0] sm:$0xff]   ;;  %v5331_v9 = vld [vmem:[%s6340_s4 + $0x68] sm:$0xff]  }
 0x29e   : > { %v2058_v24 = vpack.c.bf16 %v2026_v56, %v2022_v22  ;;  %v6047_v61 = vpack.c.bf16 %v2028_v58, %v2024_v55  ;;  %2992 = vmatpush1.bf16.msra.mxu0 %v5293_v45  ;;  %3218 = vmatpush1.bf16.msra.mxu1 %v5296_v46  ;;  %v5333_v30 = vld [vmem:[%s6340_s4 + $0xe8] sm:$0xff]   ;;  %v5335_v36 = vld [vmem:[%s6340_s4 + $0x70] sm:$0xff]  }
 0x29f   : > { %2993 = vmatprep.subr.bf16.mxu0 %v5301_v51  ;;  %3219 = vmatprep.subr.bf16.mxu1 %v5304_v21  ;;  %v5332_v32 = vld [vmem:[%s6340_s4 + $0x28] sm:$0xff]   ;;  %v5338_v7 = vld [vmem:[%s6340_s4 + $0xb0] sm:$0xff]  }
 0x2a0   : > { %2954 = vmatprep.mubr.bf16.mxu0 %v2058_v24  ;;  %3180 = vmatprep.mubr.bf16.mxu1 %v2058_v24  ;;  %v5334_v34 = vld [vmem:[%s6340_s4 + $0xa8] sm:$0xff]  }
 0x2a1   : > { %2955 = vmatmul.mubr.bf16.gmra.mrb[92].mxu0 %v2057_v60  ;;  %3181 = vmatmul.mubr.bf16.gmra.mrb[92].mxu1 %v2057_v60 }
 0x2a2   : > { %2994 = vmatpush1.bf16.msra.mxu0 %v5299_v63  ;;  %2997 = vmatprep.mubr.bf16.mxu0 %v5963_v15 }
 0x2a3   : > { %3220 = vmatpush1.bf16.msra.mxu1 %v5302_v2  ;;  %3223 = vmatprep.mubr.bf16.mxu1 %v5963_v15  ;;  %v5314_v15 = vld [vmem:[%s6340_s4 + $0x80] sm:$0xff]  }
 0x2a4   : > { %2995 = vmatprep.subr.bf16.mxu0 %v5307_v13  ;;  %3221 = vmatprep.subr.bf16.mxu1 %v5310_v1 }
 0x2a6   : > { %2996 = vmatpush1.bf16.msra.mxu0 %v5305_v3 }
 0x2a7   : > { %3222 = vmatpush1.bf16.msra.mxu1 %v5308_v4  ;;  %4462 = vmatprep.subr.bf16.mxu0 %v5311_v5 }
 0x2a8   : > { %4526 = vmatprep.subr.bf16.mxu1 %v5313_v6 }
 0x2a9   : > { %2998 = vmatmul.mubr.bf16.vlgmr.msra.gmra.mrb[64].mxu0 %v5961_v57 }
 0x2aa   : > { %3224 = vmatmul.mubr.bf16.vlgmr.msra.gmra.mrb[64].mxu1 %v5961_v57  ;;  %3007 = vmatprep.mubr.bf16.mxu0 %v5975_v33  ;;  %v5321_v57 = vld [vmem:[%s6340_s4 + $0xd0] sm:$0xff]  }
 0x2ab   : > { %3233 = vmatprep.mubr.bf16.mxu1 %v5975_v33  ;;  %4463 = vmatpush3.bf16.msra.mxu0 %v5312_v8  ;;  %v5320_v33 = vld [vmem:[%s6340_s4 + $0x10] sm:$0xff]  }
 0x2ac   : > { %4527 = vmatpush3.bf16.msra.mxu1 %v5314_v15  ;;  %4464 = vmatprep.subr.bf16.mxu0 %v5315_v62 }
 0x2ad   : > { %4528 = vmatprep.subr.bf16.mxu1 %v5317_v14 }
 0x2af   : > { %4465 = vmatpush3.bf16.msra.mxu0 %v5316_v16 }
 0x2b0   : > { %4529 = vmatpush3.bf16.msra.mxu1 %v5318_v47  ;;  %4466 = vmatprep.subr.bf16.mxu0 %v5319_v17 }
 0x2b1   : > { %3008 = vmatmul.mubr.bf16.gmra.mrb[68].mxu0 %v5973_v0  ;;  %4530 = vmatprep.subr.bf16.mxu1 %v5321_v57 }
 0x2b2   : > { %3234 = vmatmul.mubr.bf16.gmra.mrb[68].mxu1 %v5973_v0  ;;  %3017 = vmatprep.mubr.bf16.mxu0 %v5987_v12  ;;  %v5329_v0 = vld [vmem:[%s6340_s4 + $0xe0] sm:$0xff]  }
 0x2b3   : > { %3243 = vmatprep.mubr.bf16.mxu1 %v5987_v12  ;;  %4467 = vmatpush3.bf16.msra.mxu0 %v5320_v33  ;;  %v5328_v12 = vld [vmem:[%s6340_s4 + $0x20] sm:$0xff]  }
 0x2b4   : > { %4531 = vmatpush3.bf16.msra.mxu1 %v5322_v53  ;;  %4468 = vmatprep.subr.bf16.mxu0 %v5323_v18 }
 0x2b5   : > { %4532 = vmatprep.subr.bf16.mxu1 %v5325_v19 }
 0x2b7   : > { %4469 = vmatpush3.bf16.msra.mxu0 %v5324_v29 }
 0x2b8   : > { %4533 = vmatpush3.bf16.msra.mxu1 %v5326_v25  ;;  %4470 = vmatprep.subr.bf16.mxu0 %v5327_v26 }
 0x2b9   : > { %3018 = vmatmul.mubr.bf16.gmra.mrb[72].mxu0 %v5985_v49  ;;  %4534 = vmatprep.subr.bf16.mxu1 %v5329_v0 }
 0x2ba   : > { %3244 = vmatmul.mubr.bf16.gmra.mrb[72].mxu1 %v5985_v49  ;;  %3027 = vmatprep.mubr.bf16.mxu0 %v5999_v59  ;;  %v5337_v49 = vld [vmem:[%s6340_s4 + $0xf0] sm:$0xff]  }
 0x2bb   : > { %3253 = vmatprep.mubr.bf16.mxu1 %v5999_v59  ;;  %4471 = vmatpush3.bf16.msra.mxu0 %v5328_v12  ;;  %v5336_v59 = vld [vmem:[%s6340_s4 + $0x30] sm:$0xff]  }
 0x2bc   : > { %4535 = vmatpush3.bf16.msra.mxu1 %v5330_v27  ;;  %4472 = vmatprep.subr.bf16.mxu0 %v5331_v9 }
 0x2bd   : > { %4536 = vmatprep.subr.bf16.mxu1 %v5333_v30 }
 0x2bf   : > { %4473 = vmatpush3.bf16.msra.mxu0 %v5332_v32 }
 0x2c0   : > { %4537 = vmatpush3.bf16.msra.mxu1 %v5334_v34  ;;  %4474 = vmatprep.subr.bf16.mxu0 %v5335_v36 }
 0x2c1   : > { %3028 = vmatmul.mubr.bf16.gmra.mrb[76].mxu0 %v5997_v28  ;;  %4538 = vmatprep.subr.bf16.mxu1 %v5337_v49 }
 0x2c2   : > { %3254 = vmatmul.mubr.bf16.gmra.mrb[76].mxu1 %v5997_v28  ;;  %3037 = vmatprep.mubr.bf16.mxu0 %v6011_v42  ;;  %v5339_v28 = vld [vmem:[%s6340_s4 + $0x78] sm:$0xff]  }
 0x2c3   : > { %3263 = vmatprep.mubr.bf16.mxu1 %v6011_v42  ;;  %4475 = vmatpush3.bf16.msra.mxu0 %v5336_v59  ;;  %v5340_v42 = vld [vmem:[%s6340_s4 + $0x38] sm:$0xff]  }
 0x2c4   : > { %4539 = vmatpush3.bf16.msra.mxu1 %v5338_v7  ;;  %4476 = vmatprep.subr.bf16.mxu0 %v5339_v28 }
 0x2c7   : > { %4477 = vmatpush3.bf16.msra.mxu0 %v5340_v42 }
 0x2c9   : > { %3038 = vmatmul.mubr.bf16.gmra.mrb[80].mxu0 %v6009_v54 }
 0x2ca   : > { %3264 = vmatmul.mubr.bf16.gmra.mrb[80].mxu1 %v6009_v54  ;;  %3047 = vmatprep.mubr.bf16.mxu0 %v6023_v50  ;;  %v5341_v54 = vld [vmem:[%s6340_s4 + $0xf8] sm:$0xff]  }
 0x2cb   : > { %3273 = vmatprep.mubr.bf16.mxu1 %v6023_v50  ;;  %4540 = vmatprep.subr.bf16.mxu1 %v5341_v54  ;;  %v2190_v50 = vld [vmem:[#allocation7 + $0x2] ss:$8 sm:$0xf] }
 0x2cc   : > { %v6184_v40 = vrot.slane %v2190_v50, %v5795_v37  ;;  %v6187_v43 = vrot.slane %v2190_v50, %v5806_v44 }
 0x2d1   : > { %3048 = vmatmul.mubr.bf16.gmra.mrb[84].mxu0 %v6021_v20 }
 0x2d2   : > { %3274 = vmatmul.mubr.bf16.gmra.mrb[84].mxu1 %v6021_v20  ;;  %3057 = vmatprep.mubr.bf16.mxu0 %v6035_v11  ;;  %v5342_v20 = vld [vmem:[%s6340_s4 + $0xb8] sm:$0xff]  }
 0x2d3   : > { %3283 = vmatprep.mubr.bf16.mxu1 %v6035_v11  ;;  %4541 = vmatpush3.bf16.msra.mxu1 %v5342_v20  ;;  %v6181_v11 = vrot.slane %v2190_v50, %v5803_v41 }
 0x2d9   : > { %3058 = vmatmul.mubr.bf16.gmra.mrb[88].mxu0 %v6033_v10 }
 0x2da   : > { %3284 = vmatmul.mubr.bf16.gmra.mrb[88].mxu1 %v6033_v10  ;;  %3067 = vmatprep.mubr.bf16.mxu0 %v6047_v61  ;;  %v6178_v10 = vrot.slane %v2190_v50, %v5793_v35 }
 0x2db   : > { %3293 = vmatprep.mubr.bf16.mxu1 %v6047_v61 }
 0x2e1   : > { %3068 = vmatmul.mubr.bf16.gmra.mrb[92].mxu0 %v6045_v23 }
 0x2e2   : > { %3294 = vmatmul.mubr.bf16.gmra.mrb[92].mxu1 %v6045_v23 }
 0x37c   : > { %v2999_v38 = vpop.f32.mrb[64].mxu0 }
 0x37d   : > { %v4654_v45 = vadd.f32 %v2999_v38, %v6178_v10  ;;  %v3225_v46 = vpop.f32.mrb[64].mxu1  ;;  %v3001_v51 = vpop.f32.mrb[65].mxu0 }
 0x37e   : > { %v4686_v31 = vadd.f32 %v3225_v46, %v6181_v11  ;;  %v4655_v48 = vadd.f32 %v3001_v51, %v6184_v40  ;;  %v3227_v35 = vpop.f32.mrb[65].mxu1  ;;  %v3003_v52 = vpop.f32.mrb[66].mxu0 }
 0x37f   : > { %v4687_v41 = vadd.f32 %v3227_v35, %v6187_v43  ;;  %v4656_v39 = vadd.f32 %v3003_v52, %v6178_v10  ;;  %v3229_v37 = vpop.f32.mrb[66].mxu1  ;;  %v3005_v21 = vpop.f32.mrb[67].mxu0  ;;  %v3304_v56 = vmax.f32 %v4654_v45, 0.0 }
 0x380   : > { %v4688_v44 = vadd.f32 %v3229_v37, %v6181_v11  ;;  %v4657_v22 = vadd.f32 %v3005_v21, %v6184_v40  ;;  %v3231_v55 = vpop.f32.mrb[67].mxu1  ;;  %v3306_v23 = vmax.f32 %v4686_v31, 0.0  ;;  %v3305_v24 = vmax.f32 %v4655_v48, 0.0 }
 0x381   : > { %v3308_v58 = vmax.f32 %v4656_v39, 0.0  ;;  %v4689_v60 = vadd.f32 %v3231_v55, %v6187_v43  ;;  %v3307_v2 = vmax.f32 %v4687_v41, 0.0 }
 0x382   : > { %v3310_v61 = vmax.f32 %v4688_v44, 0.0  ;;  %v3309_v63 = vmax.f32 %v4657_v22, 0.0 }
 0x383   : > { %v3368_v13 = vpack.c.bf16 %v3308_v58, %v3304_v56  ;;  %v3311_v1 = vmax.f32 %v4689_v60, 0.0 }
 0x384   : > { %v3370_v3 = vpack.c.bf16 %v3310_v61, %v3306_v23  ;;  %v3369_v4 = vpack.c.bf16 %v3309_v63, %v3305_v24  ;;  %v3009_v5 = vpop.f32.mrb[68].mxu0 }
 0x385   : > { %v3371_v6 = vpack.c.bf16 %v3311_v1, %v3307_v2  ;;  %v4658_v8 = vadd.f32 %v3009_v5, %v6178_v10  ;;  %v3235_v15 = vpop.f32.mrb[68].mxu1  ;;  %v3011_v62 = vpop.f32.mrb[69].mxu0 }
 0x386   : > { %v4690_v14 = vadd.f32 %v3235_v15, %v6181_v11  ;;  %v4659_v16 = vadd.f32 %v3011_v62, %v6184_v40  ;;  %v3237_v47 = vpop.f32.mrb[69].mxu1  ;;  %v3013_v17 = vpop.f32.mrb[70].mxu0  ;;  %3689 = vmatprep.mubr.bf16.mxu0 %v3369_v4 }
 0x387   : > { %v4691_v57 = vadd.f32 %v3237_v47, %v6187_v43  ;;  %v4660_v33 = vadd.f32 %v3013_v17, %v6178_v10  ;;  %v3239_v53 = vpop.f32.mrb[70].mxu1  ;;  %3786 = vmatprep.mubr.bf16.mxu1 %v3371_v6  ;;  %v3015_v18 = vpop.f32.mrb[71].mxu0  ;;  %3690 = vmatmul.mubr.bf16.vlgmr.msra.gmra.mrb[96].mxu0 %v3368_v13  ;;  %v3312_v26 = vmax.f32 %v4658_v8, 0.0 }
 0x388   : > { %v4692_v19 = vadd.f32 %v3239_v53, %v6181_v11  ;;  %v4661_v29 = vadd.f32 %v3015_v18, %v6184_v40  ;;  %v3241_v25 = vpop.f32.mrb[71].mxu1  ;;  %3787 = vmatmul.mubr.bf16.vlgmr.msra.gmra.mrb[96].mxu1 %v3370_v3  ;;  %v3314_v27 = vmax.f32 %v4690_v14, 0.0  ;;  %v3313_v9 = vmax.f32 %v4659_v16, 0.0 }
 0x389   : > { %v3316_v0 = vmax.f32 %v4660_v33, 0.0  ;;  %v4693_v12 = vadd.f32 %v3241_v25, %v6187_v43  ;;  %v3315_v34 = vmax.f32 %v4691_v57, 0.0 }
 0x38a   : > { %v3318_v30 = vmax.f32 %v4692_v19, 0.0  ;;  %v3317_v32 = vmax.f32 %v4661_v29, 0.0 }
 0x38b   : > { %v3372_v36 = vpack.c.bf16 %v3316_v0, %v3312_v26  ;;  %v3319_v49 = vmax.f32 %v4693_v12, 0.0 }
 0x38c   : > { %v3374_v59 = vpack.c.bf16 %v3318_v30, %v3314_v27  ;;  %v3373_v7 = vpack.c.bf16 %v3317_v32, %v3313_v9  ;;  %v3019_v28 = vpop.f32.mrb[72].mxu0 }
 0x38d   : > { %v3375_v54 = vpack.c.bf16 %v3319_v49, %v3315_v34  ;;  %v4662_v42 = vadd.f32 %v3019_v28, %v6178_v10  ;;  %v3245_v20 = vpop.f32.mrb[72].mxu1  ;;  %v3021_v50 = vpop.f32.mrb[73].mxu0 }
 0x38e   : > { %v4694_v38 = vadd.f32 %v3245_v20, %v6181_v11  ;;  %v4663_v45 = vadd.f32 %v3021_v50, %v6184_v40  ;;  %v3247_v46 = vpop.f32.mrb[73].mxu1  ;;  %v3023_v51 = vpop.f32.mrb[74].mxu0  ;;  %3697 = vmatprep.mubr.bf16.mxu0 %v3373_v7 }
 0x38f   : > { %v4695_v31 = vadd.f32 %v3247_v46, %v6187_v43  ;;  %v4664_v48 = vadd.f32 %v3023_v51, %v6178_v10  ;;  %v3249_v35 = vpop.f32.mrb[74].mxu1  ;;  %3794 = vmatprep.mubr.bf16.mxu1 %v3375_v54  ;;  %v3025_v52 = vpop.f32.mrb[75].mxu0  ;;  %3698 = vmatmul.mubr.bf16.gmra.mrb[100].mxu0 %v3372_v36  ;;  %v3320_v21 = vmax.f32 %v4662_v42, 0.0 }
 0x390   : > { %v4696_v41 = vadd.f32 %v3249_v35, %v6181_v11  ;;  %v4665_v39 = vadd.f32 %v3025_v52, %v6184_v40  ;;  %v3251_v37 = vpop.f32.mrb[75].mxu1  ;;  %3795 = vmatmul.mubr.bf16.gmra.mrb[100].mxu1 %v3374_v59  ;;  %v3322_v55 = vmax.f32 %v4694_v38, 0.0  ;;  %v3321_v56 = vmax.f32 %v4663_v45, 0.0 }
 0x391   : > { %v3324_v44 = vmax.f32 %v4664_v48, 0.0  ;;  %v4697_v22 = vadd.f32 %v3251_v37, %v6187_v43  ;;  %v3323_v23 = vmax.f32 %v4695_v31, 0.0 }
 0x392   : > { %v3326_v58 = vmax.f32 %v4696_v41, 0.0  ;;  %v3325_v60 = vmax.f32 %v4665_v39, 0.0 }
 0x393   : > { %v3376_v24 = vpack.c.bf16 %v3324_v44, %v3320_v21  ;;  %v3327_v61 = vmax.f32 %v4697_v22, 0.0 }
 0x394   : > { %v3378_v63 = vpack.c.bf16 %v3326_v58, %v3322_v55  ;;  %v3377_v2 = vpack.c.bf16 %v3325_v60, %v3321_v56  ;;  %v3029_v13 = vpop.f32.mrb[76].mxu0 }
 0x395   : > { %v3379_v1 = vpack.c.bf16 %v3327_v61, %v3323_v23  ;;  %v4666_v3 = vadd.f32 %v3029_v13, %v6178_v10  ;;  %v3255_v4 = vpop.f32.mrb[76].mxu1  ;;  %v3031_v5 = vpop.f32.mrb[77].mxu0 }
 0x396   : > { %v4698_v6 = vadd.f32 %v3255_v4, %v6181_v11  ;;  %v4667_v8 = vadd.f32 %v3031_v5, %v6184_v40  ;;  %v3257_v15 = vpop.f32.mrb[77].mxu1  ;;  %v3033_v62 = vpop.f32.mrb[78].mxu0  ;;  %3705 = vmatprep.mubr.bf16.mxu0 %v3377_v2 }
 0x397   : > { %v4699_v14 = vadd.f32 %v3257_v15, %v6187_v43  ;;  %v4668_v16 = vadd.f32 %v3033_v62, %v6178_v10  ;;  %v3259_v47 = vpop.f32.mrb[78].mxu1  ;;  %3802 = vmatprep.mubr.bf16.mxu1 %v3379_v1  ;;  %v3035_v17 = vpop.f32.mrb[79].mxu0  ;;  %3706 = vmatmul.mubr.bf16.gmra.mrb[104].mxu0 %v3376_v24  ;;  %v3328_v18 = vmax.f32 %v4666_v3, 0.0 }
 0x398   : > { %v4700_v57 = vadd.f32 %v3259_v47, %v6181_v11  ;;  %v4669_v33 = vadd.f32 %v3035_v17, %v6184_v40  ;;  %v3261_v53 = vpop.f32.mrb[79].mxu1  ;;  %3803 = vmatmul.mubr.bf16.gmra.mrb[104].mxu1 %v3378_v63  ;;  %v3330_v25 = vmax.f32 %v4698_v6, 0.0  ;;  %v3329_v26 = vmax.f32 %v4667_v8, 0.0 }
 0x399   : > { %v3332_v19 = vmax.f32 %v4668_v16, 0.0  ;;  %v4701_v29 = vadd.f32 %v3261_v53, %v6187_v43  ;;  %v3331_v27 = vmax.f32 %v4699_v14, 0.0 }
 0x39a   : > { %v3334_v0 = vmax.f32 %v4700_v57, 0.0  ;;  %v3333_v12 = vmax.f32 %v4669_v33, 0.0 }
 0x39b   : > { %v3380_v9 = vpack.c.bf16 %v3332_v19, %v3328_v18  ;;  %v3335_v30 = vmax.f32 %v4701_v29, 0.0 }
 0x39c   : > { %v3382_v32 = vpack.c.bf16 %v3334_v0, %v3330_v25  ;;  %v3381_v34 = vpack.c.bf16 %v3333_v12, %v3329_v26  ;;  %v3039_v36 = vpop.f32.mrb[80].mxu0 }
 0x39d   : > { %v3383_v49 = vpack.c.bf16 %v3335_v30, %v3331_v27  ;;  %v4670_v59 = vadd.f32 %v3039_v36, %v6178_v10  ;;  %v3265_v7 = vpop.f32.mrb[80].mxu1  ;;  %v3041_v28 = vpop.f32.mrb[81].mxu0 }
 0x39e   : > { %v4702_v54 = vadd.f32 %v3265_v7, %v6181_v11  ;;  %v4671_v42 = vadd.f32 %v3041_v28, %v6184_v40  ;;  %v3267_v20 = vpop.f32.mrb[81].mxu1  ;;  %v3043_v50 = vpop.f32.mrb[82].mxu0  ;;  %3713 = vmatprep.mubr.bf16.mxu0 %v3381_v34 }
 0x39f   : > { %v4703_v38 = vadd.f32 %v3267_v20, %v6187_v43  ;;  %v4672_v45 = vadd.f32 %v3043_v50, %v6178_v10  ;;  %v3269_v46 = vpop.f32.mrb[82].mxu1  ;;  %3810 = vmatprep.mubr.bf16.mxu1 %v3383_v49  ;;  %v3045_v51 = vpop.f32.mrb[83].mxu0  ;;  %3714 = vmatmul.mubr.bf16.gmra.mrb[108].mxu0 %v3380_v9  ;;  %v3336_v52 = vmax.f32 %v4670_v59, 0.0 }
 0x3a0   : > { %v4704_v31 = vadd.f32 %v3269_v46, %v6181_v11  ;;  %v4673_v48 = vadd.f32 %v3045_v51, %v6184_v40  ;;  %v3271_v35 = vpop.f32.mrb[83].mxu1  ;;  %3811 = vmatmul.mubr.bf16.gmra.mrb[108].mxu1 %v3382_v32  ;;  %v3338_v37 = vmax.f32 %v4702_v54, 0.0  ;;  %v3337_v21 = vmax.f32 %v4671_v42, 0.0 }
 0x3a1   : > { %v3340_v41 = vmax.f32 %v4672_v45, 0.0  ;;  %v4705_v39 = vadd.f32 %v3271_v35, %v6187_v43  ;;  %v3339_v55 = vmax.f32 %v4703_v38, 0.0 }
 0x3a2   : > { %v3342_v44 = vmax.f32 %v4704_v31, 0.0  ;;  %v3341_v22 = vmax.f32 %v4673_v48, 0.0 }
 0x3a3   : > { %v3384_v56 = vpack.c.bf16 %v3340_v41, %v3336_v52  ;;  %v3343_v58 = vmax.f32 %v4705_v39, 0.0 }
 0x3a4   : > { %v3386_v60 = vpack.c.bf16 %v3342_v44, %v3338_v37  ;;  %v3385_v23 = vpack.c.bf16 %v3341_v22, %v3337_v21  ;;  %v3049_v24 = vpop.f32.mrb[84].mxu0 }
 0x3a5   : > { %v3387_v61 = vpack.c.bf16 %v3343_v58, %v3339_v55  ;;  %v4674_v63 = vadd.f32 %v3049_v24, %v6178_v10  ;;  %v3275_v2 = vpop.f32.mrb[84].mxu1  ;;  %v3051_v13 = vpop.f32.mrb[85].mxu0 }
 0x3a6   : > { %v4706_v1 = vadd.f32 %v3275_v2, %v6181_v11  ;;  %v4675_v3 = vadd.f32 %v3051_v13, %v6184_v40  ;;  %v3277_v4 = vpop.f32.mrb[85].mxu1  ;;  %v3053_v5 = vpop.f32.mrb[86].mxu0  ;;  %3721 = vmatprep.mubr.bf16.mxu0 %v3385_v23 }
 0x3a7   : > { %v4707_v6 = vadd.f32 %v3277_v4, %v6187_v43  ;;  %v4676_v8 = vadd.f32 %v3053_v5, %v6178_v10  ;;  %v3279_v15 = vpop.f32.mrb[86].mxu1  ;;  %3818 = vmatprep.mubr.bf16.mxu1 %v3387_v61  ;;  %v3055_v62 = vpop.f32.mrb[87].mxu0  ;;  %3722 = vmatmul.mubr.bf16.gmra.mrb[112].mxu0 %v3384_v56  ;;  %v3344_v17 = vmax.f32 %v4674_v63, 0.0 }
 0x3a8   : > { %v4708_v14 = vadd.f32 %v3279_v15, %v6181_v11  ;;  %v4677_v16 = vadd.f32 %v3055_v62, %v6184_v40  ;;  %v3281_v47 = vpop.f32.mrb[87].mxu1  ;;  %3819 = vmatmul.mubr.bf16.gmra.mrb[112].mxu1 %v3386_v60  ;;  %v3346_v53 = vmax.f32 %v4706_v1, 0.0  ;;  %v3345_v18 = vmax.f32 %v4675_v3, 0.0 }
 0x3a9   : > { %v3348_v57 = vmax.f32 %v4676_v8, 0.0  ;;  %v4709_v33 = vadd.f32 %v3281_v47, %v6187_v43  ;;  %v3347_v25 = vmax.f32 %v4707_v6, 0.0 }
 0x3aa   : > { %v3350_v19 = vmax.f32 %v4708_v14, 0.0  ;;  %v3349_v29 = vmax.f32 %v4677_v16, 0.0 }
 0x3ab   : > { %v3388_v26 = vpack.c.bf16 %v3348_v57, %v3344_v17  ;;  %v3351_v0 = vmax.f32 %v4709_v33, 0.0 }
 0x3ac   : > { %v3390_v12 = vpack.c.bf16 %v3350_v19, %v3346_v53  ;;  %v3389_v27 = vpack.c.bf16 %v3349_v29, %v3345_v18  ;;  %v3059_v9 = vpop.f32.mrb[88].mxu0 }
 0x3ad   : > { %v3391_v30 = vpack.c.bf16 %v3351_v0, %v3347_v25  ;;  %v4678_v32 = vadd.f32 %v3059_v9, %v6178_v10  ;;  %v3285_v34 = vpop.f32.mrb[88].mxu1  ;;  %v3061_v36 = vpop.f32.mrb[89].mxu0 }
 0x3ae   : > { %v4710_v49 = vadd.f32 %v3285_v34, %v6181_v11  ;;  %v4679_v59 = vadd.f32 %v3061_v36, %v6184_v40  ;;  %v3287_v7 = vpop.f32.mrb[89].mxu1  ;;  %v3063_v28 = vpop.f32.mrb[90].mxu0  ;;  %3729 = vmatprep.mubr.bf16.mxu0 %v3389_v27 }
 0x3af   : > { %v4711_v54 = vadd.f32 %v3287_v7, %v6187_v43  ;;  %v4680_v42 = vadd.f32 %v3063_v28, %v6178_v10  ;;  %v3289_v20 = vpop.f32.mrb[90].mxu1  ;;  %3826 = vmatprep.mubr.bf16.mxu1 %v3391_v30  ;;  %v3065_v50 = vpop.f32.mrb[91].mxu0  ;;  %3730 = vmatmul.mubr.bf16.gmra.mrb[116].mxu0 %v3388_v26  ;;  %v3352_v51 = vmax.f32 %v4678_v32, 0.0  ;;  %v6253_v26 = vld [vmem:[#allocation7 + $0x3] ss:$0 sm:$0xff] }
 0x3b0   : > { %v4712_v38 = vadd.f32 %v3289_v20, %v6181_v11  ;;  %v4681_v45 = vadd.f32 %v3065_v50, %v6184_v40  ;;  %v3291_v46 = vpop.f32.mrb[91].mxu1  ;;  %3827 = vmatmul.mubr.bf16.gmra.mrb[116].mxu1 %v3390_v12  ;;  %v3354_v35 = vmax.f32 %v4710_v49, 0.0  ;;  %v3353_v52 = vmax.f32 %v4679_v59, 0.0 }
 0x3b1   : > { %v3356_v31 = vmax.f32 %v4680_v42, 0.0  ;;  %v4713_v48 = vadd.f32 %v3291_v46, %v6187_v43  ;;  %v3355_v37 = vmax.f32 %v4711_v54, 0.0 }
 0x3b2   : > { %v3358_v41 = vmax.f32 %v4712_v38, 0.0  ;;  %v3357_v39 = vmax.f32 %v4681_v45, 0.0 }
 0x3b3   : > { %v3392_v21 = vpack.c.bf16 %v3356_v31, %v3352_v51  ;;  %v3359_v44 = vmax.f32 %v4713_v48, 0.0 }
 0x3b4   : > { %v3394_v22 = vpack.c.bf16 %v3358_v41, %v3354_v35  ;;  %v3393_v55 = vpack.c.bf16 %v3357_v39, %v3353_v52  ;;  %v3069_v56 = vpop.f32.mrb[92].mxu0 }
 0x3b5   : > { %v3395_v58 = vpack.c.bf16 %v3359_v44, %v3355_v37  ;;  %v4682_v60 = vadd.f32 %v3069_v56, %v6178_v10  ;;  %v3295_v23 = vpop.f32.mrb[92].mxu1  ;;  %v3071_v24 = vpop.f32.mrb[93].mxu0 }
 0x3b6   : > { %v4714_v61 = vadd.f32 %v3295_v23, %v6181_v11  ;;  %v4683_v63 = vadd.f32 %v3071_v24, %v6184_v40  ;;  %v3297_v2 = vpop.f32.mrb[93].mxu1  ;;  %v3073_v13 = vpop.f32.mrb[94].mxu0  ;;  %3737 = vmatprep.mubr.bf16.mxu0 %v3393_v55 }
 0x3b7   : > { %v4715_v1 = vadd.f32 %v3297_v2, %v6187_v43  ;;  %v4684_v3 = vadd.f32 %v3073_v13, %v6178_v10  ;;  %v3299_v4 = vpop.f32.mrb[94].mxu1  ;;  %3834 = vmatprep.mubr.bf16.mxu1 %v3395_v58  ;;  %v3075_v5 = vpop.f32.mrb[95].mxu0  ;;  %3738 = vmatmul.mubr.bf16.gmra.mrb[120].mxu0 %v3392_v21  ;;  %v3360_v62 = vmax.f32 %v4682_v60, 0.0 }
 0x3b8   : > { %v4716_v6 = vadd.f32 %v3299_v4, %v6181_v11  ;;  %v4685_v8 = vadd.f32 %v3075_v5, %v6184_v40  ;;  %v3301_v15 = vpop.f32.mrb[95].mxu1  ;;  %3835 = vmatmul.mubr.bf16.gmra.mrb[120].mxu1 %v3394_v22  ;;  %v3362_v47 = vmax.f32 %v4714_v61, 0.0  ;;  %v3361_v17 = vmax.f32 %v4683_v63, 0.0 }
 0x3b9   : > { %v3364_v14 = vmax.f32 %v4684_v3, 0.0  ;;  %v4717_v16 = vadd.f32 %v3301_v15, %v6187_v43  ;;  %v3363_v53 = vmax.f32 %v4715_v1, 0.0 }
 0x3ba   : > { %v3366_v57 = vmax.f32 %v4716_v6, 0.0  ;;  %v3365_v33 = vmax.f32 %v4685_v8, 0.0 }
 0x3bb   : > { %v3396_v10 = vpack.c.bf16 %v3364_v14, %v3360_v62  ;;  %v3367_v18 = vmax.f32 %v4717_v16, 0.0 }
 0x3bc   : > { %v3398_v19 = vpack.c.bf16 %v3366_v57, %v3362_v47  ;;  %v3397_v29 = vpack.c.bf16 %v3365_v33, %v3361_v17 }
 0x3bd   : > { %v3399_v25 = vpack.c.bf16 %v3367_v18, %v3363_v53 }
 0x3be   : > { %3745 = vmatprep.mubr.bf16.mxu0 %v3397_v29 }
 0x3bf   : > { %3842 = vmatprep.mubr.bf16.mxu1 %v3399_v25  ;;  %3746 = vmatmul.mubr.bf16.gmra.mrb[124].mxu0 %v3396_v10 }
 0x3c0   : > { %3843 = vmatmul.mubr.bf16.gmra.mrb[124].mxu1 %v3398_v19 }
 0x45a   : > { %v4478_v11 = vpop.f32.mrb[96].mxu0 }
 0x45b   : > { %v4542_v40 = vpop.f32.mrb[96].mxu1  ;;  %v4479_v0 = vpop.f32.mrb[97].mxu0 }
 0x45c   : > { %v4480_v43 = vadd.f32 %v4479_v0, %v4478_v11  ;;  %v4543_v12 = vpop.f32.mrb[97].mxu1  ;;  %v4481_v27 = vpop.f32.mrb[98].mxu0 }
 0x45d   : > { %v4544_v9 = vadd.f32 %v4543_v12, %v4542_v40  ;;  %v4545_v30 = vpop.f32.mrb[98].mxu1  ;;  %v4482_v32 = vpop.f32.mrb[99].mxu0 }
 0x45e   : > { %v3692_v34 = vadd.f32 %v4480_v43, %v6253_v26  ;;  %v4483_v36 = vadd.f32 %v4482_v32, %v4481_v27  ;;  %v4546_v49 = vpop.f32.mrb[99].mxu1 }
 0x45f   : > { %v4547_v59 = vadd.f32 %v4546_v49, %v4545_v30 }
 0x460   : > { %v3789_v7 = vadd.f32 %v4544_v9, %v3692_v34  ;;  %v3695_v28 = vadd.f32 %v4483_v36, %v6253_v26 }
 0x462   : > { %v3792_v54 = vadd.f32 %v4547_v59, %v3695_v28  ;;  %v4484_v42 = vpop.f32.mrb[100].mxu0  ;;  %5343 = vtanh.f32 %v3789_v7 }
 0x463   : > { %v4548_v20 = vpop.f32.mrb[100].mxu1  ;;  %v4485_v50 = vpop.f32.mrb[101].mxu0 }
 0x464   : > { %5345 = vtanh.f32 %v3792_v54  ;;  %v4486_v38 = vadd.f32 %v4485_v50, %v4484_v42  ;;  %v4549_v45 = vpop.f32.mrb[101].mxu1  ;;  %v4487_v46 = vpop.f32.mrb[102].mxu0 }
 0x465   : > { %v4550_v51 = vadd.f32 %v4549_v45, %v4548_v20  ;;  %v4551_v31 = vpop.f32.mrb[102].mxu1  ;;  %v4488_v48 = vpop.f32.mrb[103].mxu0 }
 0x466   : > { %v3700_v35 = vadd.f32 %v4486_v38, %v6253_v26  ;;  %v4489_v52 = vadd.f32 %v4488_v48, %v4487_v46  ;;  %v4552_v41 = vpop.f32.mrb[103].mxu1 }
 0x467   : > { %v4553_v39 = vadd.f32 %v4552_v41, %v4551_v31 }
 0x468   : > { %v3797_v37 = vadd.f32 %v4550_v51, %v3700_v35  ;;  %v3703_v21 = vadd.f32 %v4489_v52, %v6253_v26 }
 0x46a   : > { %v3800_v44 = vadd.f32 %v4553_v39, %v3703_v21  ;;  %v4490_v22 = vpop.f32.mrb[104].mxu0  ;;  %5347 = vtanh.f32 %v3797_v37 }
 0x46b   : > { %v4554_v55 = vpop.f32.mrb[104].mxu1  ;;  %v4491_v56 = vpop.f32.mrb[105].mxu0 }
 0x46c   : > { %5349 = vtanh.f32 %v3800_v44  ;;  %v4492_v58 = vadd.f32 %v4491_v56, %v4490_v22  ;;  %v4555_v60 = vpop.f32.mrb[105].mxu1  ;;  %v4493_v23 = vpop.f32.mrb[106].mxu0 }
 0x46d   : > { %v5344_v24 = vpop.eup %5343  ;;  %v4556_v61 = vadd.f32 %v4555_v60, %v4554_v55  ;;  %v4557_v63 = vpop.f32.mrb[106].mxu1 }
 0x46e   : > { %v4494_v2 = vpop.f32.mrb[107].mxu0  ;;  %v5346_v13 = vpop.eup %5345  ;;  %v3708_v1 = vadd.f32 %v4492_v58, %v6253_v26 }
 0x46f   : > { %v4495_v3 = vadd.f32 %v4494_v2, %v4493_v23  ;;  %v4558_v4 = vpop.f32.mrb[107].mxu1  ;;  %v4418_v5 = vpack.c.bf16 %v5346_v13, %v5344_v24 }
 0x470   : > { %v4559_v6 = vadd.f32 %v4558_v4, %v4557_v63  ;;  %v3805_v8 = vadd.f32 %v4556_v61, %v3708_v1 }
 0x471   : > { %v3711_v15 = vadd.f32 %v4495_v3, %v6253_v26  ;;  %4419 = vst [vmem:[%s6264_s29] sm:$0xff] %v4418_v5  }
 0x472   : > { %v4496_v14 = vpop.f32.mrb[108].mxu0  ;;  %5351 = vtanh.f32 %v3805_v8 }
 0x473   : > { %v3808_v62 = vadd.f32 %v4559_v6, %v3711_v15  ;;  %v4560_v16 = vpop.f32.mrb[108].mxu1  ;;  %v4497_v47 = vpop.f32.mrb[109].mxu0 }
 0x474   : > { %v4498_v17 = vadd.f32 %v4497_v47, %v4496_v14  ;;  %v4561_v57 = vpop.f32.mrb[109].mxu1  ;;  %v4499_v33 = vpop.f32.mrb[110].mxu0 }
 0x475   : > { %5353 = vtanh.f32 %v3808_v62  ;;  %v5348_v53 = vpop.eup %5347  ;;  %v4562_v10 = vadd.f32 %v4561_v57, %v4560_v16  ;;  %v4563_v18 = vpop.f32.mrb[110].mxu1 }
 0x476   : > { %v4500_v19 = vpop.f32.mrb[111].mxu0  ;;  %v5350_v29 = vpop.eup %5349  ;;  %v3716_v25 = vadd.f32 %v4498_v17, %v6253_v26 }
 0x477   : > { %v4501_v11 = vadd.f32 %v4500_v19, %v4499_v33  ;;  %v4564_v40 = vpop.f32.mrb[111].mxu1  ;;  %v4423_v0 = vpack.c.bf16 %v5350_v29, %v5348_v53 }
 0x478   : > { %v4565_v43 = vadd.f32 %v4564_v40, %v4563_v18  ;;  %v3813_v12 = vadd.f32 %v4562_v10, %v3716_v25 }
 0x479   : > { %v3719_v27 = vadd.f32 %v4501_v11, %v6253_v26  ;;  %4455 = vst [vmem:[%s6264_s29 + $0x8] sm:$0xff] %v4423_v0  }
 0x47a   : > { %v4502_v30 = vpop.f32.mrb[112].mxu0  ;;  %5355 = vtanh.f32 %v3813_v12 }
 0x47b   : > { %v3816_v9 = vadd.f32 %v4565_v43, %v3719_v27  ;;  %v4566_v32 = vpop.f32.mrb[112].mxu1  ;;  %v4503_v34 = vpop.f32.mrb[113].mxu0 }
 0x47c   : > { %v4504_v36 = vadd.f32 %v4503_v34, %v4502_v30  ;;  %v4567_v49 = vpop.f32.mrb[113].mxu1  ;;  %v4505_v59 = vpop.f32.mrb[114].mxu0 }
 0x47d   : > { %5357 = vtanh.f32 %v3816_v9  ;;  %v5352_v7 = vpop.eup %5351  ;;  %v4568_v28 = vadd.f32 %v4567_v49, %v4566_v32  ;;  %v4569_v54 = vpop.f32.mrb[114].mxu1 }
 0x47e   : > { %v4506_v42 = vpop.f32.mrb[115].mxu0  ;;  %v3724_v50 = vadd.f32 %v4504_v36, %v6253_v26  ;;  %v4570_v45 = vpop.f32.mrb[115].mxu1 }
 0x47f   : > { %v5354_v20 = vpop.eup %5353  ;;  %v4507_v38 = vadd.f32 %v4506_v42, %v4505_v59  ;;  %v4571_v51 = vadd.f32 %v4570_v45, %v4569_v54 }
 0x480   : > { %v4428_v46 = vpack.c.bf16 %v5354_v20, %v5352_v7  ;;  %v3821_v31 = vadd.f32 %v4568_v28, %v3724_v50 }
 0x481   : > { %v3727_v48 = vadd.f32 %v4507_v38, %v6253_v26 }
 0x482   : > { %4456 = vst [vmem:[%s6264_s29 + $0x10] sm:$0xff] %v4428_v46   ;;  %v4508_v52 = vpop.f32.mrb[116].mxu0  ;;  %5359 = vtanh.f32 %v3821_v31 }
 0x483   : > { %v3824_v35 = vadd.f32 %v4571_v51, %v3727_v48  ;;  %v4572_v41 = vpop.f32.mrb[116].mxu1  ;;  %v4509_v39 = vpop.f32.mrb[117].mxu0 }
 0x484   : > { %v4510_v37 = vadd.f32 %v4509_v39, %v4508_v52  ;;  %v4573_v21 = vpop.f32.mrb[117].mxu1  ;;  %v4511_v44 = vpop.f32.mrb[118].mxu0 }
 0x485   : > { %5361 = vtanh.f32 %v3824_v35  ;;  %v5356_v22 = vpop.eup %5355  ;;  %v4574_v55 = vadd.f32 %v4573_v21, %v4572_v41  ;;  %v4575_v56 = vpop.f32.mrb[118].mxu1 }
 0x486   : > { %v4512_v58 = vpop.f32.mrb[119].mxu0  ;;  %v3732_v23 = vadd.f32 %v4510_v37, %v6253_v26  ;;  %v4576_v61 = vpop.f32.mrb[119].mxu1 }
 0x487   : > { %v5358_v60 = vpop.eup %5357  ;;  %v4513_v24 = vadd.f32 %v4512_v58, %v4511_v44  ;;  %v4577_v2 = vadd.f32 %v4576_v61, %v4575_v56 }
 0x488   : > { %v4433_v63 = vpack.c.bf16 %v5358_v60, %v5356_v22  ;;  %v3829_v13 = vadd.f32 %v4574_v55, %v3732_v23 }
 0x489   : > { %v3735_v1 = vadd.f32 %v4513_v24, %v6253_v26 }
 0x48a   : > { %4457 = vst [vmem:[%s6264_s29 + $0x18] sm:$0xff] %v4433_v63   ;;  %v4514_v4 = vpop.f32.mrb[120].mxu0  ;;  %5363 = vtanh.f32 %v3829_v13 }
 0x48b   : > { %v3832_v3 = vadd.f32 %v4577_v2, %v3735_v1  ;;  %v4578_v5 = vpop.f32.mrb[120].mxu1  ;;  %v4515_v6 = vpop.f32.mrb[121].mxu0 }
 0x48c   : > { %v4516_v8 = vadd.f32 %v4515_v6, %v4514_v4  ;;  %v4579_v15 = vpop.f32.mrb[121].mxu1  ;;  %v4517_v62 = vpop.f32.mrb[122].mxu0 }
 0x48d   : > { %5365 = vtanh.f32 %v3832_v3  ;;  %v5360_v14 = vpop.eup %5359  ;;  %v4580_v16 = vadd.f32 %v4579_v15, %v4578_v5  ;;  %v4581_v47 = vpop.f32.mrb[122].mxu1 }
 0x48e   : > { %v4518_v17 = vpop.f32.mrb[123].mxu0  ;;  %v3740_v33 = vadd.f32 %v4516_v8, %v6253_v26  ;;  %v4582_v10 = vpop.f32.mrb[123].mxu1 }
 0x48f   : > { %v5362_v57 = vpop.eup %5361  ;;  %v4519_v53 = vadd.f32 %v4518_v17, %v4517_v62  ;;  %v4583_v19 = vadd.f32 %v4582_v10, %v4581_v47 }
 0x490   : > { %v4438_v18 = vpack.c.bf16 %v5362_v57, %v5360_v14  ;;  %v3837_v29 = vadd.f32 %v4580_v16, %v3740_v33 }
 0x491   : > { %v3743_v25 = vadd.f32 %v4519_v53, %v6253_v26 }
 0x492   : > { %4458 = vst [vmem:[%s6264_s29 + $0x20] sm:$0xff] %v4438_v18   ;;  %v4520_v40 = vpop.f32.mrb[124].mxu0  ;;  %5367 = vtanh.f32 %v3837_v29 }
 0x493   : > { %v3840_v11 = vadd.f32 %v4583_v19, %v3743_v25  ;;  %v4584_v0 = vpop.f32.mrb[124].mxu1  ;;  %v4521_v43 = vpop.f32.mrb[125].mxu0 }
 0x494   : > { %v4522_v12 = vadd.f32 %v4521_v43, %v4520_v40  ;;  %v4585_v27 = vpop.f32.mrb[125].mxu1  ;;  %v4523_v9 = vpop.f32.mrb[126].mxu0 }
 0x495   : > { %5369 = vtanh.f32 %v3840_v11  ;;  %v5364_v30 = vpop.eup %5363  ;;  %v4586_v32 = vadd.f32 %v4585_v27, %v4584_v0  ;;  %v4587_v34 = vpop.f32.mrb[126].mxu1 }
 0x496   : > { %v4524_v36 = vpop.f32.mrb[127].mxu0  ;;  %v3748_v59 = vadd.f32 %v4522_v12, %v6253_v26  ;;  %v4588_v28 = vpop.f32.mrb[127].mxu1 }
 0x497   : > { %v5366_v49 = vpop.eup %5365  ;;  %v4525_v7 = vadd.f32 %v4524_v36, %v4523_v9  ;;  %v4589_v42 = vadd.f32 %v4588_v28, %v4587_v34 }
 0x498   : > { %v4443_v54 = vpack.c.bf16 %v5366_v49, %v5364_v30  ;;  %v3845_v20 = vadd.f32 %v4586_v32, %v3748_v59 }
 0x499   : > { %v3751_v50 = vadd.f32 %v4525_v7, %v6253_v26 }
 0x49a   : > { %4459 = vst [vmem:[%s6264_s29 + $0x28] sm:$0xff] %v4443_v54   ;;  %5371 = vtanh.f32 %v3845_v20 }
 0x49b   : > { %v3848_v38 = vadd.f32 %v4589_v42, %v3751_v50 }
 0x49c   : > { %v5368_v45 = vpop.eup %5367 }
 0x49d   : > { %5373 = vtanh.f32 %v3848_v38 }
 0x49f   : > { %v5370_v46 = vpop.eup %5369 }
 0x4a0   : > { %v4448_v51 = vpack.c.bf16 %v5370_v46, %v5368_v45 }
 0x4a2   : > { %4460 = vst [vmem:[%s6264_s29 + $0x30] sm:$0xff] %v4448_v51  }
 0x4a4   : > { %v5372_v31 = vpop.eup %5371 }
 0x4a7   : > { %v5374_v48 = vpop.eup %5373 }
 0x4a8   : > { %v4453_v26 = vpack.c.bf16 %v5374_v48, %v5372_v31 }
 0x4aa   : > { %4461 = vst [vmem:[%s6264_s29 + $0x38] sm:$0xff] %v4453_v26  }
 0x4ab   : > { %5472 = shalt.err (!%p5469_p9)
}
 0x4ac   : > { %s5473_s17 = scalar_lea.hbm %s6288_s15, 1024  ;;  %s5477_s18 = scalar_lea.hbm %s6342_s6, 2048 }
 0x4ad   : > { %p5474_p2 = scmp.ne.s32.totalorder %s6288_s15, %s5473_s17  ;;  %p5478_p4 = scmp.lt.u32.totalorder %s6288_s15, %s6342_s6 }
 0x4ae   : > { %p5479_p5 = scmp.lt.u32.totalorder %s5477_s18, %s5473_s17  ;;  %p5481_p12 = scmp.lt.u32.totalorder %s5473_s17, %s6288_s15 }
 0x4af   : > { %p5475_p3 = pnand %p5474_p2, %p6359_p7 }
 0x4b0   : > { %p5480_p10 = por %p5479_p5, %p5478_p4 }
 0x4b1   : > { %p5476_p0 = pneg %p5475_p3 }
 0x4b2   : > { %p5482_p8 = por %p5481_p12, %p5480_p10 }
 0x4b4   : > { %p5483_p11 = pnand %p5482_p8, %p5476_p0 }
 0x4b6   : > { %5486 = shalt.err (!%p5483_p11)
}
 0x4b7   : > { %s5538_s26 = smov 64   ;;  %s5539_s29 = smov 4  }
 0x4b8   : > { %4858 = dma.vmem_to_hbm [thread:$0]  (%p6359_p7), %s6290_s13, 1024, %s6288_s15, %s6295_s12, %s5538_s26, %s5538_s26, %s5539_s29  }
 0x4b9 PF: > { %p4880_p13 = scmp.ge.s32.totalorder %s5529_s24, 2  ;;  %s3976_s10 = sand.u32 1, %s5517_s21  }
 0x4ba   : > { %p6360_p1 = scmp.ne.s32.totalorder %s6350_s8, 0  ;;  %s3977_s11 = scalar_lea.sflag [#allocation4], %s3976_s10 }
 0x4bc   : > { %p4871_p6 = pnand %p4880_p13, %p6360_p1 }
 0x4be   : > { %5512 = dma.done.wait (!%p4871_p6), %s3977_s11, 1024  }
 0x4bf   : > { %5514 = vsyncadd (!%p4871_p6), %s3977_s11, 4294966272  ;;  %s6361_s14 = sld [smem:[#allocation12_spill]]  ;;  %s6362_s23 = sld [smem:[#allocation13_spill]] }
 0x4c0   : > { %p18_p9 = scmp.ge.s32.totalorder %s5600_s27, 4   ;;  %s6363_s21 = smov %s5521_s22 }
 0x4c1   : > { %s6365_s24 = smov %s5600_s27 }
 0x4c2   :  { %20 = sbr.rel (!%p18_p9) target bundleno = 5 (0x5), region = 94 }
 0x4c5   : > { %s6364_s22 = smov %s6361_s14 }
 0x4c9   :  { %3982 = vsyncpa [#allocation3], 1 }
 0x4ca   :  { %3984 = vsyncpa [#allocation3 + $0x1], 1 }
 0x4cb   :  { %3985 = vsyncpa [#allocation6], 1 }
 0x4cc   :  { %3986 = vsyncpa [#allocation4], 1 }
 0x4cd   :  { %3988 = vsyncpa [#allocation4 + $0x1], 1 }

// kernel: tpu_custom_call.1
= control target key start
LH: loop header
LB: loop body
LE: loop exit
PB: predicated region body
PF: predicated region fallthrough
CT: control target
= control target key end

     0   :  { %11 = vsyncpa [#allocation3], 0  ;;  %s6336_s0 = inlined_call_operand.vmem [shape: f32[256,10], index: 0, kind: input, shape index: {}]   ;;  %s6337_s1 = inlined_call_operand.vmem [shape: bf16[10,512], index: 1, kind: input, shape index: {}]   ;;  %s6338_s2 = inlined_call_operand.hbm [shape: bf16[512,512], index: 2, kind: input, shape index: {}]   ;;  %s6339_s3 = inlined_call_operand.hbm [shape: bf16[512,512], index: 3, kind: input, shape index: {}]   ;;  %s6340_s4 = inlined_call_operand.vmem [shape: bf16[512,128], index: 4, kind: input, shape index: {}]   ;;  %s6341_s5 = inlined_call_operand.hbm [shape: f32[8,512], index: 5, kind: input, shape index: {}]   ;;  %s6342_s6 = inlined_call_operand.hbm [shape: bf16[256,128], index: 6, kind: output, shape index: {}]  }
   0x1   :  { %12 = vsyncpa [#allocation6], 0 }
   0x2   :  { %13 = vsyncpa [#allocation4], 0 }
   0x3   :  { %15 = vsyncpa [#allocation4 + $0x1], 0  ;;  %s5575_s21 = smov 0   ;;  %s5577_s22 = smov 0  }
   0x4   :  { %s5579_s23 = smov 0   ;;  %s5581_s24 = smov 0  }
   0x5 LB: > { %6347 = sst [smem:[#allocation12_spill]] %s5525_s23  ;;  %s5596_s25 = sadd.s32 4294967295, %s5529_s24   ;;  %s5529_s24 = sphi %s5581_s24, %s6365_s24   ;;  %s5525_s23 = sphi %s5579_s23, %s6362_s23   ;;  %s5521_s22 = sphi %s5577_s22, %s6364_s22   ;;  %s5517_s21 = sphi %s5575_s21, %s6363_s21  }
   0x6   : > { %s4054_s26 = sadd.s32 4294967294, %s5529_s24   ;;  %s5600_s27 = sadd.s32 1, %s5529_s24  }
   0x7   : > { %s159_s28 = sadd.s32 1, %s5525_s23  ;;  %s156_s29 = ssub.s32 %s5529_s24, %s5600_s27 }
   0x8   : > { %p169_p0 = scmp.ne.s32.totalorder %s5525_s23, %s5521_s22  ;;  %p157_p1 = scmp.eq.s32.totalorder %s156_s29, 0 }
   0x9   : > { %p170_p2 = scmp.eq.s32.totalorder %s5596_s25, 1  ;;  %p175_p3 = scmp.ne.s32.totalorder %s5521_s22, %s5517_s21 }
   0xa   : > { %p176_p4 = scmp.eq.s32.totalorder %s4054_s26, 1  ;;  %p4055_p7 = scmp.ge.s32.totalorder %s5529_s24, 1 }
   0xb   : > { %s5611_s30 = scalar_select %p157_p1, %s5525_s23, %s159_s28  }
   0xc   : > { %p5613_p5 = por %p170_p2, %p169_p0  ;;  %p5617_p6 = por %p176_p4, %p175_p3 }
   0xd   : > { %6348 = sst [smem:[#allocation13_spill]] %s5611_s30  ;;  %p183_p8 = scmp.lt.s32.totalorder %s5529_s24, 3 }
   0xe   : > { %s6349_s7 = scalar_select %p5613_p5, 1, 0 }
   0xf   : > { %s6350_s8 = scalar_select %p5617_p6, 1, 0 }
  0x10   : > { %p6343_p9 = scmp.eq.s32.totalorder %s5596_s25, 0  ;;  %p5624_p10 = pnand %p4055_p7, %p183_p8 }
  0x11   : > { %s5531_s10 = smov [#allocation5]   ;;  %s5532_s13 = smov [#allocation2]  }
  0x12   : > { %s6351_s9 = scalar_select %p5624_p10, 1, 0 }
  0x13   : > { %p4860_p11 = pneg %p5624_p10  ;;  %s211_s11 = sshll.u32 %s5531_s10, 4  ;;  %s5630_s11 = int_to_ptr.vmem [resolvable:$true] %s211_s11 }
  0x14   : > { %s198_s14 = sshll.u32 %s5532_s13, 4  ;;  %s5533_s15 = smov [#allocation7]   ;;  %s5638_s14 = int_to_ptr.vmem [resolvable:$true] %s198_s14 }
  0x15   : > { %p5634_p12 = pnand %p6343_p9, %p4860_p11  ;;  %s5640_s16 = sshll.u32 %s5533_s15, 4  ;;  %s229_s16 = int_to_ptr.vmem [resolvable:$true] %s5640_s16 }
  0x16   : > { %s5375_s19 = scalar_lea.hbm %s6339_s3, 16384 }
  0x17   : > { %p5376_p13 = scmp.ne.s32.totalorder %s6339_s3, %s5375_s19  ;;  %p5650_p0 = pneg %p5634_p12 }
  0x18   : > { %p5382_p3 = scmp.lt.u32.totalorder %s5375_s19, %s6339_s3 }
  0x19   : > { %p5378_p1 = pnand %p5650_p0, %p5376_p13 }
  0x1b   : > { %p5379_p2 = pneg %p5378_p1 }
  0x1d   : > { %p5384_p4 = pnand %p5382_p3, %p5379_p2 }
  0x1f   : > { %5387 = shalt.err (!%p5384_p4)
}
  0x20   : > { %s5388_s13 = scalar_lea.vmem %s5630_s11, 16384  ;;  %p5396_p9 = scmp.lt.s32.totalorder %s5630_s11, %s5630_s11 }
  0x21   : > { %p5389_p7 = scmp.ne.s32.totalorder %s5630_s11, %s5388_s13  ;;  %p5397_p6 = scmp.lt.s32.totalorder %s5388_s13, %s5388_s13 }
  0x23   : > { %p5391_p8 = pnand %p5389_p7, %p5650_p0  ;;  %p5398_p13 = por %p5397_p6, %p5396_p9 }
  0x25   : > { %p5392_p11 = pneg %p5391_p8 }
  0x27   : > { %p5399_p1 = pnand %p5398_p13, %p5392_p11 }
  0x29   : > { %5402 = shalt.err (!%p5399_p1)
}
  0x2a   : > { %s5534_s15 = smov 256   ;;  %s5535_s17 = smov 16  }
  0x2b   : > { %4866 = dma.hbm_to_vmem [thread:$0]  (!%p5634_p12), %s6339_s3, 16384, %s5630_s11, [#allocation6], %s5534_s15, %s5534_s15, %s5535_s17  }
  0x2c   : > { %s5403_s29 = scalar_lea.hbm %s6338_s2, 16384 }
  0x2d   : > { %p5404_p6 = scmp.ne.s32.totalorder %s6338_s2, %s5403_s29  ;;  %p5410_p3 = scmp.lt.u32.totalorder %s5403_s29, %s6338_s2 }
  0x2f   : > { %p5406_p9 = pnand %p5404_p6, %p5650_p0 }
  0x31   : > { %p5407_p2 = pneg %p5406_p9 }
  0x33   : > { %p5412_p4 = pnand %p5410_p3, %p5407_p2 }
  0x35   : > { %5415 = shalt.err (!%p5412_p4)
}
  0x36   : > { %s5416_s11 = scalar_lea.vmem %s5638_s14, 16384  ;;  %p5424_p13 = scmp.lt.s32.totalorder %s5638_s14, %s5638_s14 }
  0x37   : > { %p5417_p7 = scmp.ne.s32.totalorder %s5638_s14, %s5416_s11  ;;  %p5425_p1 = scmp.lt.s32.totalorder %s5416_s11, %s5416_s11 }
  0x39   : > { %p5419_p8 = pnand %p5417_p7, %p5650_p0  ;;  %p5426_p6 = por %p5425_p1, %p5424_p13 }
  0x3b   : > { %p5420_p11 = pneg %p5419_p8 }
  0x3d   : > { %p5427_p9 = pnand %p5426_p6, %p5420_p11 }
  0x3f   : > { %5430 = shalt.err (!%p5427_p9)
}
  0x40   : > { %4863 = dma.hbm_to_vmem [thread:$0]  (!%p5634_p12), %s6338_s2, 16384, %s5638_s14, [#allocation3], %s5534_s15, %s5534_s15, %s5535_s17  }
  0x41   : > { %s5431_s20 = scalar_lea.hbm %s6341_s5, 512 }
  0x42   : > { %p5432_p2 = scmp.ne.s32.totalorder %s6341_s5, %s5431_s20  ;;  %p5438_p7 = scmp.lt.u32.totalorder %s5431_s20, %s6341_s5 }
  0x44   : > { %p5434_p3 = pnand %p5432_p2, %p5650_p0 }
  0x46   : > { %p5435_p4 = pneg %p5434_p3 }
  0x48   : > { %p5440_p8 = pnand %p5438_p7, %p5435_p4 }
  0x4a   : > { %5443 = shalt.err (!%p5440_p8)
}
  0x4b   : > { %s5444_s11 = scalar_lea.vmem %s229_s16, 512  ;;  %p5452_p6 = scmp.lt.s32.totalorder %s229_s16, %s229_s16 }
  0x4c   : > { %p5445_p11 = scmp.ne.s32.totalorder %s229_s16, %s5444_s11  ;;  %p5453_p9 = scmp.lt.s32.totalorder %s5444_s11, %s5444_s11 }
  0x4e   : > { %p5447_p13 = pnand %p5445_p11, %p5650_p0  ;;  %p5454_p5 = por %p5453_p9, %p5452_p6 }
  0x50   : > { %p5448_p1 = pneg %p5447_p13 }
  0x52   : > { %p5455_p10 = pnand %p5454_p5, %p5448_p1 }
  0x54   : > { %5458 = shalt.err (!%p5455_p10)
}
  0x55   : > { %4869 = dma.hbm_to_vmem [thread:$0]  (!%p5634_p12), %s6341_s5, 512, %s229_s16, [#allocation6]  }
  0x56   : > { %p6354_p2 = scmp.ne.s32.totalorder %s6351_s9, 0 }
  0x57   : > { %p6355_p3 = scmp.eq.s32.totalorder (!%p6354_p2), %s5596_s25, 0 }
  0x58   : > { %250 = sbr.rel (%p6354_p2) target bundleno = 1209 (0x4b9), region = 44 }
  0x5f   : > { %5504 = dma.done.wait (%p6355_p3), [#allocation3], 16384   ;;  %p6356_p0 = pmov %p6355_p3 }
  0x61   : > { %5506 = vsyncadd (%p6356_p0), [#allocation3], 4294950912  ;;  %p6357_p4 = pmov %p6356_p0 }
  0x62   : > { %p6358_p5 = pmov %p6356_p0 }
  0x63   : > { %5508 = dma.done.wait (%p6357_p4), [#allocation6], 16896  }
  0x64   : > { %5510 = vsyncadd (%p6358_p5), [#allocation6], 4294950400  ;;  %s4065_s12 = sshll.u32 %s5596_s25, 4  ;;  %v5536_v0 = vmov 0   ;;  %vm387_vm0 = vcmask 1044480   ;;  %vm362_vm1 = vcmask 80896  }
  0x65   : > { %432 = vmatprep.mubr.bf16.mxu0 %v5536_v0  ;;  %p289_p10 = scmp.lt.s32.totalorder %s4065_s12, 31  ;;  %545 = vmatprep.mubr.bf16.mxu1 %v5536_v0  ;;  %v4921_v1 = vld [vmem:[%s6337_s1 + $0x4] ss:$16 sps:$4 sm:$0x1f]   ;;  %v4927_v11 = vld [vmem:[#allocation2] ss:$16 sps:$4 sm:$0xff]  }
  0x66   : > { %v4923_v2 = vld [vmem:[%s6337_s1] ss:$16 sps:$4 sm:$0x1f]   ;;  %4071 = vmatprep.subr.msk.bf16.mxu0 %vm387_vm0, %v4921_v1  ;;  %v4924_v9 = vld [vmem:[%s6337_s1 + $0xc] ss:$16 sps:$4 sm:$0x1f]  }
  0x67   : > { %s6367_s12 = smov (!%p289_p10, %s4065_s12), 31  ;;  %v389_v5 = vsel %vm387_vm0, %v4923_v2, 0  ;;  %v4926_v10 = vld [vmem:[%s6337_s1 + $0x8] ss:$16 sps:$4 sm:$0x1f]   ;;  %4080 = vmatprep.subr.msk.bf16.mxu1 %vm387_vm0, %v4924_v9  ;;  %s285_s20 = sand.u32 1, %s5521_s22  }
  0x68   : > { %s4066_s9 = sshll.u32 %s6367_s12, 3  ;;  %401 = vmatpush1.bf16.msra.mxu0 %v389_v5  ;;  %v4929_v12 = vld [vmem:[#allocation2 + $0x4] ss:$16 sps:$4 sm:$0xff]   ;;  %v395_v13 = vsel %vm387_vm0, %v4926_v10, 0  ;;  %v4932_v14 = vld [vmem:[#allocation2 + $0xc] ss:$16 sps:$4 sm:$0xff]  }
  0x69   : > { %s5729_s17 = scalar_lea.vmem %s6336_s0, %s4066_s9  ;;  %514 = vmatpush1.bf16.msra.mxu1 %v395_v13  ;;  %1513 = vmatprep.subr.bf16.mxu0 %v4929_v12  ;;  %v4930_v16 = vld [vmem:[#allocation2 + $0x8] ss:$16 sps:$4 sm:$0xff]   ;;  %v4935_v17 = vld [vmem:[#allocation2 + $0x24] ss:$16 sps:$4 sm:$0xff]   ;;  %v4933_v18 = vld [vmem:[#allocation2 + $0x20] ss:$16 sps:$4 sm:$0xff]  }
  0x6a   : > { %v296_v3 = vld [vmem:[%s5729_s17] sm:$0xff]  ;;  %v297_v4 = vld [vmem:[%s5729_s17 + $0x8] sm:$0xff]  ;;  %v298_v7 = vld [vmem:[%s5729_s17 + $0x10] sm:$0xff]  ;;  %1739 = vmatprep.subr.bf16.mxu1 %v4932_v14  ;;  %s4064_s26 = sshll.u32 %s285_s20, 6  ;;  %s4414_s10 = sshll.u32 %s5596_s25, 10 }
  0x6b   : > { %v312_v6 = vpack.c.bf16 %v297_v4, %v296_v3  ;;  %v299_v8 = vld [vmem:[%s5729_s17 + $0x18] sm:$0xff]  ;;  %v300_v20 = vld [vmem:[%s5729_s17 + $0x20] sm:$0xff]  ;;  %v301_v22 = vld [vmem:[%s5729_s17 + $0x28] sm:$0xff]  ;;  %s6264_s29 = scalar_lea.vmem [#allocation8], %s4064_s26  ;;  %s6288_s15 = scalar_lea.hbm %s6342_s6, %s4414_s10 }
  0x6c   : > { %v313_v15 = vpack.c.bf16 %v299_v8, %v298_v7  ;;  %v4938_v19 = vld [vmem:[#allocation2 + $0x2c] ss:$16 sps:$4 sm:$0xff]   ;;  %v4941_v21 = vld [vmem:[#allocation2 + $0x44] ss:$16 sps:$4 sm:$0xff]   ;;  %v4936_v23 = vld [vmem:[#allocation2 + $0x28] ss:$16 sps:$4 sm:$0xff]   ;;  %v314_v27 = vpack.c.bf16 %v301_v22, %v300_v20 }
  0x6d   : > { %4072 = vmatmul.mubr.msk.bf16.vlgmr.msra.gmra.mrb[0].mxu0 %vm362_vm1, %v312_v6  ;;  %4081 = vmatmul.mubr.msk.bf16.vlgmr.msra.gmra.mrb[0].mxu1 %vm362_vm1, %v312_v6  ;;  %v4939_v24 = vld [vmem:[#allocation2 + $0x40] ss:$16 sps:$4 sm:$0xff]   ;;  %v4944_v25 = vld [vmem:[#allocation2 + $0x4c] ss:$16 sps:$4 sm:$0xff]   ;;  %v4947_v26 = vld [vmem:[#allocation2 + $0x64] ss:$16 sps:$4 sm:$0xff]  }
  0x6e   : > { %442 = vmatprep.mubr.bf16.mxu0 %v5536_v0  ;;  %1514 = vmatpush1.bf16.msra.mxu0 %v4927_v11  ;;  %v4942_v28 = vld [vmem:[#allocation2 + $0x48] ss:$16 sps:$4 sm:$0xff]   ;;  %v4945_v29 = vld [vmem:[#allocation2 + $0x60] ss:$16 sps:$4 sm:$0xff]   ;;  %v4950_v30 = vld [vmem:[#allocation2 + $0x6c] ss:$16 sps:$4 sm:$0xff]  }
  0x6f   : > { %1515 = vmatprep.subr.bf16.mxu0 %v4935_v17  ;;  %555 = vmatprep.mubr.bf16.mxu1 %v5536_v0  ;;  %v302_v31 = vld [vmem:[%s5729_s17 + $0x30] sm:$0xff]  ;;  %v303_v33 = vld [vmem:[%s5729_s17 + $0x38] sm:$0xff]  ;;  %v304_v42 = vld [vmem:[%s5729_s17 + $0x40] sm:$0xff]  ;;  %s3961_s13 = sshll.u32 %s6264_s29, 4  ;;  %s6295_s12 = scalar_lea.sflag [#allocation4], %s285_s20  ;;  %s6290_s13 = int_to_ptr.vmem [resolvable:$true] %s3961_s13 }
  0x70   : > { %1740 = vmatpush1.bf16.msra.mxu1 %v4930_v16  ;;  %v4953_v32 = vld [vmem:[#allocation2 + $0x84] ss:$16 sps:$4 sm:$0xff]   ;;  %v4948_v34 = vld [vmem:[#allocation2 + $0x68] ss:$16 sps:$4 sm:$0xff]   ;;  %v4951_v35 = vld [vmem:[#allocation2 + $0x80] ss:$16 sps:$4 sm:$0xff]   ;;  %v315_v38 = vpack.c.bf16 %v303_v33, %v302_v31  ;;  %v326_v33 = vlaneseq }
  0x71   : > { %1741 = vmatprep.subr.bf16.mxu1 %v4938_v19  ;;  %v4956_v36 = vld [vmem:[#allocation2 + $0x8c] ss:$16 sps:$4 sm:$0xff]   ;;  %v4959_v37 = vld [vmem:[#allocation2 + $0xa4] ss:$16 sps:$4 sm:$0xff]   ;;  %v4954_v39 = vld [vmem:[#allocation2 + $0x88] ss:$16 sps:$4 sm:$0xff]  }
  0x72   : > { %1516 = vmatpush1.bf16.msra.mxu0 %v4933_v18  ;;  %v4957_v40 = vld [vmem:[#allocation2 + $0xa0] ss:$16 sps:$4 sm:$0xff]   ;;  %v4962_v41 = vld [vmem:[#allocation2 + $0xac] ss:$16 sps:$4 sm:$0xff]   ;;  %v4965_v43 = vld [vmem:[#allocation2 + $0xc4] ss:$16 sps:$4 sm:$0xff]  }
  0x73   : > { %1517 = vmatprep.subr.bf16.mxu0 %v4941_v21  ;;  %v305_v44 = vld [vmem:[%s5729_s17 + $0x48] sm:$0xff]  ;;  %v4963_v46 = vld [vmem:[#allocation2 + $0xc0] ss:$16 sps:$4 sm:$0xff]   ;;  %v4971_v48 = vld [vmem:[#allocation2 + $0xe4] ss:$16 sps:$4 sm:$0xff]   ;;  %s5459_s9 = scalar_lea.vmem %s6290_s13, 1024 }
  0x74   : > { %1742 = vmatpush1.bf16.msra.mxu1 %v4936_v23  ;;  %v4960_v45 = vld [vmem:[#allocation2 + $0xa8] ss:$16 sps:$4 sm:$0xff]   ;;  %v4968_v47 = vld [vmem:[#allocation2 + $0xcc] ss:$16 sps:$4 sm:$0xff]   ;;  %v316_v49 = vpack.c.bf16 %v305_v44, %v304_v42  ;;  %v4969_v51 = vld [vmem:[#allocation2 + $0xe0] ss:$16 sps:$4 sm:$0xff]   ;;  %p5460_p12 = scmp.ne.s32.totalorder %s6290_s13, %s5459_s9 }
  0x75   : > { %4073 = vmatmul.mubr.msk.bf16.gmra.mrb[4].mxu0 %vm362_vm1, %v313_v15  ;;  %1743 = vmatprep.subr.bf16.mxu1 %v4944_v25  ;;  %v4966_v50 = vld [vmem:[#allocation2 + $0xc8] ss:$16 sps:$4 sm:$0xff]   ;;  %v4974_v52 = vld [vmem:[#allocation2 + $0xec] ss:$16 sps:$4 sm:$0xff]   ;;  %v306_v53 = vld [vmem:[%s5729_s17 + $0x50] sm:$0xff]  ;;  %p6359_p7 = scmp.ne.s32.totalorder %s6349_s7, 0 }
  0x76   : > { %452 = vmatprep.mubr.bf16.mxu0 %v5536_v0  ;;  %1518 = vmatpush1.bf16.msra.mxu0 %v4939_v24  ;;  %v4977_v54 = vld [vmem:[#allocation2 + $0x104] ss:$16 sps:$4 sm:$0xff]   ;;  %v307_v55 = vld [vmem:[%s5729_s17 + $0x58] sm:$0xff]  ;;  %v4975_v57 = vld [vmem:[#allocation2 + $0x100] ss:$16 sps:$4 sm:$0xff]   ;;  %s5537_s25 = smov [#allocation8]  }
  0x77   : > { %4082 = vmatmul.mubr.msk.bf16.gmra.mrb[4].mxu1 %vm362_vm1, %v313_v15  ;;  %1519 = vmatprep.subr.bf16.mxu0 %v4947_v26  ;;  %v4972_v56 = vld [vmem:[#allocation2 + $0xe8] ss:$16 sps:$4 sm:$0xff]   ;;  %v4980_v58 = vld [vmem:[#allocation2 + $0x10c] ss:$16 sps:$4 sm:$0xff]   ;;  %v4983_v59 = vld [vmem:[#allocation2 + $0x124] ss:$16 sps:$4 sm:$0xff]   ;;  %v317_v60 = vpack.c.bf16 %v307_v55, %v306_v53  ;;  %p5461_p8 = pnand %p5460_p12, %p6359_p7 }
  0x78   : > { %565 = vmatprep.mubr.bf16.mxu1 %v5536_v0  ;;  %1744 = vmatpush1.bf16.msra.mxu1 %v4942_v28  ;;  %v4978_v61 = vld [vmem:[#allocation2 + $0x108] ss:$16 sps:$4 sm:$0xff]   ;;  %v4981_v62 = vld [vmem:[#allocation2 + $0x120] ss:$16 sps:$4 sm:$0xff]   ;;  %v4986_v63 = vld [vmem:[#allocation2 + $0x12c] ss:$16 sps:$4 sm:$0xff]  }
  0x79   : > { %1745 = vmatprep.subr.bf16.mxu1 %v4950_v30  ;;  %v4989_v1 = vld [vmem:[#allocation2 + $0x144] ss:$16 sps:$4 sm:$0xff]   ;;  %v309_v3 = vld [vmem:[%s5729_s17 + $0x68] sm:$0xff]  ;;  %v4987_v5 = vld [vmem:[#allocation2 + $0x140] ss:$16 sps:$4 sm:$0xff]   ;;  %p5462_p11 = pneg %p5461_p8  ;;  %s5463_s16 = sshll.u32 %s5537_s25, 4  ;;  %s5464_s16 = int_to_ptr.vmem [resolvable:$false] %s5463_s16 }
  0x7a   : > { %1520 = vmatpush1.bf16.msra.mxu0 %v4945_v29  ;;  %v308_v2 = vld [vmem:[%s5729_s17 + $0x60] sm:$0xff]  ;;  %v4984_v4 = vld [vmem:[#allocation2 + $0x128] ss:$16 sps:$4 sm:$0xff]   ;;  %v4992_v6 = vld [vmem:[#allocation2 + $0x14c] ss:$16 sps:$4 sm:$0xff]   ;;  %s5465_s28 = scalar_lea.vmem %s5464_s16, 2048  ;;  %p5466_p13 = scmp.lt.s32.totalorder %s6290_s13, %s5464_s16 }
  0x7b   : > { %1521 = vmatprep.subr.bf16.mxu0 %v4953_v32  ;;  %v4995_v7 = vld [vmem:[#allocation2 + $0x164] ss:$16 sps:$4 sm:$0xff]   ;;  %v4990_v8 = vld [vmem:[#allocation2 + $0x148] ss:$16 sps:$4 sm:$0xff]   ;;  %v318_v9 = vpack.c.bf16 %v309_v3, %v308_v2  ;;  %v4993_v10 = vld [vmem:[#allocation2 + $0x160] ss:$16 sps:$4 sm:$0xff]   ;;  %p5467_p1 = scmp.lt.s32.totalorder %s5465_s28, %s5459_s9 }
  0x7c   : > { %1746 = vmatpush1.bf16.msra.mxu1 %v4948_v34  ;;  %v4998_v11 = vld [vmem:[#allocation2 + $0x16c] ss:$16 sps:$4 sm:$0xff]   ;;  %v5001_v12 = vld [vmem:[#allocation2 + $0x184] ss:$16 sps:$4 sm:$0xff]   ;;  %v4996_v15 = vld [vmem:[#allocation2 + $0x168] ss:$16 sps:$4 sm:$0xff]  }
  0x7d   : > { %4074 = vmatmul.mubr.msk.bf16.gmra.mrb[8].mxu0 %vm362_vm1, %v314_v27  ;;  %1747 = vmatprep.subr.bf16.mxu1 %v4956_v36  ;;  %v310_v13 = vld [vmem:[%s5729_s17 + $0x70] sm:$0xff]  ;;  %v311_v14 = vld [vmem:[%s5729_s17 + $0x78] sm:$0xff]  ;;  %v327_v34 = vshrl.u32 %v326_v33, 7  ;;  %p5468_p6 = por %p5467_p1, %p5466_p13 }
  0x7e   : > { %462 = vmatprep.mubr.bf16.mxu0 %v5536_v0  ;;  %1522 = vmatpush1.bf16.msra.mxu0 %v4951_v35  ;;  %v4999_v16 = vld [vmem:[#allocation2 + $0x180] ss:$16 sps:$4 sm:$0xff]   ;;  %v5004_v17 = vld [vmem:[#allocation2 + $0x18c] ss:$16 sps:$4 sm:$0xff]   ;;  %v5007_v18 = vld [vmem:[#allocation2 + $0x1a4] ss:$16 sps:$4 sm:$0xff]   ;;  %v319_v20 = vpack.c.bf16 %v311_v14, %v310_v13 }
  0x7f   : > { %4083 = vmatmul.mubr.msk.bf16.gmra.mrb[8].mxu1 %vm362_vm1, %v314_v27  ;;  %1523 = vmatprep.subr.bf16.mxu0 %v4959_v37  ;;  %v5002_v19 = vld [vmem:[#allocation2 + $0x188] ss:$16 sps:$4 sm:$0xff]   ;;  %v5005_v21 = vld [vmem:[#allocation2 + $0x1a0] ss:$16 sps:$4 sm:$0xff]   ;;  %v5010_v22 = vld [vmem:[#allocation2 + $0x1ac] ss:$16 sps:$4 sm:$0xff]   ;;  %p5469_p9 = pnand %p5468_p6, %p5462_p11 }
  0x80   : > { %575 = vmatprep.mubr.bf16.mxu1 %v5536_v0  ;;  %1748 = vmatpush1.bf16.msra.mxu1 %v4954_v39  ;;  %v5008_v23 = vld [vmem:[#allocation2 + $0x1a8] ss:$16 sps:$4 sm:$0xff]   ;;  %v5013_v24 = vld [vmem:[#allocation2 + $0x1c4] ss:$16 sps:$4 sm:$0xff]   ;;  %v5016_v25 = vld [vmem:[#allocation2 + $0x1cc] ss:$16 sps:$4 sm:$0xff]  }
  0x81   : > { %1749 = vmatprep.subr.bf16.mxu1 %v4962_v41  ;;  %v5011_v26 = vld [vmem:[#allocation2 + $0x1c0] ss:$16 sps:$4 sm:$0xff]   ;;  %v5014_v27 = vld [vmem:[#allocation2 + $0x1c8] ss:$16 sps:$4 sm:$0xff]   ;;  %v5019_v28 = vld [vmem:[#allocation2 + $0x1e4] ss:$16 sps:$4 sm:$0xff]  }
  0x82   : > { %1524 = vmatpush1.bf16.msra.mxu0 %v4957_v40  ;;  %v5022_v29 = vld [vmem:[#allocation2 + $0x1ec] ss:$16 sps:$4 sm:$0xff]   ;;  %v5017_v30 = vld [vmem:[#allocation2 + $0x1e0] ss:$16 sps:$4 sm:$0xff]   ;;  %v5020_v31 = vld [vmem:[#allocation2 + $0x1e8] ss:$16 sps:$4 sm:$0xff]  }
  0x83   : > { %1525 = vmatprep.subr.bf16.mxu0 %v4965_v43  ;;  %v5028_v32 = vld [vmem:[#allocation2 + $0x20c] ss:$16 sps:$4 sm:$0xff]   ;;  %v5793_v35 = vsub.s32 0, %v327_v34  ;;  %v324_v36 = vld [vmem:[#allocation7] ss:$8 sm:$0xf] }
  0x84   : > { %1750 = vmatpush1.bf16.msra.mxu1 %v4960_v45  ;;  %v5795_v37 = vsub.s32 1, %v327_v34  ;;  %v5803_v41 = vsub.s32 2, %v327_v34  ;;  %v5806_v44 = vsub.s32 3, %v327_v34  ;;  %v5031_v3 = vld [vmem:[#allocation2 + $0x224] ss:$16 sps:$4 sm:$0xff]  }
  0x85   : > { %4075 = vmatmul.mubr.msk.bf16.gmra.mrb[12].mxu0 %vm362_vm1, %v315_v38  ;;  %1751 = vmatprep.subr.bf16.mxu1 %v4968_v47  ;;  %v5029_v14 = vld [vmem:[#allocation2 + $0x220] ss:$16 sps:$4 sm:$0xff]   ;;  %v5038_v33 = vld [vmem:[#allocation2 + $0x248] ss:$16 sps:$4 sm:$0xff]  }
  0x86   : > { %472 = vmatprep.mubr.bf16.mxu0 %v5536_v0  ;;  %1526 = vmatpush1.bf16.msra.mxu0 %v4963_v46  ;;  %v5801_v39 = vrot.slane %v324_v36, %v5795_v37  ;;  %v5815_v53 = vrot.slane %v324_v36, %v5806_v44 }
  0x87   : > { %4084 = vmatmul.mubr.msk.bf16.gmra.mrb[12].mxu1 %vm362_vm1, %v315_v38  ;;  %1527 = vmatprep.subr.bf16.mxu0 %v4971_v48  ;;  %v5798_v38 = vrot.slane %v324_v36, %v5793_v35 }
  0x88   : > { %585 = vmatprep.mubr.bf16.mxu1 %v5536_v0  ;;  %1752 = vmatpush1.bf16.msra.mxu1 %v4966_v50  ;;  %v5812_v50 = vrot.slane %v324_v36, %v5803_v41 }
  0x89   : > { %1753 = vmatprep.subr.bf16.mxu1 %v4974_v52 }
  0x8a   : > { %1528 = vmatpush1.bf16.msra.mxu0 %v4969_v51 }
  0x8b   : > { %1529 = vmatprep.subr.bf16.mxu0 %v4977_v54 }
  0x8c   : > { %1754 = vmatpush1.bf16.msra.mxu1 %v4972_v56 }
  0x8d   : > { %4076 = vmatmul.mubr.msk.bf16.gmra.mrb[16].mxu0 %vm362_vm1, %v316_v49  ;;  %1755 = vmatprep.subr.bf16.mxu1 %v4980_v58 }
  0x8e   : > { %482 = vmatprep.mubr.bf16.mxu0 %v5536_v0  ;;  %1530 = vmatpush1.bf16.msra.mxu0 %v4975_v57 }
  0x8f   : > { %4085 = vmatmul.mubr.msk.bf16.gmra.mrb[16].mxu1 %vm362_vm1, %v316_v49  ;;  %1531 = vmatprep.subr.bf16.mxu0 %v4983_v59 }
  0x90   : > { %595 = vmatprep.mubr.bf16.mxu1 %v5536_v0  ;;  %1756 = vmatpush1.bf16.msra.mxu1 %v4978_v61  ;;  %v5026_v61 = vld [vmem:[#allocation2 + $0x208] ss:$16 sps:$4 sm:$0xff]  }
  0x91   : > { %1757 = vmatprep.subr.bf16.mxu1 %v4986_v63 }
  0x92   : > { %1532 = vmatpush1.bf16.msra.mxu0 %v4981_v62 }
  0x93   : > { %1533 = vmatprep.subr.bf16.mxu0 %v4989_v1 }
  0x94   : > { %1758 = vmatpush1.bf16.msra.mxu1 %v4984_v4  ;;  %v5034_v4 = vld [vmem:[#allocation2 + $0x22c] ss:$16 sps:$4 sm:$0xff]  }
  0x95   : > { %4077 = vmatmul.mubr.msk.bf16.gmra.mrb[20].mxu0 %vm362_vm1, %v317_v60  ;;  %1759 = vmatprep.subr.bf16.mxu1 %v4992_v6 }
  0x96   : > { %492 = vmatprep.mubr.bf16.mxu0 %v5536_v0  ;;  %1534 = vmatpush1.bf16.msra.mxu0 %v4987_v5 }
  0x97   : > { %4086 = vmatmul.mubr.msk.bf16.gmra.mrb[20].mxu1 %vm362_vm1, %v317_v60  ;;  %1535 = vmatprep.subr.bf16.mxu0 %v4995_v7  ;;  %v5023_v60 = vld [vmem:[#allocation2 + $0x200] ss:$16 sps:$4 sm:$0xff]  }
  0x98   : > { %605 = vmatprep.mubr.bf16.mxu1 %v5536_v0  ;;  %1760 = vmatpush1.bf16.msra.mxu1 %v4990_v8 }
  0x99   : > { %1761 = vmatprep.subr.bf16.mxu1 %v4998_v11 }
  0x9a   : > { %1536 = vmatpush1.bf16.msra.mxu0 %v4993_v10 }
  0x9b   : > { %1537 = vmatprep.subr.bf16.mxu0 %v5001_v12 }
  0x9c   : > { %1762 = vmatpush1.bf16.msra.mxu1 %v4996_v15 }
  0x9d   : > { %4078 = vmatmul.mubr.msk.bf16.gmra.mrb[24].mxu0 %vm362_vm1, %v318_v9  ;;  %1763 = vmatprep.subr.bf16.mxu1 %v5004_v17 }
  0x9e   : > { %502 = vmatprep.mubr.bf16.mxu0 %v5536_v0  ;;  %1538 = vmatpush1.bf16.msra.mxu0 %v4999_v16 }
  0x9f   : > { %4087 = vmatmul.mubr.msk.bf16.gmra.mrb[24].mxu1 %vm362_vm1, %v318_v9  ;;  %1539 = vmatprep.subr.bf16.mxu0 %v5007_v18  ;;  %v5032_v18 = vld [vmem:[#allocation2 + $0x228] ss:$16 sps:$4 sm:$0xff]  }
  0xa0   : > { %615 = vmatprep.mubr.bf16.mxu1 %v5536_v0  ;;  %1764 = vmatpush1.bf16.msra.mxu1 %v5002_v19  ;;  %v5025_v0 = vld [vmem:[#allocation2 + $0x204] ss:$16 sps:$4 sm:$0xff]  }
  0xa1   : > { %1765 = vmatprep.subr.bf16.mxu1 %v5010_v22  ;;  %v5037_v19 = vld [vmem:[#allocation2 + $0x244] ss:$16 sps:$4 sm:$0xff]  }
  0xa2   : > { %1540 = vmatpush1.bf16.msra.mxu0 %v5005_v21 }
  0xa3   : > { %1541 = vmatprep.subr.bf16.mxu0 %v5013_v24 }
  0xa4   : > { %1766 = vmatpush1.bf16.msra.mxu1 %v5008_v23  ;;  %v5040_v23 = vld [vmem:[#allocation2 + $0x24c] ss:$16 sps:$4 sm:$0xff]  }
  0xa5   : > { %4079 = vmatmul.mubr.msk.bf16.gmra.mrb[28].mxu0 %vm362_vm1, %v319_v20  ;;  %1767 = vmatprep.subr.bf16.mxu1 %v5016_v25 }
  0xa6   : > { %1542 = vmatpush1.bf16.msra.mxu0 %v5011_v26 }
  0xa7   : > { %4088 = vmatmul.mubr.msk.bf16.gmra.mrb[28].mxu1 %vm362_vm1, %v319_v20  ;;  %1543 = vmatprep.subr.bf16.mxu0 %v5019_v28 }
  0xa8   : > { %1768 = vmatpush1.bf16.msra.mxu1 %v5014_v27 }
  0xa9   : > { %1769 = vmatprep.subr.bf16.mxu1 %v5022_v29 }
  0xaa   : > { %1544 = vmatpush1.bf16.msra.mxu0 %v5017_v30 }
  0xab   : > { %1626 = vmatprep.subr.bf16.mxu0 %v5025_v0 }
  0xac   : > { %1770 = vmatpush1.bf16.msra.mxu1 %v5020_v31 }
  0xad   : > { %1852 = vmatprep.subr.bf16.mxu1 %v5028_v32  ;;  %v5035_v32 = vld [vmem:[#allocation2 + $0x240] ss:$16 sps:$4 sm:$0xff]  }
 0x140   : > { %v434_v40 = vpop.f32.mrb[0].mxu0  ;;  %v547_v57 = vpop.f32.mrb[0].mxu1 }
 0x141   : > { %v435_v42 = vadd.f32 %v434_v40, %v5798_v38  ;;  %v436_v43 = vpop.f32.mrb[1].mxu0  ;;  %v548_v62 = vadd.f32 %v547_v57, %v5812_v50  ;;  %v549_v63 = vpop.f32.mrb[1].mxu1  ;;  %v5041_v57 = vld [vmem:[#allocation2 + $0x260] ss:$16 sps:$4 sm:$0xff]  }
 0x142   : > { %v437_v45 = vadd.f32 %v436_v43, %v5801_v39  ;;  %v438_v46 = vpop.f32.mrb[2].mxu0  ;;  %v550_v5 = vadd.f32 %v549_v63, %v5815_v53  ;;  %v551_v6 = vpop.f32.mrb[2].mxu1  ;;  %v5043_v43 = vld [vmem:[#allocation2 + $0x264] ss:$16 sps:$4 sm:$0xff]  }
 0x143   : > { %v439_v47 = vadd.f32 %v438_v46, %v5798_v38  ;;  %v440_v48 = vpop.f32.mrb[3].mxu0  ;;  %v626_v51 = vmax.f32 %v435_v42, 0.0  ;;  %v628_v9 = vmax.f32 %v548_v62, 0.0  ;;  %v552_v10 = vadd.f32 %v551_v6, %v5812_v50  ;;  %v553_v11 = vpop.f32.mrb[3].mxu1  ;;  %v5049_v62 = vld [vmem:[#allocation2 + $0x284] ss:$16 sps:$4 sm:$0xff]  }
 0x144   : > { %v441_v49 = vadd.f32 %v440_v48, %v5801_v39  ;;  %v627_v54 = vmax.f32 %v437_v45, 0.0  ;;  %v629_v15 = vmax.f32 %v550_v5, 0.0  ;;  %v554_v16 = vadd.f32 %v553_v11, %v5815_v53  ;;  %v5046_v45 = vld [vmem:[#allocation2 + $0x26c] ss:$16 sps:$4 sm:$0xff]  }
 0x145   : > { %v630_v52 = vmax.f32 %v439_v47, 0.0  ;;  %v632_v20 = vmax.f32 %v552_v10, 0.0 }
 0x146   : > { %v631_v55 = vmax.f32 %v441_v49, 0.0  ;;  %v633_v24 = vmax.f32 %v554_v16, 0.0 }
 0x147   : > { %v690_v56 = vpack.c.bf16 %v630_v52, %v626_v51  ;;  %v5825_v27 = vpack.c.bf16 %v632_v20, %v628_v9  ;;  %v5058_v20 = vld [vmem:[#allocation2 + $0x2ac] ss:$16 sps:$4 sm:$0xff]  }
 0x148   : > { %v691_v58 = vpack.c.bf16 %v631_v55, %v627_v54  ;;  %v444_v59 = vpop.f32.mrb[4].mxu0  ;;  %v5827_v29 = vpack.c.bf16 %v633_v24, %v629_v15 }
 0x149   : > { %v445_v1 = vadd.f32 %v444_v59, %v5798_v38  ;;  %v446_v2 = vpop.f32.mrb[5].mxu0 }
 0x14a   : > { %v447_v7 = vadd.f32 %v446_v2, %v5801_v39  ;;  %v448_v8 = vpop.f32.mrb[6].mxu0  ;;  %1545 = vmatprep.mubr.bf16.mxu0 %v691_v58  ;;  %1771 = vmatprep.mubr.bf16.mxu1 %v691_v58  ;;  %v557_v30 = vpop.f32.mrb[4].mxu1 }
 0x14b   : > { %v449_v12 = vadd.f32 %v448_v8, %v5798_v38  ;;  %v450_v13 = vpop.f32.mrb[7].mxu0  ;;  %1546 = vmatmul.mubr.bf16.vlgmr.msra.gmra.mrb[32].mxu0 %v690_v56  ;;  %1772 = vmatmul.mubr.bf16.vlgmr.msra.gmra.mrb[32].mxu1 %v690_v56  ;;  %v634_v21 = vmax.f32 %v445_v1, 0.0  ;;  %v558_v34 = vadd.f32 %v557_v30, %v5812_v50  ;;  %v559_v36 = vpop.f32.mrb[5].mxu1 }
 0x14c   : > { %v451_v17 = vadd.f32 %v450_v13, %v5801_v39  ;;  %1627 = vmatpush1.bf16.msra.mxu0 %v5023_v60  ;;  %1853 = vmatpush1.bf16.msra.mxu1 %v5026_v61  ;;  %v635_v25 = vmax.f32 %v447_v7, 0.0  ;;  %v560_v46 = vadd.f32 %v559_v36, %v5815_v53  ;;  %v561_v47 = vpop.f32.mrb[6].mxu1  ;;  %v5044_v61 = vld [vmem:[#allocation2 + $0x268] ss:$16 sps:$4 sm:$0xff]   ;;  %v5047_v13 = vld [vmem:[#allocation2 + $0x280] ss:$16 sps:$4 sm:$0xff]  }
 0x14d   : > { %v638_v22 = vmax.f32 %v449_v12, 0.0  ;;  %1628 = vmatprep.subr.bf16.mxu0 %v5031_v3  ;;  %1854 = vmatprep.subr.bf16.mxu1 %v5034_v4  ;;  %v636_v51 = vmax.f32 %v558_v34, 0.0  ;;  %v562_v52 = vadd.f32 %v561_v47, %v5812_v50  ;;  %v563_v54 = vpop.f32.mrb[7].mxu1  ;;  %v5052_v3 = vld [vmem:[#allocation2 + $0x28c] ss:$16 sps:$4 sm:$0xff]  }
 0x14e   : > { %v639_v26 = vmax.f32 %v451_v17, 0.0  ;;  %v637_v58 = vmax.f32 %v560_v46, 0.0  ;;  %v564_v59 = vadd.f32 %v563_v54, %v5815_v53  ;;  %v5056_v36 = vld [vmem:[#allocation2 + $0x2a8] ss:$16 sps:$4 sm:$0xff]   ;;  %v5064_v46 = vld [vmem:[#allocation2 + $0x2cc] ss:$16 sps:$4 sm:$0xff]  }
 0x14f   : > { %v694_v28 = vpack.c.bf16 %v638_v22, %v634_v21  ;;  %v640_v63 = vmax.f32 %v562_v52, 0.0 }
 0x150   : > { %v695_v31 = vpack.c.bf16 %v639_v26, %v635_v25  ;;  %1629 = vmatpush1.bf16.msra.mxu0 %v5029_v14  ;;  %v454_v0 = vpop.f32.mrb[8].mxu0  ;;  %1855 = vmatpush1.bf16.msra.mxu1 %v5032_v18  ;;  %v641_v4 = vmax.f32 %v564_v59, 0.0  ;;  %v5050_v14 = vld [vmem:[#allocation2 + $0x288] ss:$16 sps:$4 sm:$0xff]  }
 0x151   : > { %v455_v40 = vadd.f32 %v454_v0, %v5798_v38  ;;  %v456_v42 = vpop.f32.mrb[9].mxu0  ;;  %1630 = vmatprep.subr.bf16.mxu0 %v5037_v19  ;;  %1856 = vmatprep.subr.bf16.mxu1 %v5040_v23  ;;  %v5837_v7 = vpack.c.bf16 %v640_v63, %v636_v51  ;;  %v5055_v19 = vld [vmem:[#allocation2 + $0x2a4] ss:$16 sps:$4 sm:$0xff]   ;;  %v5053_v0 = vld [vmem:[#allocation2 + $0x2a0] ss:$16 sps:$4 sm:$0xff]  }
 0x152   : > { %v457_v48 = vadd.f32 %v456_v42, %v5801_v39  ;;  %v458_v49 = vpop.f32.mrb[10].mxu0  ;;  %1555 = vmatprep.mubr.bf16.mxu0 %v695_v31  ;;  %1781 = vmatprep.mubr.bf16.mxu1 %v695_v31  ;;  %v5839_v9 = vpack.c.bf16 %v641_v4, %v637_v58  ;;  %v567_v10 = vpop.f32.mrb[8].mxu1  ;;  %v5059_v58 = vld [vmem:[#allocation2 + $0x2c0] ss:$16 sps:$4 sm:$0xff]   ;;  %v5062_v59 = vld [vmem:[#allocation2 + $0x2c8] ss:$16 sps:$4 sm:$0xff]  }
 0x153   : > { %v459_v55 = vadd.f32 %v458_v49, %v5798_v38  ;;  %v460_v56 = vpop.f32.mrb[11].mxu0  ;;  %1556 = vmatmul.mubr.bf16.gmra.mrb[36].mxu0 %v694_v28  ;;  %1782 = vmatmul.mubr.bf16.gmra.mrb[36].mxu1 %v694_v28  ;;  %v642_v1 = vmax.f32 %v455_v40, 0.0  ;;  %v568_v15 = vadd.f32 %v567_v10, %v5812_v50  ;;  %v569_v16 = vpop.f32.mrb[9].mxu1  ;;  %v5061_v40 = vld [vmem:[#allocation2 + $0x2c4] ss:$16 sps:$4 sm:$0xff]  }
 0x154   : > { %v461_v60 = vadd.f32 %v460_v56, %v5801_v39  ;;  %1631 = vmatpush1.bf16.msra.mxu0 %v5035_v32  ;;  %1857 = vmatpush1.bf16.msra.mxu1 %v5038_v33  ;;  %v643_v5 = vmax.f32 %v457_v48, 0.0  ;;  %v570_v21 = vadd.f32 %v569_v16, %v5815_v53  ;;  %v571_v22 = vpop.f32.mrb[10].mxu1 }
 0x155   : > { %v646_v2 = vmax.f32 %v459_v55, 0.0  ;;  %1632 = vmatprep.subr.bf16.mxu0 %v5043_v43  ;;  %1858 = vmatprep.subr.bf16.mxu1 %v5046_v45  ;;  %v644_v25 = vmax.f32 %v568_v15, 0.0  ;;  %v572_v26 = vadd.f32 %v571_v22, %v5812_v50  ;;  %v573_v28 = vpop.f32.mrb[11].mxu1 }
 0x156   : > { %v647_v6 = vmax.f32 %v461_v60, 0.0  ;;  %v645_v32 = vmax.f32 %v570_v21, 0.0  ;;  %v574_v33 = vadd.f32 %v573_v28, %v5815_v53 }
 0x157   : > { %v698_v8 = vpack.c.bf16 %v646_v2, %v642_v1  ;;  %v648_v42 = vmax.f32 %v572_v26, 0.0  ;;  %v5067_v1 = vld [vmem:[#allocation2 + $0x2e4] ss:$16 sps:$4 sm:$0xff]   ;;  %v5070_v2 = vld [vmem:[#allocation2 + $0x2ec] ss:$16 sps:$4 sm:$0xff]  }
 0x158   : > { %v699_v11 = vpack.c.bf16 %v647_v6, %v643_v5  ;;  %1633 = vmatpush1.bf16.msra.mxu0 %v5041_v57  ;;  %v464_v12 = vpop.f32.mrb[12].mxu0  ;;  %1859 = vmatpush1.bf16.msra.mxu1 %v5044_v61  ;;  %v649_v47 = vmax.f32 %v574_v33, 0.0 }
 0x159   : > { %v465_v17 = vadd.f32 %v464_v12, %v5798_v38  ;;  %v466_v18 = vpop.f32.mrb[13].mxu0  ;;  %1634 = vmatprep.subr.bf16.mxu0 %v5049_v62  ;;  %1860 = vmatprep.subr.bf16.mxu1 %v5052_v3  ;;  %v5849_v51 = vpack.c.bf16 %v648_v42, %v644_v25 }
 0x15a   : > { %v467_v23 = vadd.f32 %v466_v18, %v5801_v39  ;;  %v468_v24 = vpop.f32.mrb[14].mxu0  ;;  %1565 = vmatprep.mubr.bf16.mxu0 %v699_v11  ;;  %1791 = vmatprep.mubr.bf16.mxu1 %v699_v11  ;;  %v5851_v54 = vpack.c.bf16 %v649_v47, %v645_v32  ;;  %v577_v55 = vpop.f32.mrb[12].mxu1  ;;  %v5068_v18 = vld [vmem:[#allocation2 + $0x2e8] ss:$16 sps:$4 sm:$0xff]   ;;  %v5082_v47 = vld [vmem:[#allocation2 + $0x32c] ss:$16 sps:$4 sm:$0xff]  }
 0x15b   : > { %v469_v30 = vadd.f32 %v468_v24, %v5798_v38  ;;  %v470_v31 = vpop.f32.mrb[15].mxu0  ;;  %1566 = vmatmul.mubr.bf16.gmra.mrb[40].mxu0 %v698_v8  ;;  %1792 = vmatmul.mubr.bf16.gmra.mrb[40].mxu1 %v698_v8  ;;  %v650_v43 = vmax.f32 %v465_v17, 0.0  ;;  %v578_v60 = vadd.f32 %v577_v55, %v5812_v50  ;;  %v579_v61 = vpop.f32.mrb[13].mxu1 }
 0x15c   : > { %v471_v34 = vadd.f32 %v470_v31, %v5801_v39  ;;  %1635 = vmatpush1.bf16.msra.mxu0 %v5047_v13  ;;  %1861 = vmatpush1.bf16.msra.mxu1 %v5050_v14  ;;  %v651_v48 = vmax.f32 %v467_v23, 0.0  ;;  %v580_v3 = vadd.f32 %v579_v61, %v5815_v53  ;;  %v581_v4 = vpop.f32.mrb[14].mxu1  ;;  %v5065_v14 = vld [vmem:[#allocation2 + $0x2e0] ss:$16 sps:$4 sm:$0xff]   ;;  %v5076_v23 = vld [vmem:[#allocation2 + $0x30c] ss:$16 sps:$4 sm:$0xff]  }
 0x15d   : > { %v654_v45 = vmax.f32 %v469_v30, 0.0  ;;  %1636 = vmatprep.subr.bf16.mxu0 %v5055_v19  ;;  %1862 = vmatprep.subr.bf16.mxu1 %v5058_v20  ;;  %v652_v8 = vmax.f32 %v578_v60, 0.0  ;;  %v582_v10 = vadd.f32 %v581_v4, %v5812_v50  ;;  %v583_v11 = vpop.f32.mrb[15].mxu1  ;;  %v5073_v19 = vld [vmem:[#allocation2 + $0x304] ss:$16 sps:$4 sm:$0xff]  }
 0x15e   : > { %v655_v49 = vmax.f32 %v471_v34, 0.0  ;;  %v653_v15 = vmax.f32 %v580_v3, 0.0  ;;  %v584_v16 = vadd.f32 %v583_v11, %v5815_v53  ;;  %v5071_v34 = vld [vmem:[#allocation2 + $0x300] ss:$16 sps:$4 sm:$0xff]   ;;  %v5085_v3 = vld [vmem:[#allocation2 + $0x344] ss:$16 sps:$4 sm:$0xff]  }
 0x15f   : > { %v702_v52 = vpack.c.bf16 %v654_v45, %v650_v43  ;;  %v656_v20 = vmax.f32 %v582_v10, 0.0  ;;  %v5077_v61 = vld [vmem:[#allocation2 + $0x320] ss:$16 sps:$4 sm:$0xff]  }
 0x160   : > { %v703_v56 = vpack.c.bf16 %v655_v49, %v651_v48  ;;  %1637 = vmatpush1.bf16.msra.mxu0 %v5053_v0  ;;  %v474_v57 = vpop.f32.mrb[16].mxu0  ;;  %1863 = vmatpush1.bf16.msra.mxu1 %v5056_v36  ;;  %v657_v24 = vmax.f32 %v584_v16, 0.0  ;;  %v5074_v36 = vld [vmem:[#allocation2 + $0x308] ss:$16 sps:$4 sm:$0xff]  }
 0x161   : > { %v475_v62 = vadd.f32 %v474_v57, %v5798_v38  ;;  %v476_v63 = vpop.f32.mrb[17].mxu0  ;;  %1638 = vmatprep.subr.bf16.mxu0 %v5061_v40  ;;  %1864 = vmatprep.subr.bf16.mxu1 %v5064_v46  ;;  %v5861_v28 = vpack.c.bf16 %v656_v20, %v652_v8  ;;  %v5079_v46 = vld [vmem:[#allocation2 + $0x324] ss:$16 sps:$4 sm:$0xff]   ;;  %v5088_v8 = vld [vmem:[#allocation2 + $0x34c] ss:$16 sps:$4 sm:$0xff]  }
 0x162   : > { %v477_v5 = vadd.f32 %v476_v63, %v5801_v39  ;;  %v478_v6 = vpop.f32.mrb[18].mxu0  ;;  %1575 = vmatprep.mubr.bf16.mxu0 %v703_v56  ;;  %1801 = vmatprep.mubr.bf16.mxu1 %v703_v56  ;;  %v5863_v31 = vpack.c.bf16 %v657_v24, %v653_v15  ;;  %v587_v0 = vpop.f32.mrb[16].mxu1  ;;  %v5086_v20 = vld [vmem:[#allocation2 + $0x348] ss:$16 sps:$4 sm:$0xff]  }
 0x163   : > { %v479_v12 = vadd.f32 %v478_v6, %v5798_v38  ;;  %v480_v13 = vpop.f32.mrb[19].mxu0  ;;  %1576 = vmatmul.mubr.bf16.gmra.mrb[44].mxu0 %v702_v52  ;;  %1802 = vmatmul.mubr.bf16.gmra.mrb[44].mxu1 %v702_v52  ;;  %v658_v21 = vmax.f32 %v475_v62, 0.0  ;;  %v588_v40 = vadd.f32 %v587_v0, %v5812_v50  ;;  %v589_v42 = vpop.f32.mrb[17].mxu1 }
 0x164   : > { %v481_v17 = vadd.f32 %v480_v13, %v5801_v39  ;;  %1639 = vmatpush1.bf16.msra.mxu0 %v5059_v58  ;;  %1865 = vmatpush1.bf16.msra.mxu1 %v5062_v59  ;;  %v659_v25 = vmax.f32 %v477_v5, 0.0  ;;  %v590_v48 = vadd.f32 %v589_v42, %v5815_v53  ;;  %v591_v49 = vpop.f32.mrb[18].mxu1 }
 0x165   : > { %v662_v22 = vmax.f32 %v479_v12, 0.0  ;;  %1640 = vmatprep.subr.bf16.mxu0 %v5067_v1  ;;  %1866 = vmatprep.subr.bf16.mxu1 %v5070_v2  ;;  %v660_v56 = vmax.f32 %v588_v40, 0.0  ;;  %v592_v57 = vadd.f32 %v591_v49, %v5812_v50  ;;  %v593_v58 = vpop.f32.mrb[19].mxu1  ;;  %v5080_v2 = vld [vmem:[#allocation2 + $0x328] ss:$16 sps:$4 sm:$0xff]  }
 0x166   : > { %v663_v26 = vmax.f32 %v481_v17, 0.0  ;;  %v661_v62 = vmax.f32 %v590_v48, 0.0  ;;  %v594_v63 = vadd.f32 %v593_v58, %v5815_v53  ;;  %v5092_v49 = vld [vmem:[#allocation2 + $0x368] ss:$16 sps:$4 sm:$0xff]   ;;  %v5100_v58 = vld [vmem:[#allocation2 + $0x38c] ss:$16 sps:$4 sm:$0xff]  }
 0x167   : > { %v706_v30 = vpack.c.bf16 %v662_v22, %v658_v21  ;;  %v664_v4 = vmax.f32 %v592_v57, 0.0 }
 0x168   : > { %v707_v32 = vpack.c.bf16 %v663_v26, %v659_v25  ;;  %1641 = vmatpush1.bf16.msra.mxu0 %v5065_v14  ;;  %v484_v33 = vpop.f32.mrb[20].mxu0  ;;  %1867 = vmatpush1.bf16.msra.mxu1 %v5068_v18  ;;  %v665_v10 = vmax.f32 %v594_v63, 0.0  ;;  %v5091_v25 = vld [vmem:[#allocation2 + $0x364] ss:$16 sps:$4 sm:$0xff]   ;;  %v5094_v26 = vld [vmem:[#allocation2 + $0x36c] ss:$16 sps:$4 sm:$0xff]  }
 0x169   : > { %v485_v43 = vadd.f32 %v484_v33, %v5798_v38  ;;  %v486_v45 = vpop.f32.mrb[21].mxu0  ;;  %1642 = vmatprep.subr.bf16.mxu0 %v5073_v19  ;;  %1868 = vmatprep.subr.bf16.mxu1 %v5076_v23  ;;  %v5873_v13 = vpack.c.bf16 %v664_v4, %v660_v56  ;;  %v5083_v19 = vld [vmem:[#allocation2 + $0x340] ss:$16 sps:$4 sm:$0xff]  }
 0x16a   : > { %v487_v52 = vadd.f32 %v486_v45, %v5801_v39  ;;  %v488_v55 = vpop.f32.mrb[22].mxu0  ;;  %1585 = vmatprep.mubr.bf16.mxu0 %v707_v32  ;;  %1811 = vmatprep.mubr.bf16.mxu1 %v707_v32  ;;  %v5875_v15 = vpack.c.bf16 %v665_v10, %v661_v62  ;;  %v597_v16 = vpop.f32.mrb[20].mxu1  ;;  %v5089_v45 = vld [vmem:[#allocation2 + $0x360] ss:$16 sps:$4 sm:$0xff]  }
 0x16b   : > { %v489_v59 = vadd.f32 %v488_v55, %v5798_v38  ;;  %v490_v60 = vpop.f32.mrb[23].mxu0  ;;  %1586 = vmatmul.mubr.bf16.gmra.mrb[48].mxu0 %v706_v30  ;;  %1812 = vmatmul.mubr.bf16.gmra.mrb[48].mxu1 %v706_v30  ;;  %v666_v5 = vmax.f32 %v485_v43, 0.0  ;;  %v598_v21 = vadd.f32 %v597_v16, %v5812_v50  ;;  %v599_v22 = vpop.f32.mrb[21].mxu1  ;;  %v5106_v16 = vld [vmem:[#allocation2 + $0x3ac] ss:$16 sps:$4 sm:$0xff]  }
 0x16c   : > { %v491_v1 = vadd.f32 %v490_v60, %v5801_v39  ;;  %1643 = vmatpush1.bf16.msra.mxu0 %v5071_v34  ;;  %1869 = vmatpush1.bf16.msra.mxu1 %v5074_v36  ;;  %v667_v11 = vmax.f32 %v487_v52, 0.0  ;;  %v600_v30 = vadd.f32 %v599_v22, %v5815_v53  ;;  %v601_v0 = vpop.f32.mrb[22].mxu1  ;;  %v5097_v52 = vld [vmem:[#allocation2 + $0x384] ss:$16 sps:$4 sm:$0xff]  }
 0x16d   : > { %v670_v6 = vmax.f32 %v489_v59, 0.0  ;;  %1644 = vmatprep.subr.bf16.mxu0 %v5079_v46  ;;  %1870 = vmatprep.subr.bf16.mxu1 %v5082_v47  ;;  %v668_v34 = vmax.f32 %v598_v21, 0.0  ;;  %v602_v36 = vadd.f32 %v601_v0, %v5812_v50  ;;  %v603_v40 = vpop.f32.mrb[23].mxu1 }
 0x16e   : > { %v671_v12 = vmax.f32 %v491_v1, 0.0  ;;  %v669_v46 = vmax.f32 %v600_v30, 0.0  ;;  %v604_v47 = vadd.f32 %v603_v40, %v5815_v53 }
 0x16f   : > { %v710_v14 = vpack.c.bf16 %v670_v6, %v666_v5  ;;  %v672_v55 = vmax.f32 %v602_v36, 0.0  ;;  %v5095_v5 = vld [vmem:[#allocation2 + $0x380] ss:$16 sps:$4 sm:$0xff]   ;;  %v5098_v6 = vld [vmem:[#allocation2 + $0x388] ss:$16 sps:$4 sm:$0xff]  }
 0x170   : > { %v711_v17 = vpack.c.bf16 %v671_v12, %v667_v11  ;;  %1645 = vmatpush1.bf16.msra.mxu0 %v5077_v61  ;;  %v494_v18 = vpop.f32.mrb[24].mxu0  ;;  %1871 = vmatpush1.bf16.msra.mxu1 %v5080_v2  ;;  %v673_v59 = vmax.f32 %v604_v47, 0.0 }
 0x171   : > { %v495_v23 = vadd.f32 %v494_v18, %v5798_v38  ;;  %v496_v24 = vpop.f32.mrb[25].mxu0  ;;  %1646 = vmatprep.subr.bf16.mxu0 %v5085_v3  ;;  %1872 = vmatprep.subr.bf16.mxu1 %v5088_v8  ;;  %v5885_v62 = vpack.c.bf16 %v672_v55, %v668_v34  ;;  %v5109_v34 = vld [vmem:[#allocation2 + $0x3c4] ss:$16 sps:$4 sm:$0xff]   ;;  %v5107_v55 = vld [vmem:[#allocation2 + $0x3c0] ss:$16 sps:$4 sm:$0xff]  }
 0x172   : > { %v497_v32 = vadd.f32 %v496_v24, %v5801_v39  ;;  %v498_v33 = vpop.f32.mrb[26].mxu0  ;;  %1595 = vmatprep.mubr.bf16.mxu0 %v711_v17  ;;  %1821 = vmatprep.mubr.bf16.mxu1 %v711_v17  ;;  %v5887_v1 = vpack.c.bf16 %v673_v59, %v669_v46  ;;  %v607_v2 = vpop.f32.mrb[24].mxu1  ;;  %v5115_v59 = vld [vmem:[#allocation2 + $0x3e4] ss:$16 sps:$4 sm:$0xff]  }
 0x173   : > { %v499_v42 = vadd.f32 %v498_v33, %v5798_v38  ;;  %v500_v43 = vpop.f32.mrb[27].mxu0  ;;  %1596 = vmatmul.mubr.bf16.gmra.mrb[52].mxu0 %v710_v14  ;;  %1822 = vmatmul.mubr.bf16.gmra.mrb[52].mxu1 %v710_v14  ;;  %v674_v56 = vmax.f32 %v495_v23, 0.0  ;;  %v608_v8 = vadd.f32 %v607_v2, %v5812_v50  ;;  %v609_v10 = vpop.f32.mrb[25].mxu1  ;;  %v5103_v14 = vld [vmem:[#allocation2 + $0x3a4] ss:$16 sps:$4 sm:$0xff]  }
 0x174   : > { %v501_v48 = vadd.f32 %v500_v43, %v5801_v39  ;;  %1647 = vmatpush1.bf16.msra.mxu0 %v5083_v19  ;;  %1873 = vmatpush1.bf16.msra.mxu1 %v5086_v20  ;;  %v675_v60 = vmax.f32 %v497_v32, 0.0  ;;  %v610_v17 = vadd.f32 %v609_v10, %v5815_v53  ;;  %v611_v18 = vpop.f32.mrb[26].mxu1  ;;  %v5104_v33 = vld [vmem:[#allocation2 + $0x3a8] ss:$16 sps:$4 sm:$0xff]   ;;  %v5112_v43 = vld [vmem:[#allocation2 + $0x3cc] ss:$16 sps:$4 sm:$0xff]  }
 0x175   : > { %v678_v57 = vmax.f32 %v499_v42, 0.0  ;;  %1648 = vmatprep.subr.bf16.mxu0 %v5091_v25  ;;  %1874 = vmatprep.subr.bf16.mxu1 %v5094_v26  ;;  %v676_v21 = vmax.f32 %v608_v8, 0.0  ;;  %v612_v22 = vadd.f32 %v611_v18, %v5812_v50  ;;  %v613_v23 = vpop.f32.mrb[27].mxu1  ;;  %v5101_v26 = vld [vmem:[#allocation2 + $0x3a0] ss:$16 sps:$4 sm:$0xff]  }
 0x176   : > { %v679_v61 = vmax.f32 %v501_v48, 0.0  ;;  %v677_v30 = vmax.f32 %v610_v17, 0.0  ;;  %v614_v0 = vadd.f32 %v613_v23, %v5815_v53  ;;  %v5113_v8 = vld [vmem:[#allocation2 + $0x3e0] ss:$16 sps:$4 sm:$0xff]   ;;  %v5116_v10 = vld [vmem:[#allocation2 + $0x3e8] ss:$16 sps:$4 sm:$0xff]  }
 0x177   : > { %v714_v63 = vpack.c.bf16 %v678_v57, %v674_v56  ;;  %v680_v36 = vmax.f32 %v612_v22, 0.0  ;;  %v5110_v56 = vld [vmem:[#allocation2 + $0x3c8] ss:$16 sps:$4 sm:$0xff]   ;;  %v5133_v22 = vld [vmem:[#allocation5 + $0x44] ss:$16 sps:$4 sm:$0xff]  }
 0x178   : > { %v715_v3 = vpack.c.bf16 %v679_v61, %v675_v60  ;;  %1649 = vmatpush1.bf16.msra.mxu0 %v5089_v45  ;;  %v504_v4 = vpop.f32.mrb[28].mxu0  ;;  %1875 = vmatpush1.bf16.msra.mxu1 %v5092_v49  ;;  %v5122_v18 = vld [vmem:[#allocation5 + $0x8] ss:$16 sps:$4 sm:$0xff]   ;;  %v5136_v23 = vld [vmem:[#allocation5 + $0x4c] ss:$16 sps:$4 sm:$0xff]  }
 0x179   : > { %v505_v11 = vadd.f32 %v504_v4, %v5798_v38  ;;  %v506_v12 = vpop.f32.mrb[29].mxu0  ;;  %1650 = vmatprep.subr.bf16.mxu0 %v5097_v52  ;;  %1876 = vmatprep.subr.bf16.mxu1 %v5100_v58  ;;  %v5897_v47 = vpack.c.bf16 %v680_v36, %v676_v21  ;;  %v5128_v21 = vld [vmem:[#allocation5 + $0x28] ss:$16 sps:$4 sm:$0xff]   ;;  %v5151_v36 = vld [vmem:[#allocation5 + $0xa4] ss:$16 sps:$4 sm:$0xff]  }
 0x17a   : > { %v507_v19 = vadd.f32 %v506_v12, %v5801_v39  ;;  %v508_v20 = vpop.f32.mrb[30].mxu0  ;;  %1605 = vmatprep.mubr.bf16.mxu0 %v715_v3  ;;  %1831 = vmatprep.mubr.bf16.mxu1 %v715_v3  ;;  %v617_v52 = vpop.f32.mrb[28].mxu1 }
 0x17b   : > { %v509_v24 = vadd.f32 %v508_v20, %v5798_v38  ;;  %v510_v25 = vpop.f32.mrb[31].mxu0  ;;  %1606 = vmatmul.mubr.bf16.gmra.mrb[56].mxu0 %v714_v63  ;;  %1832 = vmatmul.mubr.bf16.gmra.mrb[56].mxu1 %v714_v63  ;;  %v682_v40 = vmax.f32 %v505_v11, 0.0  ;;  %v681_v38 = vmax.f32 %v614_v0, 0.0  ;;  %v618_v57 = vadd.f32 %v617_v52, %v5812_v50  ;;  %v619_v58 = vpop.f32.mrb[29].mxu1  ;;  %v5118_v63 = vld [vmem:[#allocation2 + $0x3ec] ss:$16 sps:$4 sm:$0xff]  }
 0x17c   : > { %v511_v32 = vadd.f32 %v510_v25, %v5801_v39  ;;  %1651 = vmatpush1.bf16.msra.mxu0 %v5095_v5  ;;  %1877 = vmatpush1.bf16.msra.mxu1 %v5098_v6  ;;  %v683_v45 = vmax.f32 %v507_v19, 0.0  ;;  %v620_v60 = vadd.f32 %v619_v58, %v5815_v53  ;;  %v621_v61 = vpop.f32.mrb[30].mxu1  ;;  %v5127_v19 = vld [vmem:[#allocation5 + $0x24] ss:$16 sps:$4 sm:$0xff]   ;;  %v5130_v20 = vld [vmem:[#allocation5 + $0x2c] ss:$16 sps:$4 sm:$0xff]  }
 0x17d   : > { %v686_v42 = vmax.f32 %v509_v24, 0.0  ;;  %1652 = vmatprep.subr.bf16.mxu0 %v5103_v14  ;;  %1878 = vmatprep.subr.bf16.mxu1 %v5106_v16  ;;  %v5899_v49 = vpack.c.bf16 %v681_v38, %v677_v30  ;;  %v684_v2 = vmax.f32 %v618_v57, 0.0  ;;  %v622_v3 = vadd.f32 %v621_v61, %v5812_v50  ;;  %v623_v4 = vpop.f32.mrb[31].mxu1  ;;  %v5121_v14 = vld [vmem:[#allocation5 + $0x4] ss:$16 sps:$4 sm:$0xff]  }
 0x17e   : > { %v687_v46 = vmax.f32 %v511_v32, 0.0  ;;  %v685_v5 = vmax.f32 %v620_v60, 0.0  ;;  %v624_v6 = vadd.f32 %v623_v4, %v5815_v53  ;;  %v5124_v16 = vld [vmem:[#allocation5 + $0xc] ss:$16 sps:$4 sm:$0xff]   ;;  %v5119_v53 = vld [vmem:[#allocation5] ss:$16 sps:$4 sm:$0xff]  }
 0x17f   : > { %v718_v48 = vpack.c.bf16 %v686_v42, %v682_v40  ;;  %v688_v11 = vmax.f32 %v622_v3, 0.0  ;;  %v5131_v24 = vld [vmem:[#allocation5 + $0x40] ss:$16 sps:$4 sm:$0xff]   ;;  %v5134_v25 = vld [vmem:[#allocation5 + $0x48] ss:$16 sps:$4 sm:$0xff]  }
 0x180   : > { %v719_v39 = vpack.c.bf16 %v687_v46, %v683_v45  ;;  %1653 = vmatpush1.bf16.msra.mxu0 %v5101_v26  ;;  %1879 = vmatpush1.bf16.msra.mxu1 %v5104_v33  ;;  %v689_v12 = vmax.f32 %v624_v6, 0.0  ;;  %v5139_v26 = vld [vmem:[#allocation5 + $0x64] ss:$16 sps:$4 sm:$0xff]   ;;  %v5140_v30 = vld [vmem:[#allocation5 + $0x68] ss:$16 sps:$4 sm:$0xff]  }
 0x181   : > { %1654 = vmatprep.subr.bf16.mxu0 %v5109_v34  ;;  %1880 = vmatprep.subr.bf16.mxu1 %v5112_v43  ;;  %v5907_v50 = vpack.c.bf16 %v688_v11, %v684_v2  ;;  %v5145_v0 = vld [vmem:[#allocation5 + $0x84] ss:$16 sps:$4 sm:$0xff]   ;;  %v5148_v32 = vld [vmem:[#allocation5 + $0x8c] ss:$16 sps:$4 sm:$0xff]   ;;  %v5143_v33 = vld [vmem:[#allocation5 + $0x80] ss:$16 sps:$4 sm:$0xff]  }
 0x182   : > { %1615 = vmatprep.mubr.bf16.mxu0 %v719_v39  ;;  %1841 = vmatprep.mubr.bf16.mxu1 %v719_v39  ;;  %v5909_v17 = vpack.c.bf16 %v689_v12, %v685_v5  ;;  %v5146_v34 = vld [vmem:[#allocation5 + $0x88] ss:$16 sps:$4 sm:$0xff]   ;;  %v5157_v42 = vld [vmem:[#allocation5 + $0xc4] ss:$16 sps:$4 sm:$0xff]   ;;  %v5160_v43 = vld [vmem:[#allocation5 + $0xcc] ss:$16 sps:$4 sm:$0xff]  }
 0x183   : > { %1616 = vmatmul.mubr.bf16.gmra.mrb[60].mxu0 %v718_v48  ;;  %1842 = vmatmul.mubr.bf16.gmra.mrb[60].mxu1 %v718_v48  ;;  %v5152_v40 = vld [vmem:[#allocation5 + $0xa8] ss:$16 sps:$4 sm:$0xff]   ;;  %v5155_v38 = vld [vmem:[#allocation5 + $0xc0] ss:$16 sps:$4 sm:$0xff]   ;;  %v5163_v46 = vld [vmem:[#allocation5 + $0xe4] ss:$16 sps:$4 sm:$0xff]  }
 0x184   : > { %1655 = vmatpush1.bf16.msra.mxu0 %v5107_v55  ;;  %1881 = vmatpush1.bf16.msra.mxu1 %v5110_v56  ;;  %v5158_v45 = vld [vmem:[#allocation5 + $0xc8] ss:$16 sps:$4 sm:$0xff]   ;;  %v5169_v52 = vld [vmem:[#allocation5 + $0x104] ss:$16 sps:$4 sm:$0xff]   ;;  %v5172_v39 = vld [vmem:[#allocation5 + $0x10c] ss:$16 sps:$4 sm:$0xff]  }
 0x185   : > { %1656 = vmatprep.subr.bf16.mxu0 %v5115_v59  ;;  %1658 = vmatprep.mubr.bf16.mxu0 %v5827_v29  ;;  %v5164_v48 = vld [vmem:[#allocation5 + $0xe8] ss:$16 sps:$4 sm:$0xff]   ;;  %v5167_v55 = vld [vmem:[#allocation5 + $0x100] ss:$16 sps:$4 sm:$0xff]   ;;  %v5175_v57 = vld [vmem:[#allocation5 + $0x124] ss:$16 sps:$4 sm:$0xff]  }
 0x186   : > { %1882 = vmatprep.subr.bf16.mxu1 %v5118_v63  ;;  %1884 = vmatprep.mubr.bf16.mxu1 %v5827_v29  ;;  %v5125_v29 = vld [vmem:[#allocation5 + $0x20] ss:$16 sps:$4 sm:$0xff]   ;;  %v5170_v56 = vld [vmem:[#allocation5 + $0x108] ss:$16 sps:$4 sm:$0xff]   ;;  %v5181_v59 = vld [vmem:[#allocation5 + $0x144] ss:$16 sps:$4 sm:$0xff]  }
 0x187   : > { %v5176_v58 = vld [vmem:[#allocation5 + $0x128] ss:$16 sps:$4 sm:$0xff]   ;;  %v5184_v60 = vld [vmem:[#allocation5 + $0x14c] ss:$16 sps:$4 sm:$0xff]   ;;  %v5179_v61 = vld [vmem:[#allocation5 + $0x140] ss:$16 sps:$4 sm:$0xff]  }
 0x188   : > { %1657 = vmatpush1.bf16.msra.mxu0 %v5113_v8  ;;  %1883 = vmatpush1.bf16.msra.mxu1 %v5116_v10  ;;  %v5182_v63 = vld [vmem:[#allocation5 + $0x148] ss:$16 sps:$4 sm:$0xff]   ;;  %v5187_v2 = vld [vmem:[#allocation5 + $0x164] ss:$16 sps:$4 sm:$0xff]   ;;  %v5196_v5 = vld [vmem:[#allocation5 + $0x18c] ss:$16 sps:$4 sm:$0xff]  }
 0x189   : > { %2852 = vmatprep.subr.bf16.mxu0 %v5121_v14  ;;  %3078 = vmatprep.subr.bf16.mxu1 %v5124_v16  ;;  %v5188_v3 = vld [vmem:[#allocation5 + $0x168] ss:$16 sps:$4 sm:$0xff]   ;;  %v5193_v4 = vld [vmem:[#allocation5 + $0x184] ss:$16 sps:$4 sm:$0xff]   ;;  %v5191_v6 = vld [vmem:[#allocation5 + $0x180] ss:$16 sps:$4 sm:$0xff]  }
 0x18a   : > { %v5194_v8 = vld [vmem:[#allocation5 + $0x188] ss:$16 sps:$4 sm:$0xff]   ;;  %v5199_v10 = vld [vmem:[#allocation5 + $0x1a4] ss:$16 sps:$4 sm:$0xff]   ;;  %v5208_v14 = vld [vmem:[#allocation5 + $0x1cc] ss:$16 sps:$4 sm:$0xff]  }
 0x18b   : > { %1659 = vmatmul.mubr.bf16.vlgmr.msra.gmra.mrb[32].mxu0 %v5825_v27  ;;  %1885 = vmatmul.mubr.bf16.vlgmr.msra.gmra.mrb[32].mxu1 %v5825_v27  ;;  %v5142_v27 = vld [vmem:[#allocation5 + $0x6c] ss:$16 sps:$4 sm:$0xff]   ;;  %v5200_v11 = vld [vmem:[#allocation5 + $0x1a8] ss:$16 sps:$4 sm:$0xff]   ;;  %v5205_v12 = vld [vmem:[#allocation5 + $0x1c4] ss:$16 sps:$4 sm:$0xff]  }
 0x18c   : > { %1668 = vmatprep.mubr.bf16.mxu0 %v5839_v9  ;;  %1894 = vmatprep.mubr.bf16.mxu1 %v5839_v9  ;;  %v5137_v9 = vld [vmem:[#allocation5 + $0x60] ss:$16 sps:$4 sm:$0xff]  }
 0x18d   : > { %2853 = vmatpush1.bf16.msra.mxu0 %v5119_v53  ;;  %3079 = vmatpush1.bf16.msra.mxu1 %v5122_v18  ;;  %v5203_v16 = vld [vmem:[#allocation5 + $0x1c0] ss:$16 sps:$4 sm:$0xff]   ;;  %v5214_v53 = vld [vmem:[#allocation5 + $0x1ec] ss:$16 sps:$4 sm:$0xff]  }
 0x18e   : > { %2854 = vmatprep.subr.bf16.mxu0 %v5127_v19  ;;  %3080 = vmatprep.subr.bf16.mxu1 %v5130_v20  ;;  %v5209_v18 = vld [vmem:[#allocation5 + $0x1e0] ss:$16 sps:$4 sm:$0xff]   ;;  %v5212_v19 = vld [vmem:[#allocation5 + $0x1e8] ss:$16 sps:$4 sm:$0xff]   ;;  %v5217_v20 = vld [vmem:[#allocation5 + $0x204] ss:$16 sps:$4 sm:$0xff]  }
 0x191   : > { %2855 = vmatpush1.bf16.msra.mxu0 %v5125_v29  ;;  %3081 = vmatpush1.bf16.msra.mxu1 %v5128_v21  ;;  %v5220_v29 = vld [vmem:[#allocation5 + $0x20c] ss:$16 sps:$4 sm:$0xff]  }
 0x192   : > { %2856 = vmatprep.subr.bf16.mxu0 %v5133_v22  ;;  %3082 = vmatprep.subr.bf16.mxu1 %v5136_v23 }
 0x193   : > { %1669 = vmatmul.mubr.bf16.gmra.mrb[36].mxu0 %v5837_v7  ;;  %1895 = vmatmul.mubr.bf16.gmra.mrb[36].mxu1 %v5837_v7  ;;  %v5154_v7 = vld [vmem:[#allocation5 + $0xac] ss:$16 sps:$4 sm:$0xff]  }
 0x194   : > { %1678 = vmatprep.mubr.bf16.mxu0 %v5851_v54  ;;  %1904 = vmatprep.mubr.bf16.mxu1 %v5851_v54  ;;  %v5149_v54 = vld [vmem:[#allocation5 + $0xa0] ss:$16 sps:$4 sm:$0xff]  }
 0x195   : > { %2857 = vmatpush1.bf16.msra.mxu0 %v5131_v24  ;;  %3083 = vmatpush1.bf16.msra.mxu1 %v5134_v25 }
 0x196   : > { %2858 = vmatprep.subr.bf16.mxu0 %v5139_v26  ;;  %3084 = vmatprep.subr.bf16.mxu1 %v5142_v27 }
 0x199   : > { %2859 = vmatpush1.bf16.msra.mxu0 %v5137_v9  ;;  %3085 = vmatpush1.bf16.msra.mxu1 %v5140_v30 }
 0x19a   : > { %2860 = vmatprep.subr.bf16.mxu0 %v5145_v0  ;;  %3086 = vmatprep.subr.bf16.mxu1 %v5148_v32 }
 0x19b   : > { %1679 = vmatmul.mubr.bf16.gmra.mrb[40].mxu0 %v5849_v51  ;;  %1905 = vmatmul.mubr.bf16.gmra.mrb[40].mxu1 %v5849_v51  ;;  %v5166_v51 = vld [vmem:[#allocation5 + $0xec] ss:$16 sps:$4 sm:$0xff]  }
 0x19c   : > { %1688 = vmatprep.mubr.bf16.mxu0 %v5863_v31  ;;  %1914 = vmatprep.mubr.bf16.mxu1 %v5863_v31  ;;  %v5161_v31 = vld [vmem:[#allocation5 + $0xe0] ss:$16 sps:$4 sm:$0xff]  }
 0x19d   : > { %2861 = vmatpush1.bf16.msra.mxu0 %v5143_v33  ;;  %3087 = vmatpush1.bf16.msra.mxu1 %v5146_v34 }
 0x19e   : > { %2862 = vmatprep.subr.bf16.mxu0 %v5151_v36  ;;  %3088 = vmatprep.subr.bf16.mxu1 %v5154_v7 }
 0x1a1   : > { %2863 = vmatpush1.bf16.msra.mxu0 %v5149_v54  ;;  %3089 = vmatpush1.bf16.msra.mxu1 %v5152_v40 }
 0x1a2   : > { %2864 = vmatprep.subr.bf16.mxu0 %v5157_v42  ;;  %3090 = vmatprep.subr.bf16.mxu1 %v5160_v43 }
 0x1a3   : > { %1689 = vmatmul.mubr.bf16.gmra.mrb[44].mxu0 %v5861_v28  ;;  %1915 = vmatmul.mubr.bf16.gmra.mrb[44].mxu1 %v5861_v28  ;;  %v5178_v28 = vld [vmem:[#allocation5 + $0x12c] ss:$16 sps:$4 sm:$0xff]  }
 0x1a4   : > { %1698 = vmatprep.mubr.bf16.mxu0 %v5875_v15  ;;  %1924 = vmatprep.mubr.bf16.mxu1 %v5875_v15  ;;  %v5173_v15 = vld [vmem:[#allocation5 + $0x120] ss:$16 sps:$4 sm:$0xff]  }
 0x1a5   : > { %2865 = vmatpush1.bf16.msra.mxu0 %v5155_v38  ;;  %3091 = vmatpush1.bf16.msra.mxu1 %v5158_v45 }
 0x1a6   : > { %2866 = vmatprep.subr.bf16.mxu0 %v5163_v46  ;;  %3092 = vmatprep.subr.bf16.mxu1 %v5166_v51 }
 0x1a9   : > { %2867 = vmatpush1.bf16.msra.mxu0 %v5161_v31  ;;  %3093 = vmatpush1.bf16.msra.mxu1 %v5164_v48 }
 0x1aa   : > { %2868 = vmatprep.subr.bf16.mxu0 %v5169_v52  ;;  %3094 = vmatprep.subr.bf16.mxu1 %v5172_v39 }
 0x1ab   : > { %1699 = vmatmul.mubr.bf16.gmra.mrb[48].mxu0 %v5873_v13  ;;  %1925 = vmatmul.mubr.bf16.gmra.mrb[48].mxu1 %v5873_v13  ;;  %v5190_v13 = vld [vmem:[#allocation5 + $0x16c] ss:$16 sps:$4 sm:$0xff]  }
 0x1ac   : > { %1708 = vmatprep.mubr.bf16.mxu0 %v5887_v1  ;;  %1934 = vmatprep.mubr.bf16.mxu1 %v5887_v1  ;;  %v5185_v1 = vld [vmem:[#allocation5 + $0x160] ss:$16 sps:$4 sm:$0xff]  }
 0x1ad   : > { %2869 = vmatpush1.bf16.msra.mxu0 %v5167_v55  ;;  %3095 = vmatpush1.bf16.msra.mxu1 %v5170_v56 }
 0x1ae   : > { %2870 = vmatprep.subr.bf16.mxu0 %v5175_v57  ;;  %3096 = vmatprep.subr.bf16.mxu1 %v5178_v28 }
 0x1b1   : > { %2871 = vmatpush1.bf16.msra.mxu0 %v5173_v15  ;;  %3097 = vmatpush1.bf16.msra.mxu1 %v5176_v58 }
 0x1b2   : > { %2872 = vmatprep.subr.bf16.mxu0 %v5181_v59  ;;  %3098 = vmatprep.subr.bf16.mxu1 %v5184_v60  ;;  %v5215_v60 = vld [vmem:[#allocation5 + $0x200] ss:$16 sps:$4 sm:$0xff]  }
 0x1b3   : > { %1709 = vmatmul.mubr.bf16.gmra.mrb[52].mxu0 %v5885_v62  ;;  %1935 = vmatmul.mubr.bf16.gmra.mrb[52].mxu1 %v5885_v62  ;;  %v5202_v62 = vld [vmem:[#allocation5 + $0x1ac] ss:$16 sps:$4 sm:$0xff]  }
 0x1b4   : > { %1718 = vmatprep.mubr.bf16.mxu0 %v5899_v49  ;;  %1944 = vmatprep.mubr.bf16.mxu1 %v5899_v49  ;;  %v5197_v49 = vld [vmem:[#allocation5 + $0x1a0] ss:$16 sps:$4 sm:$0xff]  }
 0x1b5   : > { %2873 = vmatpush1.bf16.msra.mxu0 %v5179_v61  ;;  %3099 = vmatpush1.bf16.msra.mxu1 %v5182_v63  ;;  %v5218_v61 = vld [vmem:[#allocation5 + $0x208] ss:$16 sps:$4 sm:$0xff]  }
 0x1b6   : > { %2874 = vmatprep.subr.bf16.mxu0 %v5187_v2  ;;  %3100 = vmatprep.subr.bf16.mxu1 %v5190_v13 }
 0x1b9   : > { %2875 = vmatpush1.bf16.msra.mxu0 %v5185_v1  ;;  %3101 = vmatpush1.bf16.msra.mxu1 %v5188_v3  ;;  %v5223_v3 = vld [vmem:[#allocation5 + $0x224] ss:$16 sps:$4 sm:$0xff]  }
 0x1ba   : > { %2876 = vmatprep.subr.bf16.mxu0 %v5193_v4  ;;  %3102 = vmatprep.subr.bf16.mxu1 %v5196_v5  ;;  %v5226_v4 = vld [vmem:[#allocation5 + $0x22c] ss:$16 sps:$4 sm:$0xff]  }
 0x1bb   : > { %1719 = vmatmul.mubr.bf16.gmra.mrb[56].mxu0 %v5897_v47  ;;  %1945 = vmatmul.mubr.bf16.gmra.mrb[56].mxu1 %v5897_v47  ;;  %v5206_v47 = vld [vmem:[#allocation5 + $0x1c8] ss:$16 sps:$4 sm:$0xff]  }
 0x1bc   : > { %1728 = vmatprep.mubr.bf16.mxu0 %v5909_v17  ;;  %1954 = vmatprep.mubr.bf16.mxu1 %v5909_v17  ;;  %v5211_v17 = vld [vmem:[#allocation5 + $0x1e4] ss:$16 sps:$4 sm:$0xff]  }
 0x1bd   : > { %2877 = vmatpush1.bf16.msra.mxu0 %v5191_v6  ;;  %3103 = vmatpush1.bf16.msra.mxu1 %v5194_v8 }
 0x1be   : > { %2878 = vmatprep.subr.bf16.mxu0 %v5199_v10  ;;  %3104 = vmatprep.subr.bf16.mxu1 %v5202_v62 }
 0x1c1   : > { %2879 = vmatpush1.bf16.msra.mxu0 %v5197_v49  ;;  %3105 = vmatpush1.bf16.msra.mxu1 %v5200_v11 }
 0x1c2   : > { %2880 = vmatprep.subr.bf16.mxu0 %v5205_v12  ;;  %3106 = vmatprep.subr.bf16.mxu1 %v5208_v14 }
 0x1c3   : > { %1729 = vmatmul.mubr.bf16.gmra.mrb[60].mxu0 %v5907_v50  ;;  %1955 = vmatmul.mubr.bf16.gmra.mrb[60].mxu1 %v5907_v50  ;;  %v851_v50 = vld [vmem:[#allocation7 + $0x1] ss:$8 sm:$0xf] }
 0x1c4   : > { %v5942_v21 = vrot.slane %v851_v50, %v5793_v35  ;;  %v5945_v22 = vrot.slane %v851_v50, %v5803_v41  ;;  %v5948_v23 = vrot.slane %v851_v50, %v5795_v37  ;;  %v5951_v24 = vrot.slane %v851_v50, %v5806_v44  ;;  %v5232_v50 = vld [vmem:[#allocation5 + $0x24c] ss:$16 sps:$4 sm:$0xff]  }
 0x1c5   : > { %2881 = vmatpush1.bf16.msra.mxu0 %v5203_v16  ;;  %3107 = vmatpush1.bf16.msra.mxu1 %v5206_v47  ;;  %v5221_v47 = vld [vmem:[#allocation5 + $0x220] ss:$16 sps:$4 sm:$0xff]  }
 0x1c6   : > { %2882 = vmatprep.subr.bf16.mxu0 %v5211_v17  ;;  %3108 = vmatprep.subr.bf16.mxu1 %v5214_v53  ;;  %v5224_v17 = vld [vmem:[#allocation5 + $0x228] ss:$16 sps:$4 sm:$0xff]   ;;  %v5229_v53 = vld [vmem:[#allocation5 + $0x244] ss:$16 sps:$4 sm:$0xff]  }
 0x1c9   : > { %2883 = vmatpush1.bf16.msra.mxu0 %v5209_v18  ;;  %3109 = vmatpush1.bf16.msra.mxu1 %v5212_v19 }
 0x1ca   : > { %2965 = vmatprep.subr.bf16.mxu0 %v5217_v20  ;;  %3191 = vmatprep.subr.bf16.mxu1 %v5220_v29 }
 0x25e   : > { %v1660_v25 = vpop.f32.mrb[32].mxu0  ;;  %v1886_v26 = vpop.f32.mrb[32].mxu1 }
 0x25f   : > { %v4590_v27 = vadd.f32 %v1660_v25, %v5942_v21  ;;  %v4622_v9 = vadd.f32 %v1886_v26, %v5945_v22  ;;  %v1662_v30 = vpop.f32.mrb[33].mxu0  ;;  %v1888_v0 = vpop.f32.mrb[33].mxu1 }
 0x260   : > { %v4591_v32 = vadd.f32 %v1662_v30, %v5948_v23  ;;  %v4623_v33 = vadd.f32 %v1888_v0, %v5951_v24  ;;  %v1664_v34 = vpop.f32.mrb[34].mxu0  ;;  %v1890_v36 = vpop.f32.mrb[34].mxu1 }
 0x261   : > { %v4592_v7 = vadd.f32 %v1664_v34, %v5942_v21  ;;  %v4624_v54 = vadd.f32 %v1890_v36, %v5945_v22  ;;  %v1666_v40 = vpop.f32.mrb[35].mxu0  ;;  %v1892_v42 = vpop.f32.mrb[35].mxu1  ;;  %v1965_v45 = vmax.f32 %v4590_v27, 0.0  ;;  %v1967_v46 = vmax.f32 %v4622_v9, 0.0 }
 0x262   : > { %v4593_v43 = vadd.f32 %v1666_v40, %v5948_v23  ;;  %v4625_v38 = vadd.f32 %v1892_v42, %v5951_v24  ;;  %v1966_v48 = vmax.f32 %v4591_v32, 0.0  ;;  %v1968_v52 = vmax.f32 %v4623_v33, 0.0 }
 0x263   : > { %v1969_v51 = vmax.f32 %v4592_v7, 0.0  ;;  %v1971_v31 = vmax.f32 %v4624_v54, 0.0  ;;  %v5227_v7 = vld [vmem:[#allocation5 + $0x240] ss:$16 sps:$4 sm:$0xff]   ;;  %v5230_v54 = vld [vmem:[#allocation5 + $0x248] ss:$16 sps:$4 sm:$0xff]  }
 0x264   : > { %v1970_v39 = vmax.f32 %v4593_v43, 0.0  ;;  %v1972_v55 = vmax.f32 %v4625_v38, 0.0 }
 0x265   : > { %v2029_v56 = vpack.c.bf16 %v1969_v51, %v1965_v45  ;;  %v5961_v57 = vpack.c.bf16 %v1971_v31, %v1967_v46  ;;  %v5235_v45 = vld [vmem:[#allocation5 + $0x264] ss:$16 sps:$4 sm:$0xff]   ;;  %v5238_v46 = vld [vmem:[#allocation5 + $0x26c] ss:$16 sps:$4 sm:$0xff]  }
 0x266   : > { %v2030_v28 = vpack.c.bf16 %v1970_v39, %v1966_v48  ;;  %v5963_v15 = vpack.c.bf16 %v1972_v55, %v1968_v52  ;;  %v1670_v58 = vpop.f32.mrb[36].mxu0  ;;  %v1896_v59 = vpop.f32.mrb[36].mxu1 }
 0x267   : > { %v4594_v63 = vadd.f32 %v1670_v58, %v5942_v21  ;;  %v4626_v2 = vadd.f32 %v1896_v59, %v5945_v22  ;;  %v1672_v13 = vpop.f32.mrb[37].mxu0  ;;  %v1898_v1 = vpop.f32.mrb[37].mxu1 }
 0x268   : > { %v4595_v5 = vadd.f32 %v1672_v13, %v5948_v23  ;;  %v4627_v6 = vadd.f32 %v1898_v1, %v5951_v24  ;;  %v1674_v8 = vpop.f32.mrb[38].mxu0  ;;  %v1900_v10 = vpop.f32.mrb[38].mxu1  ;;  %2884 = vmatprep.mubr.bf16.mxu0 %v2030_v28  ;;  %3110 = vmatprep.mubr.bf16.mxu1 %v2030_v28 }
 0x269   : > { %v4596_v62 = vadd.f32 %v1674_v8, %v5942_v21  ;;  %v4628_v49 = vadd.f32 %v1900_v10, %v5945_v22  ;;  %v1676_v11 = vpop.f32.mrb[39].mxu0  ;;  %v1902_v12 = vpop.f32.mrb[39].mxu1  ;;  %2885 = vmatmul.mubr.bf16.vlgmr.msra.gmra.mrb[64].mxu0 %v2029_v56  ;;  %3111 = vmatmul.mubr.bf16.vlgmr.msra.gmra.mrb[64].mxu1 %v2029_v56  ;;  %v1973_v18 = vmax.f32 %v4594_v63, 0.0  ;;  %v1975_v19 = vmax.f32 %v4626_v2, 0.0  ;;  %v5241_v63 = vld [vmem:[#allocation5 + $0x284] ss:$16 sps:$4 sm:$0xff]  }
 0x26a   : > { %v4597_v14 = vadd.f32 %v1676_v11, %v5948_v23  ;;  %v4629_v16 = vadd.f32 %v1902_v12, %v5951_v24  ;;  %2966 = vmatpush1.bf16.msra.mxu0 %v5215_v60  ;;  %3192 = vmatpush1.bf16.msra.mxu1 %v5218_v61  ;;  %v1974_v25 = vmax.f32 %v4595_v5, 0.0  ;;  %v1976_v26 = vmax.f32 %v4627_v6, 0.0  ;;  %v5233_v60 = vld [vmem:[#allocation5 + $0x260] ss:$16 sps:$4 sm:$0xff]   ;;  %v5236_v61 = vld [vmem:[#allocation5 + $0x268] ss:$16 sps:$4 sm:$0xff]  }
 0x26b   : > { %v1977_v20 = vmax.f32 %v4596_v62, 0.0  ;;  %v1979_v29 = vmax.f32 %v4628_v49, 0.0  ;;  %2967 = vmatprep.subr.bf16.mxu0 %v5223_v3  ;;  %3193 = vmatprep.subr.bf16.mxu1 %v5226_v4  ;;  %v5244_v4 = vld [vmem:[#allocation5 + $0x28c] ss:$16 sps:$4 sm:$0xff]  }
 0x26c   : > { %v1978_v27 = vmax.f32 %v4597_v14, 0.0  ;;  %v1980_v9 = vmax.f32 %v4629_v16, 0.0 }
 0x26d   : > { %v2033_v30 = vpack.c.bf16 %v1977_v20, %v1973_v18  ;;  %v5973_v0 = vpack.c.bf16 %v1979_v29, %v1975_v19  ;;  %v5247_v29 = vld [vmem:[#allocation5 + $0x2a4] ss:$16 sps:$4 sm:$0xff]  }
 0x26e   : > { %v2034_v32 = vpack.c.bf16 %v1978_v27, %v1974_v25  ;;  %v5975_v33 = vpack.c.bf16 %v1980_v9, %v1976_v26  ;;  %2968 = vmatpush1.bf16.msra.mxu0 %v5221_v47  ;;  %v1680_v34 = vpop.f32.mrb[40].mxu0  ;;  %v1906_v36 = vpop.f32.mrb[40].mxu1  ;;  %3194 = vmatpush1.bf16.msra.mxu1 %v5224_v17  ;;  %v5239_v47 = vld [vmem:[#allocation5 + $0x280] ss:$16 sps:$4 sm:$0xff]   ;;  %v5242_v17 = vld [vmem:[#allocation5 + $0x288] ss:$16 sps:$4 sm:$0xff]  }
 0x26f   : > { %v4598_v40 = vadd.f32 %v1680_v34, %v5942_v21  ;;  %v4630_v42 = vadd.f32 %v1906_v36, %v5945_v22  ;;  %v1682_v43 = vpop.f32.mrb[41].mxu0  ;;  %v1908_v38 = vpop.f32.mrb[41].mxu1  ;;  %2969 = vmatprep.subr.bf16.mxu0 %v5229_v53  ;;  %3195 = vmatprep.subr.bf16.mxu1 %v5232_v50  ;;  %v5250_v50 = vld [vmem:[#allocation5 + $0x2ac] ss:$16 sps:$4 sm:$0xff]  }
 0x270   : > { %v4599_v51 = vadd.f32 %v1682_v43, %v5948_v23  ;;  %v4631_v31 = vadd.f32 %v1908_v38, %v5951_v24  ;;  %v1684_v48 = vpop.f32.mrb[42].mxu0  ;;  %v1910_v52 = vpop.f32.mrb[42].mxu1  ;;  %2894 = vmatprep.mubr.bf16.mxu0 %v2034_v32  ;;  %3120 = vmatprep.mubr.bf16.mxu1 %v2034_v32  ;;  %v5253_v43 = vld [vmem:[#allocation5 + $0x2c4] ss:$16 sps:$4 sm:$0xff]  }
 0x271   : > { %v4600_v39 = vadd.f32 %v1684_v48, %v5942_v21  ;;  %v4632_v55 = vadd.f32 %v1910_v52, %v5945_v22  ;;  %v1686_v56 = vpop.f32.mrb[43].mxu0  ;;  %v1912_v28 = vpop.f32.mrb[43].mxu1  ;;  %2895 = vmatmul.mubr.bf16.gmra.mrb[68].mxu0 %v2033_v30  ;;  %3121 = vmatmul.mubr.bf16.gmra.mrb[68].mxu1 %v2033_v30  ;;  %v1981_v2 = vmax.f32 %v4598_v40, 0.0  ;;  %v1983_v13 = vmax.f32 %v4630_v42, 0.0  ;;  %v5245_v40 = vld [vmem:[#allocation5 + $0x2a0] ss:$16 sps:$4 sm:$0xff]  }
 0x272   : > { %v4601_v58 = vadd.f32 %v1686_v56, %v5948_v23  ;;  %v4633_v59 = vadd.f32 %v1912_v28, %v5951_v24  ;;  %2970 = vmatpush1.bf16.msra.mxu0 %v5227_v7  ;;  %3196 = vmatpush1.bf16.msra.mxu1 %v5230_v54  ;;  %v1982_v5 = vmax.f32 %v4599_v51, 0.0  ;;  %v1984_v6 = vmax.f32 %v4631_v31, 0.0  ;;  %v5248_v42 = vld [vmem:[#allocation5 + $0x2a8] ss:$16 sps:$4 sm:$0xff]   ;;  %v5256_v31 = vld [vmem:[#allocation5 + $0x2cc] ss:$16 sps:$4 sm:$0xff]  }
 0x273   : > { %v1985_v1 = vmax.f32 %v4600_v39, 0.0  ;;  %v1987_v3 = vmax.f32 %v4632_v55, 0.0  ;;  %2971 = vmatprep.subr.bf16.mxu0 %v5235_v45  ;;  %3197 = vmatprep.subr.bf16.mxu1 %v5238_v46 }
 0x274   : > { %v1986_v8 = vmax.f32 %v4601_v58, 0.0  ;;  %v1988_v10 = vmax.f32 %v4633_v59, 0.0 }
 0x275   : > { %v2037_v62 = vpack.c.bf16 %v1985_v1, %v1981_v2  ;;  %v5985_v49 = vpack.c.bf16 %v1987_v3, %v1983_v13  ;;  %v5254_v2 = vld [vmem:[#allocation5 + $0x2c8] ss:$16 sps:$4 sm:$0xff]  }
 0x276   : > { %v2038_v11 = vpack.c.bf16 %v1986_v8, %v1982_v5  ;;  %v5987_v12 = vpack.c.bf16 %v1988_v10, %v1984_v6  ;;  %2972 = vmatpush1.bf16.msra.mxu0 %v5233_v60  ;;  %v1690_v14 = vpop.f32.mrb[44].mxu0  ;;  %v1916_v16 = vpop.f32.mrb[44].mxu1  ;;  %3198 = vmatpush1.bf16.msra.mxu1 %v5236_v61  ;;  %v5259_v5 = vld [vmem:[#allocation5 + $0x2e4] ss:$16 sps:$4 sm:$0xff]   ;;  %v5262_v6 = vld [vmem:[#allocation5 + $0x2ec] ss:$16 sps:$4 sm:$0xff]  }
 0x277   : > { %v4602_v53 = vadd.f32 %v1690_v14, %v5942_v21  ;;  %v4634_v18 = vadd.f32 %v1916_v16, %v5945_v22  ;;  %v1692_v19 = vpop.f32.mrb[45].mxu0  ;;  %v1918_v20 = vpop.f32.mrb[45].mxu1  ;;  %2973 = vmatprep.subr.bf16.mxu0 %v5241_v63  ;;  %3199 = vmatprep.subr.bf16.mxu1 %v5244_v4  ;;  %v5251_v63 = vld [vmem:[#allocation5 + $0x2c0] ss:$16 sps:$4 sm:$0xff]  }
 0x278   : > { %v4603_v25 = vadd.f32 %v1692_v19, %v5948_v23  ;;  %v4635_v26 = vadd.f32 %v1918_v20, %v5951_v24  ;;  %v1694_v27 = vpop.f32.mrb[46].mxu0  ;;  %v1920_v9 = vpop.f32.mrb[46].mxu1  ;;  %2904 = vmatprep.mubr.bf16.mxu0 %v2038_v11  ;;  %3130 = vmatprep.mubr.bf16.mxu1 %v2038_v11  ;;  %v5257_v19 = vld [vmem:[#allocation5 + $0x2e0] ss:$16 sps:$4 sm:$0xff]   ;;  %v5260_v20 = vld [vmem:[#allocation5 + $0x2e8] ss:$16 sps:$4 sm:$0xff]  }
 0x279   : > { %v4604_v30 = vadd.f32 %v1694_v27, %v5942_v21  ;;  %v4636_v32 = vadd.f32 %v1920_v9, %v5945_v22  ;;  %v1696_v34 = vpop.f32.mrb[47].mxu0  ;;  %v1922_v36 = vpop.f32.mrb[47].mxu1  ;;  %2905 = vmatmul.mubr.bf16.gmra.mrb[72].mxu0 %v2037_v62  ;;  %3131 = vmatmul.mubr.bf16.gmra.mrb[72].mxu1 %v2037_v62  ;;  %v1989_v38 = vmax.f32 %v4602_v53, 0.0  ;;  %v1991_v45 = vmax.f32 %v4634_v18, 0.0  ;;  %v5268_v9 = vld [vmem:[#allocation5 + $0x30c] ss:$16 sps:$4 sm:$0xff]  }
 0x27a   : > { %v4605_v7 = vadd.f32 %v1696_v34, %v5948_v23  ;;  %v4637_v54 = vadd.f32 %v1922_v36, %v5951_v24  ;;  %2974 = vmatpush1.bf16.msra.mxu0 %v5239_v47  ;;  %3200 = vmatpush1.bf16.msra.mxu1 %v5242_v17  ;;  %v1990_v48 = vmax.f32 %v4603_v25, 0.0  ;;  %v1992_v52 = vmax.f32 %v4635_v26, 0.0 }
 0x27b   : > { %v1993_v46 = vmax.f32 %v4604_v30, 0.0  ;;  %v1995_v51 = vmax.f32 %v4636_v32, 0.0  ;;  %2975 = vmatprep.subr.bf16.mxu0 %v5247_v29  ;;  %3201 = vmatprep.subr.bf16.mxu1 %v5250_v50  ;;  %v5265_v29 = vld [vmem:[#allocation5 + $0x304] ss:$16 sps:$4 sm:$0xff]  }
 0x27c   : > { %v1994_v39 = vmax.f32 %v4605_v7, 0.0  ;;  %v1996_v55 = vmax.f32 %v4637_v54, 0.0 }
 0x27d   : > { %v2041_v56 = vpack.c.bf16 %v1993_v46, %v1989_v38  ;;  %v5997_v28 = vpack.c.bf16 %v1995_v51, %v1991_v45  ;;  %v5263_v45 = vld [vmem:[#allocation5 + $0x300] ss:$16 sps:$4 sm:$0xff]   ;;  %v5266_v46 = vld [vmem:[#allocation5 + $0x308] ss:$16 sps:$4 sm:$0xff]  }
 0x27e   : > { %v2042_v58 = vpack.c.bf16 %v1994_v39, %v1990_v48  ;;  %v5999_v59 = vpack.c.bf16 %v1996_v55, %v1992_v52  ;;  %2976 = vmatpush1.bf16.msra.mxu0 %v5245_v40  ;;  %v1700_v60 = vpop.f32.mrb[48].mxu0  ;;  %v1926_v61 = vpop.f32.mrb[48].mxu1  ;;  %3202 = vmatpush1.bf16.msra.mxu1 %v5248_v42  ;;  %v5271_v39 = vld [vmem:[#allocation5 + $0x324] ss:$16 sps:$4 sm:$0xff]   ;;  %v5274_v55 = vld [vmem:[#allocation5 + $0x32c] ss:$16 sps:$4 sm:$0xff]  }
 0x27f   : > { %v4606_v13 = vadd.f32 %v1700_v60, %v5942_v21  ;;  %v4638_v1 = vadd.f32 %v1926_v61, %v5945_v22  ;;  %v1702_v3 = vpop.f32.mrb[49].mxu0  ;;  %v1928_v4 = vpop.f32.mrb[49].mxu1  ;;  %2977 = vmatprep.subr.bf16.mxu0 %v5253_v43  ;;  %3203 = vmatprep.subr.bf16.mxu1 %v5256_v31 }
 0x280   : > { %v4607_v8 = vadd.f32 %v1702_v3, %v5948_v23  ;;  %v4639_v10 = vadd.f32 %v1928_v4, %v5951_v24  ;;  %v1704_v62 = vpop.f32.mrb[50].mxu0  ;;  %v1930_v11 = vpop.f32.mrb[50].mxu1  ;;  %2914 = vmatprep.mubr.bf16.mxu0 %v2042_v58  ;;  %3140 = vmatprep.mubr.bf16.mxu1 %v2042_v58 }
 0x281   : > { %v4608_v14 = vadd.f32 %v1704_v62, %v5942_v21  ;;  %v4640_v16 = vadd.f32 %v1930_v11, %v5945_v22  ;;  %v1706_v47 = vpop.f32.mrb[51].mxu0  ;;  %v1932_v17 = vpop.f32.mrb[51].mxu1  ;;  %2915 = vmatmul.mubr.bf16.gmra.mrb[76].mxu0 %v2041_v56  ;;  %3141 = vmatmul.mubr.bf16.gmra.mrb[76].mxu1 %v2041_v56  ;;  %v1997_v50 = vmax.f32 %v4606_v13, 0.0  ;;  %v1999_v25 = vmax.f32 %v4638_v1, 0.0 }
 0x282   : > { %v4609_v53 = vadd.f32 %v1706_v47, %v5948_v23  ;;  %v4641_v18 = vadd.f32 %v1932_v17, %v5951_v24  ;;  %2978 = vmatpush1.bf16.msra.mxu0 %v5251_v63  ;;  %3204 = vmatpush1.bf16.msra.mxu1 %v5254_v2  ;;  %v1998_v30 = vmax.f32 %v4607_v8, 0.0  ;;  %v2000_v32 = vmax.f32 %v4639_v10, 0.0  ;;  %v5277_v8 = vld [vmem:[#allocation5 + $0x344] ss:$16 sps:$4 sm:$0xff]  }
 0x283   : > { %v2001_v26 = vmax.f32 %v4608_v14, 0.0  ;;  %v2003_v27 = vmax.f32 %v4640_v16, 0.0  ;;  %2979 = vmatprep.subr.bf16.mxu0 %v5259_v5  ;;  %3205 = vmatprep.subr.bf16.mxu1 %v5262_v6  ;;  %v5269_v5 = vld [vmem:[#allocation5 + $0x320] ss:$16 sps:$4 sm:$0xff]   ;;  %v5272_v6 = vld [vmem:[#allocation5 + $0x328] ss:$16 sps:$4 sm:$0xff]  }
 0x284   : > { %v2002_v34 = vmax.f32 %v4609_v53, 0.0  ;;  %v2004_v36 = vmax.f32 %v4641_v18, 0.0  ;;  %v5280_v16 = vld [vmem:[#allocation5 + $0x34c] ss:$16 sps:$4 sm:$0xff]  }
 0x285   : > { %v2045_v7 = vpack.c.bf16 %v2001_v26, %v1997_v50  ;;  %v6009_v54 = vpack.c.bf16 %v2003_v27, %v1999_v25  ;;  %v5275_v27 = vld [vmem:[#allocation5 + $0x340] ss:$16 sps:$4 sm:$0xff]  }
 0x286   : > { %v2046_v40 = vpack.c.bf16 %v2002_v34, %v1998_v30  ;;  %v6011_v42 = vpack.c.bf16 %v2004_v36, %v2000_v32  ;;  %2980 = vmatpush1.bf16.msra.mxu0 %v5257_v19  ;;  %v1710_v43 = vpop.f32.mrb[52].mxu0  ;;  %v1936_v38 = vpop.f32.mrb[52].mxu1  ;;  %3206 = vmatpush1.bf16.msra.mxu1 %v5260_v20 }
 0x287   : > { %v4610_v51 = vadd.f32 %v1710_v43, %v5942_v21  ;;  %v4642_v31 = vadd.f32 %v1936_v38, %v5945_v22  ;;  %v1712_v48 = vpop.f32.mrb[53].mxu0  ;;  %v1938_v52 = vpop.f32.mrb[53].mxu1  ;;  %2981 = vmatprep.subr.bf16.mxu0 %v5265_v29  ;;  %3207 = vmatprep.subr.bf16.mxu1 %v5268_v9  ;;  %v5278_v9 = vld [vmem:[#allocation5 + $0x348] ss:$16 sps:$4 sm:$0xff]  }
 0x288   : > { %v4611_v56 = vadd.f32 %v1712_v48, %v5948_v23  ;;  %v4643_v58 = vadd.f32 %v1938_v52, %v5951_v24  ;;  %v1714_v60 = vpop.f32.mrb[54].mxu0  ;;  %v1940_v61 = vpop.f32.mrb[54].mxu1  ;;  %2924 = vmatprep.mubr.bf16.mxu0 %v2046_v40  ;;  %3150 = vmatprep.mubr.bf16.mxu1 %v2046_v40  ;;  %v5286_v40 = vld [vmem:[#allocation5 + $0x36c] ss:$16 sps:$4 sm:$0xff]  }
 0x289   : > { %v4612_v63 = vadd.f32 %v1714_v60, %v5942_v21  ;;  %v4644_v2 = vadd.f32 %v1940_v61, %v5945_v22  ;;  %v1716_v13 = vpop.f32.mrb[55].mxu0  ;;  %v1942_v1 = vpop.f32.mrb[55].mxu1  ;;  %2925 = vmatmul.mubr.bf16.gmra.mrb[80].mxu0 %v2045_v7  ;;  %3151 = vmatmul.mubr.bf16.gmra.mrb[80].mxu1 %v2045_v7  ;;  %v2005_v10 = vmax.f32 %v4610_v51, 0.0  ;;  %v2007_v62 = vmax.f32 %v4642_v31, 0.0  ;;  %v5283_v7 = vld [vmem:[#allocation5 + $0x364] ss:$16 sps:$4 sm:$0xff]  }
 0x28a   : > { %v4613_v3 = vadd.f32 %v1716_v13, %v5948_v23  ;;  %v4645_v4 = vadd.f32 %v1942_v1, %v5951_v24  ;;  %2982 = vmatpush1.bf16.msra.mxu0 %v5263_v45  ;;  %3208 = vmatpush1.bf16.msra.mxu1 %v5266_v46  ;;  %v2006_v47 = vmax.f32 %v4611_v56, 0.0  ;;  %v2008_v17 = vmax.f32 %v4643_v58, 0.0  ;;  %v5281_v56 = vld [vmem:[#allocation5 + $0x360] ss:$16 sps:$4 sm:$0xff]   ;;  %v5284_v58 = vld [vmem:[#allocation5 + $0x368] ss:$16 sps:$4 sm:$0xff]  }
 0x28b   : > { %v2009_v11 = vmax.f32 %v4612_v63, 0.0  ;;  %v2011_v14 = vmax.f32 %v4644_v2, 0.0  ;;  %2983 = vmatprep.subr.bf16.mxu0 %v5271_v39  ;;  %3209 = vmatprep.subr.bf16.mxu1 %v5274_v55  ;;  %v5289_v60 = vld [vmem:[#allocation5 + $0x384] ss:$16 sps:$4 sm:$0xff]   ;;  %v5292_v1 = vld [vmem:[#allocation5 + $0x38c] ss:$16 sps:$4 sm:$0xff]  }
 0x28c   : > { %v2010_v53 = vmax.f32 %v4613_v3, 0.0  ;;  %v2012_v18 = vmax.f32 %v4645_v4, 0.0 }
 0x28d   : > { %v2049_v19 = vpack.c.bf16 %v2009_v11, %v2005_v10  ;;  %v6021_v20 = vpack.c.bf16 %v2011_v14, %v2007_v62 }
 0x28e   : > { %v2050_v29 = vpack.c.bf16 %v2010_v53, %v2006_v47  ;;  %v6023_v50 = vpack.c.bf16 %v2012_v18, %v2008_v17  ;;  %2984 = vmatpush1.bf16.msra.mxu0 %v5269_v5  ;;  %v1720_v25 = vpop.f32.mrb[56].mxu0  ;;  %v1946_v26 = vpop.f32.mrb[56].mxu1  ;;  %3210 = vmatpush1.bf16.msra.mxu1 %v5272_v6  ;;  %v5287_v47 = vld [vmem:[#allocation5 + $0x380] ss:$16 sps:$4 sm:$0xff]   ;;  %v5290_v17 = vld [vmem:[#allocation5 + $0x388] ss:$16 sps:$4 sm:$0xff]  }
 0x28f   : > { %v4614_v30 = vadd.f32 %v1720_v25, %v5942_v21  ;;  %v4646_v32 = vadd.f32 %v1946_v26, %v5945_v22  ;;  %v1722_v34 = vpop.f32.mrb[57].mxu0  ;;  %v1948_v36 = vpop.f32.mrb[57].mxu1  ;;  %2985 = vmatprep.subr.bf16.mxu0 %v5277_v8  ;;  %3211 = vmatprep.subr.bf16.mxu1 %v5280_v16  ;;  %v5295_v25 = vld [vmem:[#allocation5 + $0x3a4] ss:$16 sps:$4 sm:$0xff]   ;;  %v5298_v26 = vld [vmem:[#allocation5 + $0x3ac] ss:$16 sps:$4 sm:$0xff]  }
 0x290   : > { %v4615_v43 = vadd.f32 %v1722_v34, %v5948_v23  ;;  %v4647_v38 = vadd.f32 %v1948_v36, %v5951_v24  ;;  %v1724_v45 = vpop.f32.mrb[58].mxu0  ;;  %v1950_v46 = vpop.f32.mrb[58].mxu1  ;;  %2934 = vmatprep.mubr.bf16.mxu0 %v2050_v29  ;;  %3160 = vmatprep.mubr.bf16.mxu1 %v2050_v29 }
 0x291   : > { %v4616_v51 = vadd.f32 %v1724_v45, %v5942_v21  ;;  %v4648_v31 = vadd.f32 %v1950_v46, %v5945_v22  ;;  %v1726_v48 = vpop.f32.mrb[59].mxu0  ;;  %v1952_v52 = vpop.f32.mrb[59].mxu1  ;;  %2935 = vmatmul.mubr.bf16.gmra.mrb[84].mxu0 %v2049_v19  ;;  %3161 = vmatmul.mubr.bf16.gmra.mrb[84].mxu1 %v2049_v19  ;;  %v2013_v61 = vmax.f32 %v4614_v30, 0.0  ;;  %v2015_v63 = vmax.f32 %v4646_v32, 0.0  ;;  %v5293_v45 = vld [vmem:[#allocation5 + $0x3a0] ss:$16 sps:$4 sm:$0xff]  }
 0x292   : > { %v4617_v39 = vadd.f32 %v1726_v48, %v5948_v23  ;;  %v4649_v55 = vadd.f32 %v1952_v52, %v5951_v24  ;;  %2986 = vmatpush1.bf16.msra.mxu0 %v5275_v27  ;;  %3212 = vmatpush1.bf16.msra.mxu1 %v5278_v9  ;;  %v2014_v3 = vmax.f32 %v4615_v43, 0.0  ;;  %v2016_v4 = vmax.f32 %v4647_v38, 0.0  ;;  %v5296_v46 = vld [vmem:[#allocation5 + $0x3a8] ss:$16 sps:$4 sm:$0xff]  }
 0x293   : > { %v2017_v2 = vmax.f32 %v4616_v51, 0.0  ;;  %v2019_v13 = vmax.f32 %v4648_v31, 0.0  ;;  %2987 = vmatprep.subr.bf16.mxu0 %v5283_v7  ;;  %3213 = vmatprep.subr.bf16.mxu1 %v5286_v40  ;;  %v5301_v51 = vld [vmem:[#allocation5 + $0x3c4] ss:$16 sps:$4 sm:$0xff]  }
 0x294   : > { %v2018_v5 = vmax.f32 %v4617_v39, 0.0  ;;  %v2020_v6 = vmax.f32 %v4649_v55, 0.0 }
 0x295   : > { %v2053_v8 = vpack.c.bf16 %v2017_v2, %v2013_v61  ;;  %v6033_v10 = vpack.c.bf16 %v2019_v13, %v2015_v63  ;;  %v5299_v63 = vld [vmem:[#allocation5 + $0x3c0] ss:$16 sps:$4 sm:$0xff]   ;;  %v5302_v2 = vld [vmem:[#allocation5 + $0x3c8] ss:$16 sps:$4 sm:$0xff]   ;;  %v5307_v13 = vld [vmem:[#allocation5 + $0x3e4] ss:$16 sps:$4 sm:$0xff]  }
 0x296   : > { %v2054_v62 = vpack.c.bf16 %v2018_v5, %v2014_v3  ;;  %v6035_v11 = vpack.c.bf16 %v2020_v6, %v2016_v4  ;;  %2988 = vmatpush1.bf16.msra.mxu0 %v5281_v56  ;;  %v1730_v14 = vpop.f32.mrb[60].mxu0  ;;  %v1956_v16 = vpop.f32.mrb[60].mxu1  ;;  %3214 = vmatpush1.bf16.msra.mxu1 %v5284_v58  ;;  %v5305_v3 = vld [vmem:[#allocation5 + $0x3e0] ss:$16 sps:$4 sm:$0xff]   ;;  %v5308_v4 = vld [vmem:[#allocation5 + $0x3e8] ss:$16 sps:$4 sm:$0xff]  }
 0x297   : > { %v4618_v53 = vadd.f32 %v1730_v14, %v5942_v21  ;;  %v4650_v18 = vadd.f32 %v1956_v16, %v5945_v22  ;;  %v1732_v19 = vpop.f32.mrb[61].mxu0  ;;  %v1958_v29 = vpop.f32.mrb[61].mxu1  ;;  %2989 = vmatprep.subr.bf16.mxu0 %v5289_v60  ;;  %3215 = vmatprep.subr.bf16.mxu1 %v5292_v1  ;;  %v5310_v1 = vld [vmem:[#allocation5 + $0x3ec] ss:$16 sps:$4 sm:$0xff]   ;;  %v5311_v5 = vld [vmem:[%s6340_s4 + $0x40] sm:$0xff]  }
 0x298   : > { %v4619_v27 = vadd.f32 %v1732_v19, %v5948_v23  ;;  %v4651_v9 = vadd.f32 %v1958_v29, %v5951_v24  ;;  %v1734_v30 = vpop.f32.mrb[62].mxu0  ;;  %v1960_v32 = vpop.f32.mrb[62].mxu1  ;;  %2944 = vmatprep.mubr.bf16.mxu0 %v2054_v62  ;;  %3170 = vmatprep.mubr.bf16.mxu1 %v2054_v62  ;;  %v5313_v6 = vld [vmem:[%s6340_s4 + $0xc0] sm:$0xff]   ;;  %v5315_v62 = vld [vmem:[%s6340_s4 + $0x48] sm:$0xff]   ;;  %v5325_v19 = vld [vmem:[%s6340_s4 + $0xd8] sm:$0xff]  }
 0x299   : > { %v4620_v34 = vadd.f32 %v1734_v30, %v5942_v21  ;;  %v4652_v36 = vadd.f32 %v1960_v32, %v5945_v22  ;;  %v1736_v7 = vpop.f32.mrb[63].mxu0  ;;  %v1962_v40 = vpop.f32.mrb[63].mxu1  ;;  %2945 = vmatmul.mubr.bf16.gmra.mrb[88].mxu0 %v2053_v8  ;;  %3171 = vmatmul.mubr.bf16.gmra.mrb[88].mxu1 %v2053_v8  ;;  %v2021_v31 = vmax.f32 %v4618_v53, 0.0  ;;  %v2023_v48 = vmax.f32 %v4650_v18, 0.0  ;;  %v5304_v21 = vld [vmem:[#allocation5 + $0x3cc] ss:$16 sps:$4 sm:$0xff]  }
 0x29a   : > { %v4621_v43 = vadd.f32 %v1736_v7, %v5948_v23  ;;  %v4653_v38 = vadd.f32 %v1962_v40, %v5951_v24  ;;  %2990 = vmatpush1.bf16.msra.mxu0 %v5287_v47  ;;  %3216 = vmatpush1.bf16.msra.mxu1 %v5290_v17  ;;  %v2022_v22 = vmax.f32 %v4619_v27, 0.0  ;;  %v2024_v55 = vmax.f32 %v4651_v9, 0.0  ;;  %v5312_v8 = vld [vmem:[%s6340_s4] sm:$0xff]   ;;  %v5317_v14 = vld [vmem:[%s6340_s4 + $0xc8] sm:$0xff]   ;;  %v5319_v17 = vld [vmem:[%s6340_s4 + $0x50] sm:$0xff]  }
 0x29b   : > { %v2025_v52 = vmax.f32 %v4620_v34, 0.0  ;;  %v2027_v39 = vmax.f32 %v4652_v36, 0.0  ;;  %2991 = vmatprep.subr.bf16.mxu0 %v5295_v25  ;;  %3217 = vmatprep.subr.bf16.mxu1 %v5298_v26  ;;  %v5316_v16 = vld [vmem:[%s6340_s4 + $0x8] sm:$0xff]   ;;  %v5322_v53 = vld [vmem:[%s6340_s4 + $0x90] sm:$0xff]   ;;  %v5323_v18 = vld [vmem:[%s6340_s4 + $0x58] sm:$0xff]  }
 0x29c   : > { %v2026_v56 = vmax.f32 %v4621_v43, 0.0  ;;  %v2028_v58 = vmax.f32 %v4653_v38, 0.0  ;;  %v5318_v47 = vld [vmem:[%s6340_s4 + $0x88] sm:$0xff]   ;;  %v5324_v29 = vld [vmem:[%s6340_s4 + $0x18] sm:$0xff]   ;;  %v5327_v26 = vld [vmem:[%s6340_s4 + $0x60] sm:$0xff]  }
 0x29d   : > { %v2057_v60 = vpack.c.bf16 %v2025_v52, %v2021_v31  ;;  %v6045_v23 = vpack.c.bf16 %v2027_v39, %v2023_v48  ;;  %v5326_v25 = vld [vmem:[%s6340_s4 + $0x98] sm:$0xff]   ;;  %v5330_v27 = vld [vmem:[%s6340_s4 + $0xa0] sm:$0xff]   ;;  %v5331_v9 = vld [vmem:[%s6340_s4 + $0x68] sm:$0xff]  }
 0x29e   : > { %v2058_v24 = vpack.c.bf16 %v2026_v56, %v2022_v22  ;;  %v6047_v61 = vpack.c.bf16 %v2028_v58, %v2024_v55  ;;  %2992 = vmatpush1.bf16.msra.mxu0 %v5293_v45  ;;  %3218 = vmatpush1.bf16.msra.mxu1 %v5296_v46  ;;  %v5333_v30 = vld [vmem:[%s6340_s4 + $0xe8] sm:$0xff]   ;;  %v5335_v36 = vld [vmem:[%s6340_s4 + $0x70] sm:$0xff]  }
 0x29f   : > { %2993 = vmatprep.subr.bf16.mxu0 %v5301_v51  ;;  %3219 = vmatprep.subr.bf16.mxu1 %v5304_v21  ;;  %v5332_v32 = vld [vmem:[%s6340_s4 + $0x28] sm:$0xff]   ;;  %v5338_v7 = vld [vmem:[%s6340_s4 + $0xb0] sm:$0xff]  }
 0x2a0   : > { %2954 = vmatprep.mubr.bf16.mxu0 %v2058_v24  ;;  %3180 = vmatprep.mubr.bf16.mxu1 %v2058_v24  ;;  %v5334_v34 = vld [vmem:[%s6340_s4 + $0xa8] sm:$0xff]  }
 0x2a1   : > { %2955 = vmatmul.mubr.bf16.gmra.mrb[92].mxu0 %v2057_v60  ;;  %3181 = vmatmul.mubr.bf16.gmra.mrb[92].mxu1 %v2057_v60 }
 0x2a2   : > { %2994 = vmatpush1.bf16.msra.mxu0 %v5299_v63  ;;  %2997 = vmatprep.mubr.bf16.mxu0 %v5963_v15 }
 0x2a3   : > { %3220 = vmatpush1.bf16.msra.mxu1 %v5302_v2  ;;  %3223 = vmatprep.mubr.bf16.mxu1 %v5963_v15  ;;  %v5314_v15 = vld [vmem:[%s6340_s4 + $0x80] sm:$0xff]  }
 0x2a4   : > { %2995 = vmatprep.subr.bf16.mxu0 %v5307_v13  ;;  %3221 = vmatprep.subr.bf16.mxu1 %v5310_v1 }
 0x2a6   : > { %2996 = vmatpush1.bf16.msra.mxu0 %v5305_v3 }
 0x2a7   : > { %3222 = vmatpush1.bf16.msra.mxu1 %v5308_v4  ;;  %4462 = vmatprep.subr.bf16.mxu0 %v5311_v5 }
 0x2a8   : > { %4526 = vmatprep.subr.bf16.mxu1 %v5313_v6 }
 0x2a9   : > { %2998 = vmatmul.mubr.bf16.vlgmr.msra.gmra.mrb[64].mxu0 %v5961_v57 }
 0x2aa   : > { %3224 = vmatmul.mubr.bf16.vlgmr.msra.gmra.mrb[64].mxu1 %v5961_v57  ;;  %3007 = vmatprep.mubr.bf16.mxu0 %v5975_v33  ;;  %v5321_v57 = vld [vmem:[%s6340_s4 + $0xd0] sm:$0xff]  }
 0x2ab   : > { %3233 = vmatprep.mubr.bf16.mxu1 %v5975_v33  ;;  %4463 = vmatpush3.bf16.msra.mxu0 %v5312_v8  ;;  %v5320_v33 = vld [vmem:[%s6340_s4 + $0x10] sm:$0xff]  }
 0x2ac   : > { %4527 = vmatpush3.bf16.msra.mxu1 %v5314_v15  ;;  %4464 = vmatprep.subr.bf16.mxu0 %v5315_v62 }
 0x2ad   : > { %4528 = vmatprep.subr.bf16.mxu1 %v5317_v14 }
 0x2af   : > { %4465 = vmatpush3.bf16.msra.mxu0 %v5316_v16 }
 0x2b0   : > { %4529 = vmatpush3.bf16.msra.mxu1 %v5318_v47  ;;  %4466 = vmatprep.subr.bf16.mxu0 %v5319_v17 }
 0x2b1   : > { %3008 = vmatmul.mubr.bf16.gmra.mrb[68].mxu0 %v5973_v0  ;;  %4530 = vmatprep.subr.bf16.mxu1 %v5321_v57 }
 0x2b2   : > { %3234 = vmatmul.mubr.bf16.gmra.mrb[68].mxu1 %v5973_v0  ;;  %3017 = vmatprep.mubr.bf16.mxu0 %v5987_v12  ;;  %v5329_v0 = vld [vmem:[%s6340_s4 + $0xe0] sm:$0xff]  }
 0x2b3   : > { %3243 = vmatprep.mubr.bf16.mxu1 %v5987_v12  ;;  %4467 = vmatpush3.bf16.msra.mxu0 %v5320_v33  ;;  %v5328_v12 = vld [vmem:[%s6340_s4 + $0x20] sm:$0xff]  }
 0x2b4   : > { %4531 = vmatpush3.bf16.msra.mxu1 %v5322_v53  ;;  %4468 = vmatprep.subr.bf16.mxu0 %v5323_v18 }
 0x2b5   : > { %4532 = vmatprep.subr.bf16.mxu1 %v5325_v19 }
 0x2b7   : > { %4469 = vmatpush3.bf16.msra.mxu0 %v5324_v29 }
 0x2b8   : > { %4533 = vmatpush3.bf16.msra.mxu1 %v5326_v25  ;;  %4470 = vmatprep.subr.bf16.mxu0 %v5327_v26 }
 0x2b9   : > { %3018 = vmatmul.mubr.bf16.gmra.mrb[72].mxu0 %v5985_v49  ;;  %4534 = vmatprep.subr.bf16.mxu1 %v5329_v0 }
 0x2ba   : > { %3244 = vmatmul.mubr.bf16.gmra.mrb[72].mxu1 %v5985_v49  ;;  %3027 = vmatprep.mubr.bf16.mxu0 %v5999_v59  ;;  %v5337_v49 = vld [vmem:[%s6340_s4 + $0xf0] sm:$0xff]  }
 0x2bb   : > { %3253 = vmatprep.mubr.bf16.mxu1 %v5999_v59  ;;  %4471 = vmatpush3.bf16.msra.mxu0 %v5328_v12  ;;  %v5336_v59 = vld [vmem:[%s6340_s4 + $0x30] sm:$0xff]  }
 0x2bc   : > { %4535 = vmatpush3.bf16.msra.mxu1 %v5330_v27  ;;  %4472 = vmatprep.subr.bf16.mxu0 %v5331_v9 }
 0x2bd   : > { %4536 = vmatprep.subr.bf16.mxu1 %v5333_v30 }
 0x2bf   : > { %4473 = vmatpush3.bf16.msra.mxu0 %v5332_v32 }
 0x2c0   : > { %4537 = vmatpush3.bf16.msra.mxu1 %v5334_v34  ;;  %4474 = vmatprep.subr.bf16.mxu0 %v5335_v36 }
 0x2c1   : > { %3028 = vmatmul.mubr.bf16.gmra.mrb[76].mxu0 %v5997_v28  ;;  %4538 = vmatprep.subr.bf16.mxu1 %v5337_v49 }
 0x2c2   : > { %3254 = vmatmul.mubr.bf16.gmra.mrb[76].mxu1 %v5997_v28  ;;  %3037 = vmatprep.mubr.bf16.mxu0 %v6011_v42  ;;  %v5339_v28 = vld [vmem:[%s6340_s4 + $0x78] sm:$0xff]  }
 0x2c3   : > { %3263 = vmatprep.mubr.bf16.mxu1 %v6011_v42  ;;  %4475 = vmatpush3.bf16.msra.mxu0 %v5336_v59  ;;  %v5340_v42 = vld [vmem:[%s6340_s4 + $0x38] sm:$0xff]  }
 0x2c4   : > { %4539 = vmatpush3.bf16.msra.mxu1 %v5338_v7  ;;  %4476 = vmatprep.subr.bf16.mxu0 %v5339_v28 }
 0x2c7   : > { %4477 = vmatpush3.bf16.msra.mxu0 %v5340_v42 }
 0x2c9   : > { %3038 = vmatmul.mubr.bf16.gmra.mrb[80].mxu0 %v6009_v54 }
 0x2ca   : > { %3264 = vmatmul.mubr.bf16.gmra.mrb[80].mxu1 %v6009_v54  ;;  %3047 = vmatprep.mubr.bf16.mxu0 %v6023_v50  ;;  %v5341_v54 = vld [vmem:[%s6340_s4 + $0xf8] sm:$0xff]  }
 0x2cb   : > { %3273 = vmatprep.mubr.bf16.mxu1 %v6023_v50  ;;  %4540 = vmatprep.subr.bf16.mxu1 %v5341_v54  ;;  %v2190_v50 = vld [vmem:[#allocation7 + $0x2] ss:$8 sm:$0xf] }
 0x2cc   : > { %v6184_v40 = vrot.slane %v2190_v50, %v5795_v37  ;;  %v6187_v43 = vrot.slane %v2190_v50, %v5806_v44 }
 0x2d1   : > { %3048 = vmatmul.mubr.bf16.gmra.mrb[84].mxu0 %v6021_v20 }
 0x2d2   : > { %3274 = vmatmul.mubr.bf16.gmra.mrb[84].mxu1 %v6021_v20  ;;  %3057 = vmatprep.mubr.bf16.mxu0 %v6035_v11  ;;  %v5342_v20 = vld [vmem:[%s6340_s4 + $0xb8] sm:$0xff]  }
 0x2d3   : > { %3283 = vmatprep.mubr.bf16.mxu1 %v6035_v11  ;;  %4541 = vmatpush3.bf16.msra.mxu1 %v5342_v20  ;;  %v6181_v11 = vrot.slane %v2190_v50, %v5803_v41 }
 0x2d9   : > { %3058 = vmatmul.mubr.bf16.gmra.mrb[88].mxu0 %v6033_v10 }
 0x2da   : > { %3284 = vmatmul.mubr.bf16.gmra.mrb[88].mxu1 %v6033_v10  ;;  %3067 = vmatprep.mubr.bf16.mxu0 %v6047_v61  ;;  %v6178_v10 = vrot.slane %v2190_v50, %v5793_v35 }
 0x2db   : > { %3293 = vmatprep.mubr.bf16.mxu1 %v6047_v61 }
 0x2e1   : > { %3068 = vmatmul.mubr.bf16.gmra.mrb[92].mxu0 %v6045_v23 }
 0x2e2   : > { %3294 = vmatmul.mubr.bf16.gmra.mrb[92].mxu1 %v6045_v23 }
 0x37c   : > { %v2999_v38 = vpop.f32.mrb[64].mxu0 }
 0x37d   : > { %v4654_v45 = vadd.f32 %v2999_v38, %v6178_v10  ;;  %v3225_v46 = vpop.f32.mrb[64].mxu1  ;;  %v3001_v51 = vpop.f32.mrb[65].mxu0 }
 0x37e   : > { %v4686_v31 = vadd.f32 %v3225_v46, %v6181_v11  ;;  %v4655_v48 = vadd.f32 %v3001_v51, %v6184_v40  ;;  %v3227_v35 = vpop.f32.mrb[65].mxu1  ;;  %v3003_v52 = vpop.f32.mrb[66].mxu0 }
 0x37f   : > { %v4687_v41 = vadd.f32 %v3227_v35, %v6187_v43  ;;  %v4656_v39 = vadd.f32 %v3003_v52, %v6178_v10  ;;  %v3229_v37 = vpop.f32.mrb[66].mxu1  ;;  %v3005_v21 = vpop.f32.mrb[67].mxu0  ;;  %v3304_v56 = vmax.f32 %v4654_v45, 0.0 }
 0x380   : > { %v4688_v44 = vadd.f32 %v3229_v37, %v6181_v11  ;;  %v4657_v22 = vadd.f32 %v3005_v21, %v6184_v40  ;;  %v3231_v55 = vpop.f32.mrb[67].mxu1  ;;  %v3306_v23 = vmax.f32 %v4686_v31, 0.0  ;;  %v3305_v24 = vmax.f32 %v4655_v48, 0.0 }
 0x381   : > { %v3308_v58 = vmax.f32 %v4656_v39, 0.0  ;;  %v4689_v60 = vadd.f32 %v3231_v55, %v6187_v43  ;;  %v3307_v2 = vmax.f32 %v4687_v41, 0.0 }
 0x382   : > { %v3310_v61 = vmax.f32 %v4688_v44, 0.0  ;;  %v3309_v63 = vmax.f32 %v4657_v22, 0.0 }
 0x383   : > { %v3368_v13 = vpack.c.bf16 %v3308_v58, %v3304_v56  ;;  %v3311_v1 = vmax.f32 %v4689_v60, 0.0 }
 0x384   : > { %v3370_v3 = vpack.c.bf16 %v3310_v61, %v3306_v23  ;;  %v3369_v4 = vpack.c.bf16 %v3309_v63, %v3305_v24  ;;  %v3009_v5 = vpop.f32.mrb[68].mxu0 }
 0x385   : > { %v3371_v6 = vpack.c.bf16 %v3311_v1, %v3307_v2  ;;  %v4658_v8 = vadd.f32 %v3009_v5, %v6178_v10  ;;  %v3235_v15 = vpop.f32.mrb[68].mxu1  ;;  %v3011_v62 = vpop.f32.mrb[69].mxu0 }
 0x386   : > { %v4690_v14 = vadd.f32 %v3235_v15, %v6181_v11  ;;  %v4659_v16 = vadd.f32 %v3011_v62, %v6184_v40  ;;  %v3237_v47 = vpop.f32.mrb[69].mxu1  ;;  %v3013_v17 = vpop.f32.mrb[70].mxu0  ;;  %3689 = vmatprep.mubr.bf16.mxu0 %v3369_v4 }
 0x387   : > { %v4691_v57 = vadd.f32 %v3237_v47, %v6187_v43  ;;  %v4660_v33 = vadd.f32 %v3013_v17, %v6178_v10  ;;  %v3239_v53 = vpop.f32.mrb[70].mxu1  ;;  %3786 = vmatprep.mubr.bf16.mxu1 %v3371_v6  ;;  %v3015_v18 = vpop.f32.mrb[71].mxu0  ;;  %3690 = vmatmul.mubr.bf16.vlgmr.msra.gmra.mrb[96].mxu0 %v3368_v13  ;;  %v3312_v26 = vmax.f32 %v4658_v8, 0.0 }
 0x388   : > { %v4692_v19 = vadd.f32 %v3239_v53, %v6181_v11  ;;  %v4661_v29 = vadd.f32 %v3015_v18, %v6184_v40  ;;  %v3241_v25 = vpop.f32.mrb[71].mxu1  ;;  %3787 = vmatmul.mubr.bf16.vlgmr.msra.gmra.mrb[96].mxu1 %v3370_v3  ;;  %v3314_v27 = vmax.f32 %v4690_v14, 0.0  ;;  %v3313_v9 = vmax.f32 %v4659_v16, 0.0 }
 0x389   : > { %v3316_v0 = vmax.f32 %v4660_v33, 0.0  ;;  %v4693_v12 = vadd.f32 %v3241_v25, %v6187_v43  ;;  %v3315_v34 = vmax.f32 %v4691_v57, 0.0 }
 0x38a   : > { %v3318_v30 = vmax.f32 %v4692_v19, 0.0  ;;  %v3317_v32 = vmax.f32 %v4661_v29, 0.0 }
 0x38b   : > { %v3372_v36 = vpack.c.bf16 %v3316_v0, %v3312_v26  ;;  %v3319_v49 = vmax.f32 %v4693_v12, 0.0 }
 0x38c   : > { %v3374_v59 = vpack.c.bf16 %v3318_v30, %v3314_v27  ;;  %v3373_v7 = vpack.c.bf16 %v3317_v32, %v3313_v9  ;;  %v3019_v28 = vpop.f32.mrb[72].mxu0 }
 0x38d   : > { %v3375_v54 = vpack.c.bf16 %v3319_v49, %v3315_v34  ;;  %v4662_v42 = vadd.f32 %v3019_v28, %v6178_v10  ;;  %v3245_v20 = vpop.f32.mrb[72].mxu1  ;;  %v3021_v50 = vpop.f32.mrb[73].mxu0 }
 0x38e   : > { %v4694_v38 = vadd.f32 %v3245_v20, %v6181_v11  ;;  %v4663_v45 = vadd.f32 %v3021_v50, %v6184_v40  ;;  %v3247_v46 = vpop.f32.mrb[73].mxu1  ;;  %v3023_v51 = vpop.f32.mrb[74].mxu0  ;;  %3697 = vmatprep.mubr.bf16.mxu0 %v3373_v7 }
 0x38f   : > { %v4695_v31 = vadd.f32 %v3247_v46, %v6187_v43  ;;  %v4664_v48 = vadd.f32 %v3023_v51, %v6178_v10  ;;  %v3249_v35 = vpop.f32.mrb[74].mxu1  ;;  %3794 = vmatprep.mubr.bf16.mxu1 %v3375_v54  ;;  %v3025_v52 = vpop.f32.mrb[75].mxu0  ;;  %3698 = vmatmul.mubr.bf16.gmra.mrb[100].mxu0 %v3372_v36  ;;  %v3320_v21 = vmax.f32 %v4662_v42, 0.0 }
 0x390   : > { %v4696_v41 = vadd.f32 %v3249_v35, %v6181_v11  ;;  %v4665_v39 = vadd.f32 %v3025_v52, %v6184_v40  ;;  %v3251_v37 = vpop.f32.mrb[75].mxu1  ;;  %3795 = vmatmul.mubr.bf16.gmra.mrb[100].mxu1 %v3374_v59  ;;  %v3322_v55 = vmax.f32 %v4694_v38, 0.0  ;;  %v3321_v56 = vmax.f32 %v4663_v45, 0.0 }
 0x391   : > { %v3324_v44 = vmax.f32 %v4664_v48, 0.0  ;;  %v4697_v22 = vadd.f32 %v3251_v37, %v6187_v43  ;;  %v3323_v23 = vmax.f32 %v4695_v31, 0.0 }
 0x392   : > { %v3326_v58 = vmax.f32 %v4696_v41, 0.0  ;;  %v3325_v60 = vmax.f32 %v4665_v39, 0.0 }
 0x393   : > { %v3376_v24 = vpack.c.bf16 %v3324_v44, %v3320_v21  ;;  %v3327_v61 = vmax.f32 %v4697_v22, 0.0 }
 0x394   : > { %v3378_v63 = vpack.c.bf16 %v3326_v58, %v3322_v55  ;;  %v3377_v2 = vpack.c.bf16 %v3325_v60, %v3321_v56  ;;  %v3029_v13 = vpop.f32.mrb[76].mxu0 }
 0x395   : > { %v3379_v1 = vpack.c.bf16 %v3327_v61, %v3323_v23  ;;  %v4666_v3 = vadd.f32 %v3029_v13, %v6178_v10  ;;  %v3255_v4 = vpop.f32.mrb[76].mxu1  ;;  %v3031_v5 = vpop.f32.mrb[77].mxu0 }
 0x396   : > { %v4698_v6 = vadd.f32 %v3255_v4, %v6181_v11  ;;  %v4667_v8 = vadd.f32 %v3031_v5, %v6184_v40  ;;  %v3257_v15 = vpop.f32.mrb[77].mxu1  ;;  %v3033_v62 = vpop.f32.mrb[78].mxu0  ;;  %3705 = vmatprep.mubr.bf16.mxu0 %v3377_v2 }
 0x397   : > { %v4699_v14 = vadd.f32 %v3257_v15, %v6187_v43  ;;  %v4668_v16 = vadd.f32 %v3033_v62, %v6178_v10  ;;  %v3259_v47 = vpop.f32.mrb[78].mxu1  ;;  %3802 = vmatprep.mubr.bf16.mxu1 %v3379_v1  ;;  %v3035_v17 = vpop.f32.mrb[79].mxu0  ;;  %3706 = vmatmul.mubr.bf16.gmra.mrb[104].mxu0 %v3376_v24  ;;  %v3328_v18 = vmax.f32 %v4666_v3, 0.0 }
 0x398   : > { %v4700_v57 = vadd.f32 %v3259_v47, %v6181_v11  ;;  %v4669_v33 = vadd.f32 %v3035_v17, %v6184_v40  ;;  %v3261_v53 = vpop.f32.mrb[79].mxu1  ;;  %3803 = vmatmul.mubr.bf16.gmra.mrb[104].mxu1 %v3378_v63  ;;  %v3330_v25 = vmax.f32 %v4698_v6, 0.0  ;;  %v3329_v26 = vmax.f32 %v4667_v8, 0.0 }
 0x399   : > { %v3332_v19 = vmax.f32 %v4668_v16, 0.0  ;;  %v4701_v29 = vadd.f32 %v3261_v53, %v6187_v43  ;;  %v3331_v27 = vmax.f32 %v4699_v14, 0.0 }
 0x39a   : > { %v3334_v0 = vmax.f32 %v4700_v57, 0.0  ;;  %v3333_v12 = vmax.f32 %v4669_v33, 0.0 }
 0x39b   : > { %v3380_v9 = vpack.c.bf16 %v3332_v19, %v3328_v18  ;;  %v3335_v30 = vmax.f32 %v4701_v29, 0.0 }
 0x39c   : > { %v3382_v32 = vpack.c.bf16 %v3334_v0, %v3330_v25  ;;  %v3381_v34 = vpack.c.bf16 %v3333_v12, %v3329_v26  ;;  %v3039_v36 = vpop.f32.mrb[80].mxu0 }
 0x39d   : > { %v3383_v49 = vpack.c.bf16 %v3335_v30, %v3331_v27  ;;  %v4670_v59 = vadd.f32 %v3039_v36, %v6178_v10  ;;  %v3265_v7 = vpop.f32.mrb[80].mxu1  ;;  %v3041_v28 = vpop.f32.mrb[81].mxu0 }
 0x39e   : > { %v4702_v54 = vadd.f32 %v3265_v7, %v6181_v11  ;;  %v4671_v42 = vadd.f32 %v3041_v28, %v6184_v40  ;;  %v3267_v20 = vpop.f32.mrb[81].mxu1  ;;  %v3043_v50 = vpop.f32.mrb[82].mxu0  ;;  %3713 = vmatprep.mubr.bf16.mxu0 %v3381_v34 }
 0x39f   : > { %v4703_v38 = vadd.f32 %v3267_v20, %v6187_v43  ;;  %v4672_v45 = vadd.f32 %v3043_v50, %v6178_v10  ;;  %v3269_v46 = vpop.f32.mrb[82].mxu1  ;;  %3810 = vmatprep.mubr.bf16.mxu1 %v3383_v49  ;;  %v3045_v51 = vpop.f32.mrb[83].mxu0  ;;  %3714 = vmatmul.mubr.bf16.gmra.mrb[108].mxu0 %v3380_v9  ;;  %v3336_v52 = vmax.f32 %v4670_v59, 0.0 }
 0x3a0   : > { %v4704_v31 = vadd.f32 %v3269_v46, %v6181_v11  ;;  %v4673_v48 = vadd.f32 %v3045_v51, %v6184_v40  ;;  %v3271_v35 = vpop.f32.mrb[83].mxu1  ;;  %3811 = vmatmul.mubr.bf16.gmra.mrb[108].mxu1 %v3382_v32  ;;  %v3338_v37 = vmax.f32 %v4702_v54, 0.0  ;;  %v3337_v21 = vmax.f32 %v4671_v42, 0.0 }
 0x3a1   : > { %v3340_v41 = vmax.f32 %v4672_v45, 0.0  ;;  %v4705_v39 = vadd.f32 %v3271_v35, %v6187_v43  ;;  %v3339_v55 = vmax.f32 %v4703_v38, 0.0 }
 0x3a2   : > { %v3342_v44 = vmax.f32 %v4704_v31, 0.0  ;;  %v3341_v22 = vmax.f32 %v4673_v48, 0.0 }
 0x3a3   : > { %v3384_v56 = vpack.c.bf16 %v3340_v41, %v3336_v52  ;;  %v3343_v58 = vmax.f32 %v4705_v39, 0.0 }
 0x3a4   : > { %v3386_v60 = vpack.c.bf16 %v3342_v44, %v3338_v37  ;;  %v3385_v23 = vpack.c.bf16 %v3341_v22, %v3337_v21  ;;  %v3049_v24 = vpop.f32.mrb[84].mxu0 }
 0x3a5   : > { %v3387_v61 = vpack.c.bf16 %v3343_v58, %v3339_v55  ;;  %v4674_v63 = vadd.f32 %v3049_v24, %v6178_v10  ;;  %v3275_v2 = vpop.f32.mrb[84].mxu1  ;;  %v3051_v13 = vpop.f32.mrb[85].mxu0 }
 0x3a6   : > { %v4706_v1 = vadd.f32 %v3275_v2, %v6181_v11  ;;  %v4675_v3 = vadd.f32 %v3051_v13, %v6184_v40  ;;  %v3277_v4 = vpop.f32.mrb[85].mxu1  ;;  %v3053_v5 = vpop.f32.mrb[86].mxu0  ;;  %3721 = vmatprep.mubr.bf16.mxu0 %v3385_v23 }
 0x3a7   : > { %v4707_v6 = vadd.f32 %v3277_v4, %v6187_v43  ;;  %v4676_v8 = vadd.f32 %v3053_v5, %v6178_v10  ;;  %v3279_v15 = vpop.f32.mrb[86].mxu1  ;;  %3818 = vmatprep.mubr.bf16.mxu1 %v3387_v61  ;;  %v3055_v62 = vpop.f32.mrb[87].mxu0  ;;  %3722 = vmatmul.mubr.bf16.gmra.mrb[112].mxu0 %v3384_v56  ;;  %v3344_v17 = vmax.f32 %v4674_v63, 0.0 }
 0x3a8   : > { %v4708_v14 = vadd.f32 %v3279_v15, %v6181_v11  ;;  %v4677_v16 = vadd.f32 %v3055_v62, %v6184_v40  ;;  %v3281_v47 = vpop.f32.mrb[87].mxu1  ;;  %3819 = vmatmul.mubr.bf16.gmra.mrb[112].mxu1 %v3386_v60  ;;  %v3346_v53 = vmax.f32 %v4706_v1, 0.0  ;;  %v3345_v18 = vmax.f32 %v4675_v3, 0.0 }
 0x3a9   : > { %v3348_v57 = vmax.f32 %v4676_v8, 0.0  ;;  %v4709_v33 = vadd.f32 %v3281_v47, %v6187_v43  ;;  %v3347_v25 = vmax.f32 %v4707_v6, 0.0 }
 0x3aa   : > { %v3350_v19 = vmax.f32 %v4708_v14, 0.0  ;;  %v3349_v29 = vmax.f32 %v4677_v16, 0.0 }
 0x3ab   : > { %v3388_v26 = vpack.c.bf16 %v3348_v57, %v3344_v17  ;;  %v3351_v0 = vmax.f32 %v4709_v33, 0.0 }
 0x3ac   : > { %v3390_v12 = vpack.c.bf16 %v3350_v19, %v3346_v53  ;;  %v3389_v27 = vpack.c.bf16 %v3349_v29, %v3345_v18  ;;  %v3059_v9 = vpop.f32.mrb[88].mxu0 }
 0x3ad   : > { %v3391_v30 = vpack.c.bf16 %v3351_v0, %v3347_v25  ;;  %v4678_v32 = vadd.f32 %v3059_v9, %v6178_v10  ;;  %v3285_v34 = vpop.f32.mrb[88].mxu1  ;;  %v3061_v36 = vpop.f32.mrb[89].mxu0 }
 0x3ae   : > { %v4710_v49 = vadd.f32 %v3285_v34, %v6181_v11  ;;  %v4679_v59 = vadd.f32 %v3061_v36, %v6184_v40  ;;  %v3287_v7 = vpop.f32.mrb[89].mxu1  ;;  %v3063_v28 = vpop.f32.mrb[90].mxu0  ;;  %3729 = vmatprep.mubr.bf16.mxu0 %v3389_v27 }
 0x3af   : > { %v4711_v54 = vadd.f32 %v3287_v7, %v6187_v43  ;;  %v4680_v42 = vadd.f32 %v3063_v28, %v6178_v10  ;;  %v3289_v20 = vpop.f32.mrb[90].mxu1  ;;  %3826 = vmatprep.mubr.bf16.mxu1 %v3391_v30  ;;  %v3065_v50 = vpop.f32.mrb[91].mxu0  ;;  %3730 = vmatmul.mubr.bf16.gmra.mrb[116].mxu0 %v3388_v26  ;;  %v3352_v51 = vmax.f32 %v4678_v32, 0.0  ;;  %v6253_v26 = vld [vmem:[#allocation7 + $0x3] ss:$0 sm:$0xff] }
 0x3b0   : > { %v4712_v38 = vadd.f32 %v3289_v20, %v6181_v11  ;;  %v4681_v45 = vadd.f32 %v3065_v50, %v6184_v40  ;;  %v3291_v46 = vpop.f32.mrb[91].mxu1  ;;  %3827 = vmatmul.mubr.bf16.gmra.mrb[116].mxu1 %v3390_v12  ;;  %v3354_v35 = vmax.f32 %v4710_v49, 0.0  ;;  %v3353_v52 = vmax.f32 %v4679_v59, 0.0 }
 0x3b1   : > { %v3356_v31 = vmax.f32 %v4680_v42, 0.0  ;;  %v4713_v48 = vadd.f32 %v3291_v46, %v6187_v43  ;;  %v3355_v37 = vmax.f32 %v4711_v54, 0.0 }
 0x3b2   : > { %v3358_v41 = vmax.f32 %v4712_v38, 0.0  ;;  %v3357_v39 = vmax.f32 %v4681_v45, 0.0 }
 0x3b3   : > { %v3392_v21 = vpack.c.bf16 %v3356_v31, %v3352_v51  ;;  %v3359_v44 = vmax.f32 %v4713_v48, 0.0 }
 0x3b4   : > { %v3394_v22 = vpack.c.bf16 %v3358_v41, %v3354_v35  ;;  %v3393_v55 = vpack.c.bf16 %v3357_v39, %v3353_v52  ;;  %v3069_v56 = vpop.f32.mrb[92].mxu0 }
 0x3b5   : > { %v3395_v58 = vpack.c.bf16 %v3359_v44, %v3355_v37  ;;  %v4682_v60 = vadd.f32 %v3069_v56, %v6178_v10  ;;  %v3295_v23 = vpop.f32.mrb[92].mxu1  ;;  %v3071_v24 = vpop.f32.mrb[93].mxu0 }
 0x3b6   : > { %v4714_v61 = vadd.f32 %v3295_v23, %v6181_v11  ;;  %v4683_v63 = vadd.f32 %v3071_v24, %v6184_v40  ;;  %v3297_v2 = vpop.f32.mrb[93].mxu1  ;;  %v3073_v13 = vpop.f32.mrb[94].mxu0  ;;  %3737 = vmatprep.mubr.bf16.mxu0 %v3393_v55 }
 0x3b7   : > { %v4715_v1 = vadd.f32 %v3297_v2, %v6187_v43  ;;  %v4684_v3 = vadd.f32 %v3073_v13, %v6178_v10  ;;  %v3299_v4 = vpop.f32.mrb[94].mxu1  ;;  %3834 = vmatprep.mubr.bf16.mxu1 %v3395_v58  ;;  %v3075_v5 = vpop.f32.mrb[95].mxu0  ;;  %3738 = vmatmul.mubr.bf16.gmra.mrb[120].mxu0 %v3392_v21  ;;  %v3360_v62 = vmax.f32 %v4682_v60, 0.0 }
 0x3b8   : > { %v4716_v6 = vadd.f32 %v3299_v4, %v6181_v11  ;;  %v4685_v8 = vadd.f32 %v3075_v5, %v6184_v40  ;;  %v3301_v15 = vpop.f32.mrb[95].mxu1  ;;  %3835 = vmatmul.mubr.bf16.gmra.mrb[120].mxu1 %v3394_v22  ;;  %v3362_v47 = vmax.f32 %v4714_v61, 0.0  ;;  %v3361_v17 = vmax.f32 %v4683_v63, 0.0 }
 0x3b9   : > { %v3364_v14 = vmax.f32 %v4684_v3, 0.0  ;;  %v4717_v16 = vadd.f32 %v3301_v15, %v6187_v43  ;;  %v3363_v53 = vmax.f32 %v4715_v1, 0.0 }
 0x3ba   : > { %v3366_v57 = vmax.f32 %v4716_v6, 0.0  ;;  %v3365_v33 = vmax.f32 %v4685_v8, 0.0 }
 0x3bb   : > { %v3396_v10 = vpack.c.bf16 %v3364_v14, %v3360_v62  ;;  %v3367_v18 = vmax.f32 %v4717_v16, 0.0 }
 0x3bc   : > { %v3398_v19 = vpack.c.bf16 %v3366_v57, %v3362_v47  ;;  %v3397_v29 = vpack.c.bf16 %v3365_v33, %v3361_v17 }
 0x3bd   : > { %v3399_v25 = vpack.c.bf16 %v3367_v18, %v3363_v53 }
 0x3be   : > { %3745 = vmatprep.mubr.bf16.mxu0 %v3397_v29 }
 0x3bf   : > { %3842 = vmatprep.mubr.bf16.mxu1 %v3399_v25  ;;  %3746 = vmatmul.mubr.bf16.gmra.mrb[124].mxu0 %v3396_v10 }
 0x3c0   : > { %3843 = vmatmul.mubr.bf16.gmra.mrb[124].mxu1 %v3398_v19 }
 0x45a   : > { %v4478_v11 = vpop.f32.mrb[96].mxu0 }
 0x45b   : > { %v4542_v40 = vpop.f32.mrb[96].mxu1  ;;  %v4479_v0 = vpop.f32.mrb[97].mxu0 }
 0x45c   : > { %v4480_v43 = vadd.f32 %v4479_v0, %v4478_v11  ;;  %v4543_v12 = vpop.f32.mrb[97].mxu1  ;;  %v4481_v27 = vpop.f32.mrb[98].mxu0 }
 0x45d   : > { %v4544_v9 = vadd.f32 %v4543_v12, %v4542_v40  ;;  %v4545_v30 = vpop.f32.mrb[98].mxu1  ;;  %v4482_v32 = vpop.f32.mrb[99].mxu0 }
 0x45e   : > { %v3692_v34 = vadd.f32 %v4480_v43, %v6253_v26  ;;  %v4483_v36 = vadd.f32 %v4482_v32, %v4481_v27  ;;  %v4546_v49 = vpop.f32.mrb[99].mxu1 }
 0x45f   : > { %v4547_v59 = vadd.f32 %v4546_v49, %v4545_v30 }
 0x460   : > { %v3789_v7 = vadd.f32 %v4544_v9, %v3692_v34  ;;  %v3695_v28 = vadd.f32 %v4483_v36, %v6253_v26 }
 0x462   : > { %v3792_v54 = vadd.f32 %v4547_v59, %v3695_v28  ;;  %v4484_v42 = vpop.f32.mrb[100].mxu0  ;;  %5343 = vtanh.f32 %v3789_v7 }
 0x463   : > { %v4548_v20 = vpop.f32.mrb[100].mxu1  ;;  %v4485_v50 = vpop.f32.mrb[101].mxu0 }
 0x464   : > { %5345 = vtanh.f32 %v3792_v54  ;;  %v4486_v38 = vadd.f32 %v4485_v50, %v4484_v42  ;;  %v4549_v45 = vpop.f32.mrb[101].mxu1  ;;  %v4487_v46 = vpop.f32.mrb[102].mxu0 }
 0x465   : > { %v4550_v51 = vadd.f32 %v4549_v45, %v4548_v20  ;;  %v4551_v31 = vpop.f32.mrb[102].mxu1  ;;  %v4488_v48 = vpop.f32.mrb[103].mxu0 }
 0x466   : > { %v3700_v35 = vadd.f32 %v4486_v38, %v6253_v26  ;;  %v4489_v52 = vadd.f32 %v4488_v48, %v4487_v46  ;;  %v4552_v41 = vpop.f32.mrb[103].mxu1 }
 0x467   : > { %v4553_v39 = vadd.f32 %v4552_v41, %v4551_v31 }
 0x468   : > { %v3797_v37 = vadd.f32 %v4550_v51, %v3700_v35  ;;  %v3703_v21 = vadd.f32 %v4489_v52, %v6253_v26 }
 0x46a   : > { %v3800_v44 = vadd.f32 %v4553_v39, %v3703_v21  ;;  %v4490_v22 = vpop.f32.mrb[104].mxu0  ;;  %5347 = vtanh.f32 %v3797_v37 }
 0x46b   : > { %v4554_v55 = vpop.f32.mrb[104].mxu1  ;;  %v4491_v56 = vpop.f32.mrb[105].mxu0 }
 0x46c   : > { %5349 = vtanh.f32 %v3800_v44  ;;  %v4492_v58 = vadd.f32 %v4491_v56, %v4490_v22  ;;  %v4555_v60 = vpop.f32.mrb[105].mxu1  ;;  %v4493_v23 = vpop.f32.mrb[106].mxu0 }
 0x46d   : > { %v5344_v24 = vpop.eup %5343  ;;  %v4556_v61 = vadd.f32 %v4555_v60, %v4554_v55  ;;  %v4557_v63 = vpop.f32.mrb[106].mxu1 }
 0x46e   : > { %v4494_v2 = vpop.f32.mrb[107].mxu0  ;;  %v5346_v13 = vpop.eup %5345  ;;  %v3708_v1 = vadd.f32 %v4492_v58, %v6253_v26 }
 0x46f   : > { %v4495_v3 = vadd.f32 %v4494_v2, %v4493_v23  ;;  %v4558_v4 = vpop.f32.mrb[107].mxu1  ;;  %v4418_v5 = vpack.c.bf16 %v5346_v13, %v5344_v24 }
 0x470   : > { %v4559_v6 = vadd.f32 %v4558_v4, %v4557_v63  ;;  %v3805_v8 = vadd.f32 %v4556_v61, %v3708_v1 }
 0x471   : > { %v3711_v15 = vadd.f32 %v4495_v3, %v6253_v26  ;;  %4419 = vst [vmem:[%s6264_s29] sm:$0xff] %v4418_v5  }
 0x472   : > { %v4496_v14 = vpop.f32.mrb[108].mxu0  ;;  %5351 = vtanh.f32 %v3805_v8 }
 0x473   : > { %v3808_v62 = vadd.f32 %v4559_v6, %v3711_v15  ;;  %v4560_v16 = vpop.f32.mrb[108].mxu1  ;;  %v4497_v47 = vpop.f32.mrb[109].mxu0 }
 0x474   : > { %v4498_v17 = vadd.f32 %v4497_v47, %v4496_v14  ;;  %v4561_v57 = vpop.f32.mrb[109].mxu1  ;;  %v4499_v33 = vpop.f32.mrb[110].mxu0 }
 0x475   : > { %5353 = vtanh.f32 %v3808_v62  ;;  %v5348_v53 = vpop.eup %5347  ;;  %v4562_v10 = vadd.f32 %v4561_v57, %v4560_v16  ;;  %v4563_v18 = vpop.f32.mrb[110].mxu1 }
 0x476   : > { %v4500_v19 = vpop.f32.mrb[111].mxu0  ;;  %v5350_v29 = vpop.eup %5349  ;;  %v3716_v25 = vadd.f32 %v4498_v17, %v6253_v26 }
 0x477   : > { %v4501_v11 = vadd.f32 %v4500_v19, %v4499_v33  ;;  %v4564_v40 = vpop.f32.mrb[111].mxu1  ;;  %v4423_v0 = vpack.c.bf16 %v5350_v29, %v5348_v53 }
 0x478   : > { %v4565_v43 = vadd.f32 %v4564_v40, %v4563_v18  ;;  %v3813_v12 = vadd.f32 %v4562_v10, %v3716_v25 }
 0x479   : > { %v3719_v27 = vadd.f32 %v4501_v11, %v6253_v26  ;;  %4455 = vst [vmem:[%s6264_s29 + $0x8] sm:$0xff] %v4423_v0  }
 0x47a   : > { %v4502_v30 = vpop.f32.mrb[112].mxu0  ;;  %5355 = vtanh.f32 %v3813_v12 }
 0x47b   : > { %v3816_v9 = vadd.f32 %v4565_v43, %v3719_v27  ;;  %v4566_v32 = vpop.f32.mrb[112].mxu1  ;;  %v4503_v34 = vpop.f32.mrb[113].mxu0 }
 0x47c   : > { %v4504_v36 = vadd.f32 %v4503_v34, %v4502_v30  ;;  %v4567_v49 = vpop.f32.mrb[113].mxu1  ;;  %v4505_v59 = vpop.f32.mrb[114].mxu0 }
 0x47d   : > { %5357 = vtanh.f32 %v3816_v9  ;;  %v5352_v7 = vpop.eup %5351  ;;  %v4568_v28 = vadd.f32 %v4567_v49, %v4566_v32  ;;  %v4569_v54 = vpop.f32.mrb[114].mxu1 }
 0x47e   : > { %v4506_v42 = vpop.f32.mrb[115].mxu0  ;;  %v3724_v50 = vadd.f32 %v4504_v36, %v6253_v26  ;;  %v4570_v45 = vpop.f32.mrb[115].mxu1 }
 0x47f   : > { %v5354_v20 = vpop.eup %5353  ;;  %v4507_v38 = vadd.f32 %v4506_v42, %v4505_v59  ;;  %v4571_v51 = vadd.f32 %v4570_v45, %v4569_v54 }
 0x480   : > { %v4428_v46 = vpack.c.bf16 %v5354_v20, %v5352_v7  ;;  %v3821_v31 = vadd.f32 %v4568_v28, %v3724_v50 }
 0x481   : > { %v3727_v48 = vadd.f32 %v4507_v38, %v6253_v26 }
 0x482   : > { %4456 = vst [vmem:[%s6264_s29 + $0x10] sm:$0xff] %v4428_v46   ;;  %v4508_v52 = vpop.f32.mrb[116].mxu0  ;;  %5359 = vtanh.f32 %v3821_v31 }
 0x483   : > { %v3824_v35 = vadd.f32 %v4571_v51, %v3727_v48  ;;  %v4572_v41 = vpop.f32.mrb[116].mxu1  ;;  %v4509_v39 = vpop.f32.mrb[117].mxu0 }
 0x484   : > { %v4510_v37 = vadd.f32 %v4509_v39, %v4508_v52  ;;  %v4573_v21 = vpop.f32.mrb[117].mxu1  ;;  %v4511_v44 = vpop.f32.mrb[118].mxu0 }
 0x485   : > { %5361 = vtanh.f32 %v3824_v35  ;;  %v5356_v22 = vpop.eup %5355  ;;  %v4574_v55 = vadd.f32 %v4573_v21, %v4572_v41  ;;  %v4575_v56 = vpop.f32.mrb[118].mxu1 }
 0x486   : > { %v4512_v58 = vpop.f32.mrb[119].mxu0  ;;  %v3732_v23 = vadd.f32 %v4510_v37, %v6253_v26  ;;  %v4576_v61 = vpop.f32.mrb[119].mxu1 }
 0x487   : > { %v5358_v60 = vpop.eup %5357  ;;  %v4513_v24 = vadd.f32 %v4512_v58, %v4511_v44  ;;  %v4577_v2 = vadd.f32 %v4576_v61, %v4575_v56 }
 0x488   : > { %v4433_v63 = vpack.c.bf16 %v5358_v60, %v5356_v22  ;;  %v3829_v13 = vadd.f32 %v4574_v55, %v3732_v23 }
 0x489   : > { %v3735_v1 = vadd.f32 %v4513_v24, %v6253_v26 }
 0x48a   : > { %4457 = vst [vmem:[%s6264_s29 + $0x18] sm:$0xff] %v4433_v63   ;;  %v4514_v4 = vpop.f32.mrb[120].mxu0  ;;  %5363 = vtanh.f32 %v3829_v13 }
 0x48b   : > { %v3832_v3 = vadd.f32 %v4577_v2, %v3735_v1  ;;  %v4578_v5 = vpop.f32.mrb[120].mxu1  ;;  %v4515_v6 = vpop.f32.mrb[121].mxu0 }
 0x48c   : > { %v4516_v8 = vadd.f32 %v4515_v6, %v4514_v4  ;;  %v4579_v15 = vpop.f32.mrb[121].mxu1  ;;  %v4517_v62 = vpop.f32.mrb[122].mxu0 }
 0x48d   : > { %5365 = vtanh.f32 %v3832_v3  ;;  %v5360_v14 = vpop.eup %5359  ;;  %v4580_v16 = vadd.f32 %v4579_v15, %v4578_v5  ;;  %v4581_v47 = vpop.f32.mrb[122].mxu1 }
 0x48e   : > { %v4518_v17 = vpop.f32.mrb[123].mxu0  ;;  %v3740_v33 = vadd.f32 %v4516_v8, %v6253_v26  ;;  %v4582_v10 = vpop.f32.mrb[123].mxu1 }
 0x48f   : > { %v5362_v57 = vpop.eup %5361  ;;  %v4519_v53 = vadd.f32 %v4518_v17, %v4517_v62  ;;  %v4583_v19 = vadd.f32 %v4582_v10, %v4581_v47 }
 0x490   : > { %v4438_v18 = vpack.c.bf16 %v5362_v57, %v5360_v14  ;;  %v3837_v29 = vadd.f32 %v4580_v16, %v3740_v33 }
 0x491   : > { %v3743_v25 = vadd.f32 %v4519_v53, %v6253_v26 }
 0x492   : > { %4458 = vst [vmem:[%s6264_s29 + $0x20] sm:$0xff] %v4438_v18   ;;  %v4520_v40 = vpop.f32.mrb[124].mxu0  ;;  %5367 = vtanh.f32 %v3837_v29 }
 0x493   : > { %v3840_v11 = vadd.f32 %v4583_v19, %v3743_v25  ;;  %v4584_v0 = vpop.f32.mrb[124].mxu1  ;;  %v4521_v43 = vpop.f32.mrb[125].mxu0 }
 0x494   : > { %v4522_v12 = vadd.f32 %v4521_v43, %v4520_v40  ;;  %v4585_v27 = vpop.f32.mrb[125].mxu1  ;;  %v4523_v9 = vpop.f32.mrb[126].mxu0 }
 0x495   : > { %5369 = vtanh.f32 %v3840_v11  ;;  %v5364_v30 = vpop.eup %5363  ;;  %v4586_v32 = vadd.f32 %v4585_v27, %v4584_v0  ;;  %v4587_v34 = vpop.f32.mrb[126].mxu1 }
 0x496   : > { %v4524_v36 = vpop.f32.mrb[127].mxu0  ;;  %v3748_v59 = vadd.f32 %v4522_v12, %v6253_v26  ;;  %v4588_v28 = vpop.f32.mrb[127].mxu1 }
 0x497   : > { %v5366_v49 = vpop.eup %5365  ;;  %v4525_v7 = vadd.f32 %v4524_v36, %v4523_v9  ;;  %v4589_v42 = vadd.f32 %v4588_v28, %v4587_v34 }
 0x498   : > { %v4443_v54 = vpack.c.bf16 %v5366_v49, %v5364_v30  ;;  %v3845_v20 = vadd.f32 %v4586_v32, %v3748_v59 }
 0x499   : > { %v3751_v50 = vadd.f32 %v4525_v7, %v6253_v26 }
 0x49a   : > { %4459 = vst [vmem:[%s6264_s29 + $0x28] sm:$0xff] %v4443_v54   ;;  %5371 = vtanh.f32 %v3845_v20 }
 0x49b   : > { %v3848_v38 = vadd.f32 %v4589_v42, %v3751_v50 }
 0x49c   : > { %v5368_v45 = vpop.eup %5367 }
 0x49d   : > { %5373 = vtanh.f32 %v3848_v38 }
 0x49f   : > { %v5370_v46 = vpop.eup %5369 }
 0x4a0   : > { %v4448_v51 = vpack.c.bf16 %v5370_v46, %v5368_v45 }
 0x4a2   : > { %4460 = vst [vmem:[%s6264_s29 + $0x30] sm:$0xff] %v4448_v51  }
 0x4a4   : > { %v5372_v31 = vpop.eup %5371 }
 0x4a7   : > { %v5374_v48 = vpop.eup %5373 }
 0x4a8   : > { %v4453_v26 = vpack.c.bf16 %v5374_v48, %v5372_v31 }
 0x4aa   : > { %4461 = vst [vmem:[%s6264_s29 + $0x38] sm:$0xff] %v4453_v26  }
 0x4ab   : > { %5472 = shalt.err (!%p5469_p9)
}
 0x4ac   : > { %s5473_s17 = scalar_lea.hbm %s6288_s15, 1024  ;;  %s5477_s18 = scalar_lea.hbm %s6342_s6, 2048 }
 0x4ad   : > { %p5474_p2 = scmp.ne.s32.totalorder %s6288_s15, %s5473_s17  ;;  %p5478_p4 = scmp.lt.u32.totalorder %s6288_s15, %s6342_s6 }
 0x4ae   : > { %p5479_p5 = scmp.lt.u32.totalorder %s5477_s18, %s5473_s17  ;;  %p5481_p12 = scmp.lt.u32.totalorder %s5473_s17, %s6288_s15 }
 0x4af   : > { %p5475_p3 = pnand %p5474_p2, %p6359_p7 }
 0x4b0   : > { %p5480_p10 = por %p5479_p5, %p5478_p4 }
 0x4b1   : > { %p5476_p0 = pneg %p5475_p3 }
 0x4b2   : > { %p5482_p8 = por %p5481_p12, %p5480_p10 }
 0x4b4   : > { %p5483_p11 = pnand %p5482_p8, %p5476_p0 }
 0x4b6   : > { %5486 = shalt.err (!%p5483_p11)
}
 0x4b7   : > { %s5538_s26 = smov 64   ;;  %s5539_s29 = smov 4  }
 0x4b8   : > { %4858 = dma.vmem_to_hbm [thread:$0]  (%p6359_p7), %s6290_s13, 1024, %s6288_s15, %s6295_s12, %s5538_s26, %s5538_s26, %s5539_s29  }
 0x4b9 PF: > { %p4880_p13 = scmp.ge.s32.totalorder %s5529_s24, 2  ;;  %s3976_s10 = sand.u32 1, %s5517_s21  }
 0x4ba   : > { %p6360_p1 = scmp.ne.s32.totalorder %s6350_s8, 0  ;;  %s3977_s11 = scalar_lea.sflag [#allocation4], %s3976_s10 }
 0x4bc   : > { %p4871_p6 = pnand %p4880_p13, %p6360_p1 }
 0x4be   : > { %5512 = dma.done.wait (!%p4871_p6), %s3977_s11, 1024  }
 0x4bf   : > { %5514 = vsyncadd (!%p4871_p6), %s3977_s11, 4294966272  ;;  %s6361_s14 = sld [smem:[#allocation12_spill]]  ;;  %s6362_s23 = sld [smem:[#allocation13_spill]] }
 0x4c0   : > { %p18_p9 = scmp.ge.s32.totalorder %s5600_s27, 4   ;;  %s6363_s21 = smov %s5521_s22 }
 0x4c1   : > { %s6365_s24 = smov %s5600_s27 }
 0x4c2   :  { %20 = sbr.rel (!%p18_p9) target bundleno = 5 (0x5), region = 94 }
 0x4c5   : > { %s6364_s22 = smov %s6361_s14 }
 0x4c9   :  { %3982 = vsyncpa [#allocation3], 1 }
 0x4ca   :  { %3984 = vsyncpa [#allocation3 + $0x1], 1 }
 0x4cb   :  { %3985 = vsyncpa [#allocation6], 1 }
 0x4cc   :  { %3986 = vsyncpa [#allocation4], 1 }
 0x4cd   :  { %3988 = vsyncpa [#allocation4 + $0x1], 1 }

</bundles_post_ra>
